<compile_context>
chip_gen: v6e
topology: v6e:2x2x1
jax: 0.10.0
libtpu: 0.0.40
codegen_flags: <defaults>
</compile_context>

<pallas_src>
import math
import numpy as np
import jax
import jax.numpy as jnp
from jax.experimental import pallas as pl
from jax.experimental.pallas import tpu as pltpu

HID = 32            # subnet output width (= model dim of the transformer)
NHEAD = 4           # Transformer(hidden_dim=8, multi_head=4)
HEAD_DIM = 8
NMOD = 3            # (l, a, v)
EPS = 1e-5

QOFF = 0                      # column offsets inside the fused [32, 96] QKV weight
KOFF = NHEAD * HEAD_DIM       # 32
VOFF = 2 * NHEAD * HEAD_DIM   # 64


# ------------------------------ fused kernel ------------------------------- #

def fused_kernel(l_ref, a_ref, v_ref,
                 lw1_ref, lb1_ref, lw2_ref, lb2_ref,
                 awih_ref, awhh_ref, ab_ref, awout_ref, about_ref,
                 vwih_ref, vwhh_ref, vb_ref, vwout_ref, vbout_ref,
                 ln1w_ref, ln1b_ref,
                 wqkv_ref, bqkv_ref,
                 wz_ref, bz_ref,
                 ln2w_ref, ln2b_ref,
                 wff_ref, bff_ref,
                 pw1_ref, pb1_ref, pw2_ref, pb2_ref,
                 o_ref):
    B = l_ref.shape[0]
    H = HID
    f32 = jnp.float32

    # -------- LSubnet: relu(relu(l @ W1 + b1) @ W2 + b2)  (dropout = identity)
    hl = jnp.maximum(
        jnp.dot(l_ref[...], lw1_ref[...], preferred_element_type=f32) + lb1_ref[...], 0.0)
    l_out = jnp.maximum(
        jnp.dot(hl, lw2_ref[...], preferred_element_type=f32) + lb2_ref[...], 0.0)

    # -------- LSTMSubNet: hoisted input projection + fully unrolled recurrence
    def lstm_branch(x_ref, wih_ref, whh_ref, b_ref, wout_ref, bout_ref):
        TB = x_ref.shape[0]            # x_ref is time-flattened: [T*B, in]
        T = TB // B
        # One MXU matmul for all timesteps (input projection + fused bias).
        xg = jnp.dot(x_ref[...], wih_ref[...], preferred_element_type=f32) + b_ref[...]
        whh = whh_ref[...]
        h = jnp.zeros((B, H), f32)
        c = jnp.zeros((B, H), f32)
        for t in range(T):             # static T=8 -> fully unrolled for the scheduler
            g = xg[t * B:(t + 1) * B, :] + jnp.dot(h, whh, preferred_element_type=f32)
            i_g = jax.nn.sigmoid(g[:, 0:H])
            f_g = jax.nn.sigmoid(g[:, H:2 * H])
            g_g = jnp.tanh(g[:, 2 * H:3 * H])
            o_g = jax.nn.sigmoid(g[:, 3 * H:4 * H])
            c = f_g * c + i_g * g_g
            h = o_g * jnp.tanh(c)
        out = jnp.dot(h, wout_ref[...], preferred_element_type=f32) + bout_ref[...]
        return jnp.maximum(out, 0.0)

    a_out = lstm_branch(a_ref, awih_ref, awhh_ref, ab_ref, awout_ref, about_ref)
    v_out = lstm_branch(v_ref, vwih_ref, vwhh_ref, vb_ref, vwout_ref, vbout_ref)

    xs = [l_out, a_out, v_out]         # per-modality [B, 32]

    # -------- nn.LayerNorm([3, 32]): joint stats over all 3*32 features per row
    def joint_ln(ms, w, b):
        inv_n = 1.0 / float(NMOD * HID)
        s = sum([jnp.sum(m, axis=-1, keepdims=True) for m in ms])           # [B,1]
        mean = s * inv_n
        d = [m - mean for m in ms]
        ss = sum([jnp.sum(x * x, axis=-1, keepdims=True) for x in d])       # [B,1]
        inv_std = jax.lax.rsqrt(ss * inv_n + EPS)
        return [d[m] * inv_std * w[m:m + 1, :] + b[m:m + 1, :] for m in range(NMOD)]

    zs = joint_ln(xs, ln1w_ref[...], ln1b_ref[...])

    # -------- MHattention: fused Q|K|V projection (one [32,96] matmul / modality)
    wqkv = wqkv_ref[...]
    bqkv = bqkv_ref[...]
    qkv = [jnp.dot(z, wqkv, preferred_element_type=f32) + bqkv for z in zs]  # [B,96]

    inv_sqrt_d = 1.0 / math.sqrt(HEAD_DIM)
    head_out = [[], [], []]            # per query modality, list of per-head [B,8]
    for hh in range(NHEAD):
        qo = QOFF + hh * HEAD_DIM
        ko = KOFF + hh * HEAD_DIM
        vo = VOFF + hh * HEAD_DIM
        qs = [qkv[m][:, qo:qo + HEAD_DIM] for m in range(NMOD)]
        ks = [qkv[m][:, ko:ko + HEAD_DIM] for m in range(NMOD)]
        vs = [qkv[m][:, vo:vo + HEAD_DIM] for m in range(NMOD)]
        for mq in range(NMOD):
            # 3x3 scores per batch row via lane-reduce dot products.
            sc = jnp.concatenate(
                [jnp.sum(qs[mq] * ks[mk], axis=-1, keepdims=True) for mk in range(NMOD)],
                axis=-1)                                                     # [B,3]
            sc = sc - jnp.max(sc, axis=-1, keepdims=True)
            e = jnp.exp(sc)
            attn = e * pl.reciprocal(jnp.sum(e, axis=-1, keepdims=True), approx=True)
            # NOTE: the PyTorch reference divides by sqrt(hidden_dim) AFTER softmax.
            attn = attn * inv_sqrt_d
            z = attn[:, 0:1] * vs[0] + attn[:, 1:2] * vs[1] + attn[:, 2:3] * vs[2]
            head_out[mq].append(z)                                           # [B,8]

    wz = wz_ref[...]
    bz = bz_ref[...]
    zmh = [jnp.dot(jnp.concatenate(head_out[m], axis=-1), wz,
                   preferred_element_type=f32) + bz for m in range(NMOD)]    # makeZ
    zres = [zmh[m] + xs[m] for m in range(NMOD)]                             # residual 1

    z2 = joint_ln(zres, ln2w_ref[...], ln2b_ref[...])
    wff = wff_ref[...]
    bff = bff_ref[...]
    out = [jnp.dot(z2[m], wff, preferred_element_type=f32) + bff + zres[m]
           for m in range(NMOD)]                                             # FF + residual 2

    # -------- flatten [B,3,32] row-major -> [B,96] (lane concat), then PF
    flat = jnp.concatenate(out, axis=-1)                                     # [B,96]
    h1 = jnp.maximum(
        jnp.dot(flat, pw1_ref[...], preferred_element_type=f32) + pb1_ref[...], 0.0)
    logits = jnp.dot(h1, pw2_ref[...], preferred_element_type=f32) + pb2_ref[...]
    logits = logits - jnp.max(logits, axis=-1, keepdims=True)
    e = jnp.exp(logits)
    o_ref[...] = e * pl.reciprocal(jnp.sum(e, axis=-1, keepdims=True), approx=True)


# ------------------------------- wrapper ------------------------------------ #

@jax.jit
def run_pallas(params, l, a, v):
    B = l.shape[0]
    T = a.shape[0]
    # Time-major [T,B,in] -> [T*B,in]: free metadata reshape done in XLA, keeps the
    # kernel purely 2D (row t*B+b == timestep t, batch b).
    a2 = a.reshape(T * B, a.shape[-1])
    v2 = v.reshape(T * B, v.shape[-1])

    args = (l, a2, v2,
            params['l_w1'], params['l_b1'], params['l_w2'], params['l_b2'],
            params['a']['wih'], params['a']['whh'], params['a']['b'],
            params['a']['wout'], params['a']['bout'],
            params['v']['wih'], params['v']['whh'], params['v']['b'],
            params['v']['wout'], params['v']['bout'],
            params['ln1_w'], params['ln1_b'],
            params['wqkv'], params['bqkv'],
            params['wz'], params['bz'],
            params['ln2_w'], params['ln2_b'],
            params['wff'], params['bff'],
            params['pf_w1'], params['pf_b1'], params['pf_w2'], params['pf_b2'])

    return pl.pallas_call(
        fused_kernel,
        out_shape=jax.ShapeDtypeStruct((B, 2), jnp.float32),
        in_specs=[pl.BlockSpec(memory_space=pltpu.MemorySpace.VMEM) for _ in args],
        out_specs=pl.BlockSpec(memory_space=pltpu.MemorySpace.VMEM),
    )(*args)


# ------------------------------- params ------------------------------------- #

def init_params(key):
    ks = iter(jax.random.split(key, 32))

    def lin(in_d, out_d):
        s = 1.0 / math.sqrt(in_d)
        w = jax.random.uniform(next(ks), (in_d, out_d), jnp.float32, -s, s)
        b = jax.random.uniform(next(ks), (1, out_d), jnp.float32, -s, s)
        return w, b

    p = {}
    # Subnet(768): Linear(768,128), Linear(128,32)
    p['l_w1'], p['l_b1'] = lin(768, 128)
    p['l_w2'], p['l_b2'] = lin(128, 32)

    def lstm(in_d, hid):
        s = 1.0 / math.sqrt(hid)
        wih = jax.random.uniform(next(ks), (in_d, 4 * hid), jnp.float32, -s, s)
        whh = jax.random.uniform(next(ks), (hid, 4 * hid), jnp.float32, -s, s)
        b_ih = jax.random.uniform(next(ks), (1, 4 * hid), jnp.float32, -s, s)
        b_hh = jax.random.uniform(next(ks), (1, 4 * hid), jnp.float32, -s, s)
        wout, bout = lin(hid, 32)
        return {'wih': wih, 'whh': whh, 'b': b_ih + b_hh, 'wout': wout, 'bout': bout}

    p['a'] = lstm(74, 32)   # ASubnet: LSTMSubNet(74, 32, 32)
    p['v'] = lstm(47, 32)   # VSubnet: LSTMSubNet(47, 32, 32)

    # Transformer(8, 4)
    p['ln1_w'] = jnp.ones((NMOD, HID), jnp.float32)
    p['ln1_b'] = jnp.zeros((NMOD, HID), jnp.float32)
    p['ln2_w'] = jnp.ones((NMOD, HID), jnp.float32)
    p['ln2_b'] = jnp.zeros((NMOD, HID), jnp.float32)

    # Fused Q|K|V weight: columns [0:32]=Q heads, [32:64]=K heads, [64:96]=V heads,
    # each head is an 8-wide column block (equivalent to 12 independent Linear(32,8)).
    s32 = 1.0 / math.sqrt(32)
    p['wqkv'] = jax.random.uniform(next(ks), (HID, 3 * NHEAD * HEAD_DIM),
                                   jnp.float32, -s32, s32)
    p['bqkv'] = jax.random.uniform(next(ks), (1, 3 * NHEAD * HEAD_DIM),
                                   jnp.float32, -s32, s32)
    p['wz'], p['bz'] = lin(NHEAD * HEAD_DIM, 32)      # makeZ: Linear(32, 32)
    p['wff'], p['bff'] = lin(32, 32)                  # FF

    # PF(96): Linear(96,32), Linear(32,2)
    p['pf_w1'], p['pf_b1'] = lin(HID * NMOD, 32)
    p['pf_w2'], p['pf_b2'] = lin(32, 2)
    return p


# --------------------------- pure-JAX reference ------------------------------ #

def ref_forward(params, l, a, v):
    def mlp(x, w1, b1, w2, b2):
        return jax.nn.relu(jax.nn.relu(x @ w1 + b1) @ w2 + b2)

    def lstm(x, p):
        T, B, _ = x.shape
        H = HID
        h = jnp.zeros((B, H)); c = jnp.zeros((B, H))
        for t in range(T):
            g = x[t] @ p['wih'] + h @ p['whh'] + p['b']
            i = jax.nn.sigmoid(g[:, :H]); f = jax.nn.sigmoid(g[:, H:2 * H])
            gg = jnp.tanh(g[:, 2 * H:3 * H]); o = jax.nn.sigmoid(g[:, 3 * H:])
            c = f * c + i * gg
            h = o * jnp.tanh(c)
        return jax.nn.relu(h @ p['wout'] + p['bout'])

    def ln(x, w, b):
        m = x.mean(axis=(1, 2), keepdims=True)
        var = ((x - m) ** 2).mean(axis=(1, 2), keepdims=True)
        return (x - m) / jnp.sqrt(var + EPS) * w[None] + b[None]

    lo = mlp(l, params['l_w1'], params['l_b1'], params['l_w2'], params['l_b2'])
    ao = lstm(a, params['a'])
    vo = lstm(v, params['v'])
    x = jnp.stack([lo, ao, vo], axis=1)                     # [B,3,32]

    z = ln(x, params['ln1_w'], params['ln1_b'])
    wqkv, bqkv = params['wqkv'], params['bqkv']
    hs = []
    for h in range(NHEAD):
        qw = wqkv[:, QOFF + h * HEAD_DIM: QOFF + (h + 1) * HEAD_DIM]
        kw = wqkv[:, KOFF + h * HEAD_DIM: KOFF + (h + 1) * HEAD_DIM]
        vw = wqkv[:, VOFF + h * HEAD_DIM: VOFF + (h + 1) * HEAD_DIM]
        qb = bqkv[:, QOFF + h * HEAD_DIM: QOFF + (h + 1) * HEAD_DIM]
        kb = bqkv[:, KOFF + h * HEAD_DIM: KOFF + (h + 1) * HEAD_DIM]
        vb = bqkv[:, VOFF + h * HEAD_DIM: VOFF + (h + 1) * HEAD_DIM]
        q = z @ qw + qb
        k = z @ kw + kb
        vv = z @ vw + vb
        sc = jnp.einsum('bqd,bkd->bqk', q, k)
        sc = jax.nn.softmax(sc, axis=-1) / math.sqrt(HEAD_DIM)
        hs.append(jnp.einsum('bqk,bkd->bqd', sc, vv))
    zc = jnp.concatenate(hs, axis=-1)
    zmh = zc @ params['wz'] + params['bz']
    zres = zmh + x
    z2 = ln(zres, params['ln2_w'], params['ln2_b'])
    ff = z2 @ params['wff'] + params['bff']
    out3 = ff + zres
    flat = out3.reshape(out3.shape[0], -1)
    h1 = jax.nn.relu(flat @ params['pf_w1'] + params['pf_b1'])
    logits = h1 @ params['pf_w2'] + params['pf_b2']
    return jax.nn.softmax(logits, axis=-1)


# --------------------------------- main -------------------------------------- #

if __name__ == "__main__":
    key = jax.random.PRNGKey(0)
    k1, k2, k3, kp = jax.random.split(key, 4)
    B, T = 2, 8
    l = jax.random.normal(k1, (B, 768), jnp.float32)
    a = jax.random.normal(k2, (T, B, 74), jnp.float32)
    v = jax.random.normal(k3, (T, B, 47), jnp.float32)

    params = init_params(kp)

    out = jax.block_until_ready(run_pallas(params, l, a, v))

    ref = ref_forward(params, l, a, v)
    # tolerance 2e-3: approx reciprocal (EUP) is used for the softmax denominators
    np.testing.assert_allclose(np.asarray(out), np.asarray(ref), rtol=2e-3, atol=2e-3)

    print("KERNEL_OK")
</pallas_src>

<mosaic_0001>
module attributes {stable_mosaic.version = 11 : i64} {
  func.func @fused_kernel(%arg0: memref<2x768xf32, #tpu.memory_space<vmem>>, %arg1: memref<16x74xf32, #tpu.memory_space<vmem>>, %arg2: memref<16x47xf32, #tpu.memory_space<vmem>>, %arg3: memref<768x128xf32, #tpu.memory_space<vmem>>, %arg4: memref<1x128xf32, #tpu.memory_space<vmem>>, %arg5: memref<128x32xf32, #tpu.memory_space<vmem>>, %arg6: memref<1x32xf32, #tpu.memory_space<vmem>>, %arg7: memref<74x128xf32, #tpu.memory_space<vmem>>, %arg8: memref<32x128xf32, #tpu.memory_space<vmem>>, %arg9: memref<1x128xf32, #tpu.memory_space<vmem>>, %arg10: memref<32x32xf32, #tpu.memory_space<vmem>>, %arg11: memref<1x32xf32, #tpu.memory_space<vmem>>, %arg12: memref<47x128xf32, #tpu.memory_space<vmem>>, %arg13: memref<32x128xf32, #tpu.memory_space<vmem>>, %arg14: memref<1x128xf32, #tpu.memory_space<vmem>>, %arg15: memref<32x32xf32, #tpu.memory_space<vmem>>, %arg16: memref<1x32xf32, #tpu.memory_space<vmem>>, %arg17: memref<3x32xf32, #tpu.memory_space<vmem>>, %arg18: memref<3x32xf32, #tpu.memory_space<vmem>>, %arg19: memref<32x96xf32, #tpu.memory_space<vmem>>, %arg20: memref<1x96xf32, #tpu.memory_space<vmem>>, %arg21: memref<32x32xf32, #tpu.memory_space<vmem>>, %arg22: memref<1x32xf32, #tpu.memory_space<vmem>>, %arg23: memref<3x32xf32, #tpu.memory_space<vmem>>, %arg24: memref<3x32xf32, #tpu.memory_space<vmem>>, %arg25: memref<32x32xf32, #tpu.memory_space<vmem>>, %arg26: memref<1x32xf32, #tpu.memory_space<vmem>>, %arg27: memref<96x32xf32, #tpu.memory_space<vmem>>, %arg28: memref<1x32xf32, #tpu.memory_space<vmem>>, %arg29: memref<32x2xf32, #tpu.memory_space<vmem>>, %arg30: memref<1x2xf32, #tpu.memory_space<vmem>>, %arg31: memref<2x2xf32, #tpu.memory_space<vmem>>) attributes {dimension_semantics = [], scalar_prefetch = 0 : i64, scratch_operands = 0 : i64, tpu.core_type = #tpu.core_type<tc>} {
    %c0 = arith.constant 0 : index
    %c0_0 = arith.constant 0 : index
    %0 = vector.load %arg0[%c0, %c0_0] : memref<2x768xf32, #tpu.memory_space<vmem>>, vector<2x768xf32>
    %c0_1 = arith.constant 0 : index
    %c0_2 = arith.constant 0 : index
    %1 = vector.load %arg3[%c0_1, %c0_2] : memref<768x128xf32, #tpu.memory_space<vmem>>, vector<768x128xf32>
    %cst = arith.constant dense<0.000000e+00> : vector<2x128xf32>
    %2 = tpu.matmul %0, %1, %cst {dimension_numbers = #tpu.dot_dimension_numbers<[1], [0], [0], [1], [0, 0, 1, 1], [], []>} : vector<2x768xf32>, vector<768x128xf32>, vector<2x128xf32> -> vector<2x128xf32>
    %c0_3 = arith.constant 0 : index
    %c0_4 = arith.constant 0 : index
    %3 = vector.load %arg4[%c0_3, %c0_4] : memref<1x128xf32, #tpu.memory_space<vmem>>, vector<1x128xf32>
    %4 = vector.broadcast %3 : vector<1x128xf32> to vector<2x128xf32>
    %5 = arith.addf %2, %4 : vector<2x128xf32>
    %cst_5 = arith.constant 0.000000e+00 : f32
    %6 = vector.broadcast %cst_5 : f32 to vector<2x128xf32>
    %7 = arith.maximumf %5, %6 : vector<2x128xf32>
    %c0_6 = arith.constant 0 : index
    %c0_7 = arith.constant 0 : index
    %8 = vector.load %arg5[%c0_6, %c0_7] : memref<128x32xf32, #tpu.memory_space<vmem>>, vector<128x32xf32>
    %cst_8 = arith.constant dense<0.000000e+00> : vector<2x32xf32>
    %9 = tpu.matmul %7, %8, %cst_8 {dimension_numbers = #tpu.dot_dimension_numbers<[1], [0], [0], [1], [0, 0, 1, 1], [], []>} : vector<2x128xf32>, vector<128x32xf32>, vector<2x32xf32> -> vector<2x32xf32>
    %c0_9 = arith.constant 0 : index
    %c0_10 = arith.constant 0 : index
    %10 = vector.load %arg6[%c0_9, %c0_10] : memref<1x32xf32, #tpu.memory_space<vmem>>, vector<1x32xf32>
    %11 = vector.broadcast %10 : vector<1x32xf32> to vector<2x32xf32>
    %12 = arith.addf %9, %11 : vector<2x32xf32>
    %cst_11 = arith.constant 0.000000e+00 : f32
    %13 = vector.broadcast %cst_11 : f32 to vector<2x32xf32>
    %14 = arith.maximumf %12, %13 : vector<2x32xf32>
    %c0_12 = arith.constant 0 : index
    %c0_13 = arith.constant 0 : index
    %15 = vector.load %arg1[%c0_12, %c0_13] : memref<16x74xf32, #tpu.memory_space<vmem>>, vector<16x74xf32>
    %c0_14 = arith.constant 0 : index
    %c0_15 = arith.constant 0 : index
    %16 = vector.load %arg7[%c0_14, %c0_15] : memref<74x128xf32, #tpu.memory_space<vmem>>, vector<74x128xf32>
    %cst_16 = arith.constant dense<0.000000e+00> : vector<16x128xf32>
    %17 = tpu.matmul %15, %16, %cst_16 {dimension_numbers = #tpu.dot_dimension_numbers<[1], [0], [0], [1], [0, 0, 1, 1], [], []>} : vector<16x74xf32>, vector<74x128xf32>, vector<16x128xf32> -> vector<16x128xf32>
    %c0_17 = arith.constant 0 : index
    %c0_18 = arith.constant 0 : index
    %18 = vector.load %arg9[%c0_17, %c0_18] : memref<1x128xf32, #tpu.memory_space<vmem>>, vector<1x128xf32>
    %19 = vector.broadcast %18 : vector<1x128xf32> to vector<16x128xf32>
    %20 = arith.addf %17, %19 : vector<16x128xf32>
    %c0_19 = arith.constant 0 : index
    %c0_20 = arith.constant 0 : index
    %21 = vector.load %arg8[%c0_19, %c0_20] : memref<32x128xf32, #tpu.memory_space<vmem>>, vector<32x128xf32>
    %cst_21 = arith.constant 0.000000e+00 : f32
    %22 = vector.broadcast %cst_21 : f32 to vector<2x32xf32>
    %cst_22 = arith.constant 0.000000e+00 : f32
    %23 = vector.broadcast %cst_22 : f32 to vector<2x32xf32>
    %24 = vector.extract_strided_slice %20 {offsets = [0, 0], sizes = [2, 128], strides = [1, 1]} : vector<16x128xf32> to vector<2x128xf32>
    %cst_23 = arith.constant dense<0.000000e+00> : vector<2x128xf32>
    %25 = tpu.matmul %22, %21, %cst_23 {dimension_numbers = #tpu.dot_dimension_numbers<[1], [0], [0], [1], [0, 0, 1, 1], [], []>} : vector<2x32xf32>, vector<32x128xf32>, vector<2x128xf32> -> vector<2x128xf32>
    %26 = arith.addf %24, %25 : vector<2x128xf32>
    %27 = vector.extract_strided_slice %26 {offsets = [0, 0], sizes = [2, 32], strides = [1, 1]} : vector<2x128xf32> to vector<2x32xf32>
    %28 = arith.negf %27 : vector<2x32xf32>
    %29 = math.exp %28 : vector<2x32xf32>
    %cst_24 = arith.constant 1.000000e+00 : f32
    %30 = vector.broadcast %cst_24 : f32 to vector<2x32xf32>
    %31 = arith.addf %30, %29 : vector<2x32xf32>
    %32 = arith.divf %30, %31 : vector<2x32xf32>
    %33 = vector.extract_strided_slice %26 {offsets = [0, 32], sizes = [2, 32], strides = [1, 1]} : vector<2x128xf32> to vector<2x32xf32>
    %34 = arith.negf %33 : vector<2x32xf32>
    %35 = math.exp %34 : vector<2x32xf32>
    %cst_25 = arith.constant 1.000000e+00 : f32
    %36 = vector.broadcast %cst_25 : f32 to vector<2x32xf32>
    %37 = arith.addf %36, %35 : vector<2x32xf32>
    %38 = arith.divf %36, %37 : vector<2x32xf32>
    %39 = vector.extract_strided_slice %26 {offsets = [0, 64], sizes = [2, 32], strides = [1, 1]} : vector<2x128xf32> to vector<2x32xf32>
    %40 = math.tanh %39 : vector<2x32xf32>
    %41 = vector.extract_strided_slice %26 {offsets = [0, 96], sizes = [2, 32], strides = [1, 1]} : vector<2x128xf32> to vector<2x32xf32>
    %42 = arith.negf %41 : vector<2x32xf32>
    %43 = math.exp %42 : vector<2x32xf32>
    %cst_26 = arith.constant 1.000000e+00 : f32
    %44 = vector.broadcast %cst_26 : f32 to vector<2x32xf32>
    %45 = arith.addf %44, %43 : vector<2x32xf32>
    %46 = arith.divf %44, %45 : vector<2x32xf32>
    %47 = arith.mulf %38, %23 : vector<2x32xf32>
    %48 = arith.mulf %32, %40 : vector<2x32xf32>
    %49 = arith.addf %47, %48 : vector<2x32xf32>
    %50 = math.tanh %49 : vector<2x32xf32>
    %51 = arith.mulf %46, %50 : vector<2x32xf32>
    %52 = vector.extract_strided_slice %20 {offsets = [2, 0], sizes = [2, 128], strides = [1, 1]} : vector<16x128xf32> to vector<2x128xf32>
    %cst_27 = arith.constant dense<0.000000e+00> : vector<2x128xf32>
    %53 = tpu.matmul %51, %21, %cst_27 {dimension_numbers = #tpu.dot_dimension_numbers<[1], [0], [0], [1], [0, 0, 1, 1], [], []>} : vector<2x32xf32>, vector<32x128xf32>, vector<2x128xf32> -> vector<2x128xf32>
    %54 = arith.addf %52, %53 : vector<2x128xf32>
    %55 = vector.extract_strided_slice %54 {offsets = [0, 0], sizes = [2, 32], strides = [1, 1]} : vector<2x128xf32> to vector<2x32xf32>
    %56 = arith.negf %55 : vector<2x32xf32>
    %57 = math.exp %56 : vector<2x32xf32>
    %cst_28 = arith.constant 1.000000e+00 : f32
    %58 = vector.broadcast %cst_28 : f32 to vector<2x32xf32>
    %59 = arith.addf %58, %57 : vector<2x32xf32>
    %60 = arith.divf %58, %59 : vector<2x32xf32>
    %61 = vector.extract_strided_slice %54 {offsets = [0, 32], sizes = [2, 32], strides = [1, 1]} : vector<2x128xf32> to vector<2x32xf32>
    %62 = arith.negf %61 : vector<2x32xf32>
    %63 = math.exp %62 : vector<2x32xf32>
    %cst_29 = arith.constant 1.000000e+00 : f32
    %64 = vector.broadcast %cst_29 : f32 to vector<2x32xf32>
    %65 = arith.addf %64, %63 : vector<2x32xf32>
    %66 = arith.divf %64, %65 : vector<2x32xf32>
    %67 = vector.extract_strided_slice %54 {offsets = [0, 64], sizes = [2, 32], strides = [1, 1]} : vector<2x128xf32> to vector<2x32xf32>
    %68 = math.tanh %67 : vector<2x32xf32>
    %69 = vector.extract_strided_slice %54 {offsets = [0, 96], sizes = [2, 32], strides = [1, 1]} : vector<2x128xf32> to vector<2x32xf32>
    %70 = arith.negf %69 : vector<2x32xf32>
    %71 = math.exp %70 : vector<2x32xf32>
    %cst_30 = arith.constant 1.000000e+00 : f32
    %72 = vector.broadcast %cst_30 : f32 to vector<2x32xf32>
    %73 = arith.addf %72, %71 : vector<2x32xf32>
    %74 = arith.divf %72, %73 : vector<2x32xf32>
    %75 = arith.mulf %66, %49 : vector<2x32xf32>
    %76 = arith.mulf %60, %68 : vector<2x32xf32>
    %77 = arith.addf %75, %76 : vector<2x32xf32>
    %78 = math.tanh %77 : vector<2x32xf32>
    %79 = arith.mulf %74, %78 : vector<2x32xf32>
    %80 = vector.extract_strided_slice %20 {offsets = [4, 0], sizes = [2, 128], strides = [1, 1]} : vector<16x128xf32> to vector<2x128xf32>
    %cst_31 = arith.constant dense<0.000000e+00> : vector<2x128xf32>
    %81 = tpu.matmul %79, %21, %cst_31 {dimension_numbers = #tpu.dot_dimension_numbers<[1], [0], [0], [1], [0, 0, 1, 1], [], []>} : vector<2x32xf32>, vector<32x128xf32>, vector<2x128xf32> -> vector<2x128xf32>
    %82 = arith.addf %80, %81 : vector<2x128xf32>
    %83 = vector.extract_strided_slice %82 {offsets = [0, 0], sizes = [2, 32], strides = [1, 1]} : vector<2x128xf32> to vector<2x32xf32>
    %84 = arith.negf %83 : vector<2x32xf32>
    %85 = math.exp %84 : vector<2x32xf32>
    %cst_32 = arith.constant 1.000000e+00 : f32
    %86 = vector.broadcast %cst_32 : f32 to vector<2x32xf32>
    %87 = arith.addf %86, %85 : vector<2x32xf32>
    %88 = arith.divf %86, %87 : vector<2x32xf32>
    %89 = vector.extract_strided_slice %82 {offsets = [0, 32], sizes = [2, 32], strides = [1, 1]} : vector<2x128xf32> to vector<2x32xf32>
    %90 = arith.negf %89 : vector<2x32xf32>
    %91 = math.exp %90 : vector<2x32xf32>
    %cst_33 = arith.constant 1.000000e+00 : f32
    %92 = vector.broadcast %cst_33 : f32 to vector<2x32xf32>
    %93 = arith.addf %92, %91 : vector<2x32xf32>
    %94 = arith.divf %92, %93 : vector<2x32xf32>
    %95 = vector.extract_strided_slice %82 {offsets = [0, 64], sizes = [2, 32], strides = [1, 1]} : vector<2x128xf32> to vector<2x32xf32>
    %96 = math.tanh %95 : vector<2x32xf32>
    %97 = vector.extract_strided_slice %82 {offsets = [0, 96], sizes = [2, 32], strides = [1, 1]} : vector<2x128xf32> to vector<2x32xf32>
    %98 = arith.negf %97 : vector<2x32xf32>
    %99 = math.exp %98 : vector<2x32xf32>
    %cst_34 = arith.constant 1.000000e+00 : f32
    %100 = vector.broadcast %cst_34 : f32 to vector<2x32xf32>
    %101 = arith.addf %100, %99 : vector<2x32xf32>
    %102 = arith.divf %100, %101 : vector<2x32xf32>
    %103 = arith.mulf %94, %77 : vector<2x32xf32>
    %104 = arith.mulf %88, %96 : vector<2x32xf32>
    %105 = arith.addf %103, %104 : vector<2x32xf32>
    %106 = math.tanh %105 : vector<2x32xf32>
    %107 = arith.mulf %102, %106 : vector<2x32xf32>
    %108 = vector.extract_strided_slice %20 {offsets = [6, 0], sizes = [2, 128], strides = [1, 1]} : vector<16x128xf32> to vector<2x128xf32>
    %cst_35 = arith.constant dense<0.000000e+00> : vector<2x128xf32>
    %109 = tpu.matmul %107, %21, %cst_35 {dimension_numbers = #tpu.dot_dimension_numbers<[1], [0], [0], [1], [0, 0, 1, 1], [], []>} : vector<2x32xf32>, vector<32x128xf32>, vector<2x128xf32> -> vector<2x128xf32>
    %110 = arith.addf %108, %109 : vector<2x128xf32>
    %111 = vector.extract_strided_slice %110 {offsets = [0, 0], sizes = [2, 32], strides = [1, 1]} : vector<2x128xf32> to vector<2x32xf32>
    %112 = arith.negf %111 : vector<2x32xf32>
    %113 = math.exp %112 : vector<2x32xf32>
    %cst_36 = arith.constant 1.000000e+00 : f32
    %114 = vector.broadcast %cst_36 : f32 to vector<2x32xf32>
    %115 = arith.addf %114, %113 : vector<2x32xf32>
    %116 = arith.divf %114, %115 : vector<2x32xf32>
    %117 = vector.extract_strided_slice %110 {offsets = [0, 32], sizes = [2, 32], strides = [1, 1]} : vector<2x128xf32> to vector<2x32xf32>
    %118 = arith.negf %117 : vector<2x32xf32>
    %119 = math.exp %118 : vector<2x32xf32>
    %cst_37 = arith.constant 1.000000e+00 : f32
    %120 = vector.broadcast %cst_37 : f32 to vector<2x32xf32>
    %121 = arith.addf %120, %119 : vector<2x32xf32>
    %122 = arith.divf %120, %121 : vector<2x32xf32>
    %123 = vector.extract_strided_slice %110 {offsets = [0, 64], sizes = [2, 32], strides = [1, 1]} : vector<2x128xf32> to vector<2x32xf32>
    %124 = math.tanh %123 : vector<2x32xf32>
    %125 = vector.extract_strided_slice %110 {offsets = [0, 96], sizes = [2, 32], strides = [1, 1]} : vector<2x128xf32> to vector<2x32xf32>
    %126 = arith.negf %125 : vector<2x32xf32>
    %127 = math.exp %126 : vector<2x32xf32>
    %cst_38 = arith.constant 1.000000e+00 : f32
    %128 = vector.broadcast %cst_38 : f32 to vector<2x32xf32>
    %129 = arith.addf %128, %127 : vector<2x32xf32>
    %130 = arith.divf %128, %129 : vector<2x32xf32>
    %131 = arith.mulf %122, %105 : vector<2x32xf32>
    %132 = arith.mulf %116, %124 : vector<2x32xf32>
    %133 = arith.addf %131, %132 : vector<2x32xf32>
    %134 = math.tanh %133 : vector<2x32xf32>
    %135 = arith.mulf %130, %134 : vector<2x32xf32>
    %136 = vector.extract_strided_slice %20 {offsets = [8, 0], sizes = [2, 128], strides = [1, 1]} : vector<16x128xf32> to vector<2x128xf32>
    %cst_39 = arith.constant dense<0.000000e+00> : vector<2x128xf32>
    %137 = tpu.matmul %135, %21, %cst_39 {dimension_numbers = #tpu.dot_dimension_numbers<[1], [0], [0], [1], [0, 0, 1, 1], [], []>} : vector<2x32xf32>, vector<32x128xf32>, vector<2x128xf32> -> vector<2x128xf32>
    %138 = arith.addf %136, %137 : vector<2x128xf32>
    %139 = vector.extract_strided_slice %138 {offsets = [0, 0], sizes = [2, 32], strides = [1, 1]} : vector<2x128xf32> to vector<2x32xf32>
    %140 = arith.negf %139 : vector<2x32xf32>
    %141 = math.exp %140 : vector<2x32xf32>
    %cst_40 = arith.constant 1.000000e+00 : f32
    %142 = vector.broadcast %cst_40 : f32 to vector<2x32xf32>
    %143 = arith.addf %142, %141 : vector<2x32xf32>
    %144 = arith.divf %142, %143 : vector<2x32xf32>
    %145 = vector.extract_strided_slice %138 {offsets = [0, 32], sizes = [2, 32], strides = [1, 1]} : vector<2x128xf32> to vector<2x32xf32>
    %146 = arith.negf %145 : vector<2x32xf32>
    %147 = math.exp %146 : vector<2x32xf32>
    %cst_41 = arith.constant 1.000000e+00 : f32
    %148 = vector.broadcast %cst_41 : f32 to vector<2x32xf32>
    %149 = arith.addf %148, %147 : vector<2x32xf32>
    %150 = arith.divf %148, %149 : vector<2x32xf32>
    %151 = vector.extract_strided_slice %138 {offsets = [0, 64], sizes = [2, 32], strides = [1, 1]} : vector<2x128xf32> to vector<2x32xf32>
    %152 = math.tanh %151 : vector<2x32xf32>
    %153 = vector.extract_strided_slice %138 {offsets = [0, 96], sizes = [2, 32], strides = [1, 1]} : vector<2x128xf32> to vector<2x32xf32>
    %154 = arith.negf %153 : vector<2x32xf32>
    %155 = math.exp %154 : vector<2x32xf32>
    %cst_42 = arith.constant 1.000000e+00 : f32
    %156 = vector.broadcast %cst_42 : f32 to vector<2x32xf32>
    %157 = arith.addf %156, %155 : vector<2x32xf32>
    %158 = arith.divf %156, %157 : vector<2x32xf32>
    %159 = arith.mulf %150, %133 : vector<2x32xf32>
    %160 = arith.mulf %144, %152 : vector<2x32xf32>
    %161 = arith.addf %159, %160 : vector<2x32xf32>
    %162 = math.tanh %161 : vector<2x32xf32>
    %163 = arith.mulf %158, %162 : vector<2x32xf32>
    %164 = vector.extract_strided_slice %20 {offsets = [10, 0], sizes = [2, 128], strides = [1, 1]} : vector<16x128xf32> to vector<2x128xf32>
    %cst_43 = arith.constant dense<0.000000e+00> : vector<2x128xf32>
    %165 = tpu.matmul %163, %21, %cst_43 {dimension_numbers = #tpu.dot_dimension_numbers<[1], [0], [0], [1], [0, 0, 1, 1], [], []>} : vector<2x32xf32>, vector<32x128xf32>, vector<2x128xf32> -> vector<2x128xf32>
    %166 = arith.addf %164, %165 : vector<2x128xf32>
    %167 = vector.extract_strided_slice %166 {offsets = [0, 0], sizes = [2, 32], strides = [1, 1]} : vector<2x128xf32> to vector<2x32xf32>
    %168 = arith.negf %167 : vector<2x32xf32>
    %169 = math.exp %168 : vector<2x32xf32>
    %cst_44 = arith.constant 1.000000e+00 : f32
    %170 = vector.broadcast %cst_44 : f32 to vector<2x32xf32>
    %171 = arith.addf %170, %169 : vector<2x32xf32>
    %172 = arith.divf %170, %171 : vector<2x32xf32>
    %173 = vector.extract_strided_slice %166 {offsets = [0, 32], sizes = [2, 32], strides = [1, 1]} : vector<2x128xf32> to vector<2x32xf32>
    %174 = arith.negf %173 : vector<2x32xf32>
    %175 = math.exp %174 : vector<2x32xf32>
    %cst_45 = arith.constant 1.000000e+00 : f32
    %176 = vector.broadcast %cst_45 : f32 to vector<2x32xf32>
    %177 = arith.addf %176, %175 : vector<2x32xf32>
    %178 = arith.divf %176, %177 : vector<2x32xf32>
    %179 = vector.extract_strided_slice %166 {offsets = [0, 64], sizes = [2, 32], strides = [1, 1]} : vector<2x128xf32> to vector<2x32xf32>
    %180 = math.tanh %179 : vector<2x32xf32>
    %181 = vector.extract_strided_slice %166 {offsets = [0, 96], sizes = [2, 32], strides = [1, 1]} : vector<2x128xf32> to vector<2x32xf32>
    %182 = arith.negf %181 : vector<2x32xf32>
    %183 = math.exp %182 : vector<2x32xf32>
    %cst_46 = arith.constant 1.000000e+00 : f32
    %184 = vector.broadcast %cst_46 : f32 to vector<2x32xf32>
    %185 = arith.addf %184, %183 : vector<2x32xf32>
    %186 = arith.divf %184, %185 : vector<2x32xf32>
    %187 = arith.mulf %178, %161 : vector<2x32xf32>
    %188 = arith.mulf %172, %180 : vector<2x32xf32>
    %189 = arith.addf %187, %188 : vector<2x32xf32>
    %190 = math.tanh %189 : vector<2x32xf32>
    %191 = arith.mulf %186, %190 : vector<2x32xf32>
    %192 = vector.extract_strided_slice %20 {offsets = [12, 0], sizes = [2, 128], strides = [1, 1]} : vector<16x128xf32> to vector<2x128xf32>
    %cst_47 = arith.constant dense<0.000000e+00> : vector<2x128xf32>
    %193 = tpu.matmul %191, %21, %cst_47 {dimension_numbers = #tpu.dot_dimension_numbers<[1], [0], [0], [1], [0, 0, 1, 1], [], []>} : vector<2x32xf32>, vector<32x128xf32>, vector<2x128xf32> -> vector<2x128xf32>
    %194 = arith.addf %192, %193 : vector<2x128xf32>
    %195 = vector.extract_strided_slice %194 {offsets = [0, 0], sizes = [2, 32], strides = [1, 1]} : vector<2x128xf32> to vector<2x32xf32>
    %196 = arith.negf %195 : vector<2x32xf32>
    %197 = math.exp %196 : vector<2x32xf32>
    %cst_48 = arith.constant 1.000000e+00 : f32
    %198 = vector.broadcast %cst_48 : f32 to vector<2x32xf32>
    %199 = arith.addf %198, %197 : vector<2x32xf32>
    %200 = arith.divf %198, %199 : vector<2x32xf32>
    %201 = vector.extract_strided_slice %194 {offsets = [0, 32], sizes = [2, 32], strides = [1, 1]} : vector<2x128xf32> to vector<2x32xf32>
    %202 = arith.negf %201 : vector<2x32xf32>
    %203 = math.exp %202 : vector<2x32xf32>
    %cst_49 = arith.constant 1.000000e+00 : f32
    %204 = vector.broadcast %cst_49 : f32 to vector<2x32xf32>
    %205 = arith.addf %204, %203 : vector<2x32xf32>
    %206 = arith.divf %204, %205 : vector<2x32xf32>
    %207 = vector.extract_strided_slice %194 {offsets = [0, 64], sizes = [2, 32], strides = [1, 1]} : vector<2x128xf32> to vector<2x32xf32>
    %208 = math.tanh %207 : vector<2x32xf32>
    %209 = vector.extract_strided_slice %194 {offsets = [0, 96], sizes = [2, 32], strides = [1, 1]} : vector<2x128xf32> to vector<2x32xf32>
    %210 = arith.negf %209 : vector<2x32xf32>
    %211 = math.exp %210 : vector<2x32xf32>
    %cst_50 = arith.constant 1.000000e+00 : f32
    %212 = vector.broadcast %cst_50 : f32 to vector<2x32xf32>
    %213 = arith.addf %212, %211 : vector<2x32xf32>
    %214 = arith.divf %212, %213 : vector<2x32xf32>
    %215 = arith.mulf %206, %189 : vector<2x32xf32>
    %216 = arith.mulf %200, %208 : vector<2x32xf32>
    %217 = arith.addf %215, %216 : vector<2x32xf32>
    %218 = math.tanh %217 : vector<2x32xf32>
    %219 = arith.mulf %214, %218 : vector<2x32xf32>
    %220 = vector.extract_strided_slice %20 {offsets = [14, 0], sizes = [2, 128], strides = [1, 1]} : vector<16x128xf32> to vector<2x128xf32>
    %cst_51 = arith.constant dense<0.000000e+00> : vector<2x128xf32>
    %221 = tpu.matmul %219, %21, %cst_51 {dimension_numbers = #tpu.dot_dimension_numbers<[1], [0], [0], [1], [0, 0, 1, 1], [], []>} : vector<2x32xf32>, vector<32x128xf32>, vector<2x128xf32> -> vector<2x128xf32>
    %222 = arith.addf %220, %221 : vector<2x128xf32>
    %223 = vector.extract_strided_slice %222 {offsets = [0, 0], sizes = [2, 32], strides = [1, 1]} : vector<2x128xf32> to vector<2x32xf32>
    %224 = arith.negf %223 : vector<2x32xf32>
    %225 = math.exp %224 : vector<2x32xf32>
    %cst_52 = arith.constant 1.000000e+00 : f32
    %226 = vector.broadcast %cst_52 : f32 to vector<2x32xf32>
    %227 = arith.addf %226, %225 : vector<2x32xf32>
    %228 = arith.divf %226, %227 : vector<2x32xf32>
    %229 = vector.extract_strided_slice %222 {offsets = [0, 32], sizes = [2, 32], strides = [1, 1]} : vector<2x128xf32> to vector<2x32xf32>
    %230 = arith.negf %229 : vector<2x32xf32>
    %231 = math.exp %230 : vector<2x32xf32>
    %cst_53 = arith.constant 1.000000e+00 : f32
    %232 = vector.broadcast %cst_53 : f32 to vector<2x32xf32>
    %233 = arith.addf %232, %231 : vector<2x32xf32>
    %234 = arith.divf %232, %233 : vector<2x32xf32>
    %235 = vector.extract_strided_slice %222 {offsets = [0, 64], sizes = [2, 32], strides = [1, 1]} : vector<2x128xf32> to vector<2x32xf32>
    %236 = math.tanh %235 : vector<2x32xf32>
    %237 = vector.extract_strided_slice %222 {offsets = [0, 96], sizes = [2, 32], strides = [1, 1]} : vector<2x128xf32> to vector<2x32xf32>
    %238 = arith.negf %237 : vector<2x32xf32>
    %239 = math.exp %238 : vector<2x32xf32>
    %cst_54 = arith.constant 1.000000e+00 : f32
    %240 = vector.broadcast %cst_54 : f32 to vector<2x32xf32>
    %241 = arith.addf %240, %239 : vector<2x32xf32>
    %242 = arith.divf %240, %241 : vector<2x32xf32>
    %243 = arith.mulf %234, %217 : vector<2x32xf32>
    %244 = arith.mulf %228, %236 : vector<2x32xf32>
    %245 = arith.addf %243, %244 : vector<2x32xf32>
    %246 = math.tanh %245 : vector<2x32xf32>
    %247 = arith.mulf %242, %246 : vector<2x32xf32>
    %c0_55 = arith.constant 0 : index
    %c0_56 = arith.constant 0 : index
    %248 = vector.load %arg10[%c0_55, %c0_56] : memref<32x32xf32, #tpu.memory_space<vmem>>, vector<32x32xf32>
    %cst_57 = arith.constant dense<0.000000e+00> : vector<2x32xf32>
    %249 = tpu.matmul %247, %248, %cst_57 {dimension_numbers = #tpu.dot_dimension_numbers<[1], [0], [0], [1], [0, 0, 1, 1], [], []>} : vector<2x32xf32>, vector<32x32xf32>, vector<2x32xf32> -> vector<2x32xf32>
    %c0_58 = arith.constant 0 : index
    %c0_59 = arith.constant 0 : index
    %250 = vector.load %arg11[%c0_58, %c0_59] : memref<1x32xf32, #tpu.memory_space<vmem>>, vector<1x32xf32>
    %251 = vector.broadcast %250 : vector<1x32xf32> to vector<2x32xf32>
    %252 = arith.addf %249, %251 : vector<2x32xf32>
    %cst_60 = arith.constant 0.000000e+00 : f32
    %253 = vector.broadcast %cst_60 : f32 to vector<2x32xf32>
    %254 = arith.maximumf %252, %253 : vector<2x32xf32>
    %c0_61 = arith.constant 0 : index
    %c0_62 = arith.constant 0 : index
    %255 = vector.load %arg2[%c0_61, %c0_62] : memref<16x47xf32, #tpu.memory_space<vmem>>, vector<16x47xf32>
    %c0_63 = arith.constant 0 : index
    %c0_64 = arith.constant 0 : index
    %256 = vector.load %arg12[%c0_63, %c0_64] : memref<47x128xf32, #tpu.memory_space<vmem>>, vector<47x128xf32>
    %cst_65 = arith.constant dense<0.000000e+00> : vector<16x128xf32>
    %257 = tpu.matmul %255, %256, %cst_65 {dimension_numbers = #tpu.dot_dimension_numbers<[1], [0], [0], [1], [0, 0, 1, 1], [], []>} : vector<16x47xf32>, vector<47x128xf32>, vector<16x128xf32> -> vector<16x128xf32>
    %c0_66 = arith.constant 0 : index
    %c0_67 = arith.constant 0 : index
    %258 = vector.load %arg14[%c0_66, %c0_67] : memref<1x128xf32, #tpu.memory_space<vmem>>, vector<1x128xf32>
    %259 = vector.broadcast %258 : vector<1x128xf32> to vector<16x128xf32>
    %260 = arith.addf %257, %259 : vector<16x128xf32>
    %c0_68 = arith.constant 0 : index
    %c0_69 = arith.constant 0 : index
    %261 = vector.load %arg13[%c0_68, %c0_69] : memref<32x128xf32, #tpu.memory_space<vmem>>, vector<32x128xf32>
    %cst_70 = arith.constant 0.000000e+00 : f32
    %262 = vector.broadcast %cst_70 : f32 to vector<2x32xf32>
    %cst_71 = arith.constant 0.000000e+00 : f32
    %263 = vector.broadcast %cst_71 : f32 to vector<2x32xf32>
    %264 = vector.extract_strided_slice %260 {offsets = [0, 0], sizes = [2, 128], strides = [1, 1]} : vector<16x128xf32> to vector<2x128xf32>
    %cst_72 = arith.constant dense<0.000000e+00> : vector<2x128xf32>
    %265 = tpu.matmul %262, %261, %cst_72 {dimension_numbers = #tpu.dot_dimension_numbers<[1], [0], [0], [1], [0, 0, 1, 1], [], []>} : vector<2x32xf32>, vector<32x128xf32>, vector<2x128xf32> -> vector<2x128xf32>
    %266 = arith.addf %264, %265 : vector<2x128xf32>
    %267 = vector.extract_strided_slice %266 {offsets = [0, 0], sizes = [2, 32], strides = [1, 1]} : vector<2x128xf32> to vector<2x32xf32>
    %268 = arith.negf %267 : vector<2x32xf32>
    %269 = math.exp %268 : vector<2x32xf32>
    %cst_73 = arith.constant 1.000000e+00 : f32
    %270 = vector.broadcast %cst_73 : f32 to vector<2x32xf32>
    %271 = arith.addf %270, %269 : vector<2x32xf32>
    %272 = arith.divf %270, %271 : vector<2x32xf32>
    %273 = vector.extract_strided_slice %266 {offsets = [0, 32], sizes = [2, 32], strides = [1, 1]} : vector<2x128xf32> to vector<2x32xf32>
    %274 = arith.negf %273 : vector<2x32xf32>
    %275 = math.exp %274 : vector<2x32xf32>
    %cst_74 = arith.constant 1.000000e+00 : f32
    %276 = vector.broadcast %cst_74 : f32 to vector<2x32xf32>
    %277 = arith.addf %276, %275 : vector<2x32xf32>
    %278 = arith.divf %276, %277 : vector<2x32xf32>
    %279 = vector.extract_strided_slice %266 {offsets = [0, 64], sizes = [2, 32], strides = [1, 1]} : vector<2x128xf32> to vector<2x32xf32>
    %280 = math.tanh %279 : vector<2x32xf32>
    %281 = vector.extract_strided_slice %266 {offsets = [0, 96], sizes = [2, 32], strides = [1, 1]} : vector<2x128xf32> to vector<2x32xf32>
    %282 = arith.negf %281 : vector<2x32xf32>
    %283 = math.exp %282 : vector<2x32xf32>
    %cst_75 = arith.constant 1.000000e+00 : f32
    %284 = vector.broadcast %cst_75 : f32 to vector<2x32xf32>
    %285 = arith.addf %284, %283 : vector<2x32xf32>
    %286 = arith.divf %284, %285 : vector<2x32xf32>
    %287 = arith.mulf %278, %263 : vector<2x32xf32>
    %288 = arith.mulf %272, %280 : vector<2x32xf32>
    %289 = arith.addf %287, %288 : vector<2x32xf32>
    %290 = math.tanh %289 : vector<2x32xf32>
    %291 = arith.mulf %286, %290 : vector<2x32xf32>
    %292 = vector.extract_strided_slice %260 {offsets = [2, 0], sizes = [2, 128], strides = [1, 1]} : vector<16x128xf32> to vector<2x128xf32>
    %cst_76 = arith.constant dense<0.000000e+00> : vector<2x128xf32>
    %293 = tpu.matmul %291, %261, %cst_76 {dimension_numbers = #tpu.dot_dimension_numbers<[1], [0], [0], [1], [0, 0, 1, 1], [], []>} : vector<2x32xf32>, vector<32x128xf32>, vector<2x128xf32> -> vector<2x128xf32>
    %294 = arith.addf %292, %293 : vector<2x128xf32>
    %295 = vector.extract_strided_slice %294 {offsets = [0, 0], sizes = [2, 32], strides = [1, 1]} : vector<2x128xf32> to vector<2x32xf32>
    %296 = arith.negf %295 : vector<2x32xf32>
    %297 = math.exp %296 : vector<2x32xf32>
    %cst_77 = arith.constant 1.000000e+00 : f32
    %298 = vector.broadcast %cst_77 : f32 to vector<2x32xf32>
    %299 = arith.addf %298, %297 : vector<2x32xf32>
    %300 = arith.divf %298, %299 : vector<2x32xf32>
    %301 = vector.extract_strided_slice %294 {offsets = [0, 32], sizes = [2, 32], strides = [1, 1]} : vector<2x128xf32> to vector<2x32xf32>
    %302 = arith.negf %301 : vector<2x32xf32>
    %303 = math.exp %302 : vector<2x32xf32>
    %cst_78 = arith.constant 1.000000e+00 : f32
    %304 = vector.broadcast %cst_78 : f32 to vector<2x32xf32>
    %305 = arith.addf %304, %303 : vector<2x32xf32>
    %306 = arith.divf %304, %305 : vector<2x32xf32>
    %307 = vector.extract_strided_slice %294 {offsets = [0, 64], sizes = [2, 32], strides = [1, 1]} : vector<2x128xf32> to vector<2x32xf32>
    %308 = math.tanh %307 : vector<2x32xf32>
    %309 = vector.extract_strided_slice %294 {offsets = [0, 96], sizes = [2, 32], strides = [1, 1]} : vector<2x128xf32> to vector<2x32xf32>
    %310 = arith.negf %309 : vector<2x32xf32>
    %311 = math.exp %310 : vector<2x32xf32>
    %cst_79 = arith.constant 1.000000e+00 : f32
    %312 = vector.broadcast %cst_79 : f32 to vector<2x32xf32>
    %313 = arith.addf %312, %311 : vector<2x32xf32>
    %314 = arith.divf %312, %313 : vector<2x32xf32>
    %315 = arith.mulf %306, %289 : vector<2x32xf32>
    %316 = arith.mulf %300, %308 : vector<2x32xf32>
    %317 = arith.addf %315, %316 : vector<2x32xf32>
    %318 = math.tanh %317 : vector<2x32xf32>
    %319 = arith.mulf %314, %318 : vector<2x32xf32>
    %320 = vector.extract_strided_slice %260 {offsets = [4, 0], sizes = [2, 128], strides = [1, 1]} : vector<16x128xf32> to vector<2x128xf32>
    %cst_80 = arith.constant dense<0.000000e+00> : vector<2x128xf32>
    %321 = tpu.matmul %319, %261, %cst_80 {dimension_numbers = #tpu.dot_dimension_numbers<[1], [0], [0], [1], [0, 0, 1, 1], [], []>} : vector<2x32xf32>, vector<32x128xf32>, vector<2x128xf32> -> vector<2x128xf32>
    %322 = arith.addf %320, %321 : vector<2x128xf32>
    %323 = vector.extract_strided_slice %322 {offsets = [0, 0], sizes = [2, 32], strides = [1, 1]} : vector<2x128xf32> to vector<2x32xf32>
    %324 = arith.negf %323 : vector<2x32xf32>
    %325 = math.exp %324 : vector<2x32xf32>
    %cst_81 = arith.constant 1.000000e+00 : f32
    %326 = vector.broadcast %cst_81 : f32 to vector<2x32xf32>
    %327 = arith.addf %326, %325 : vector<2x32xf32>
    %328 = arith.divf %326, %327 : vector<2x32xf32>
    %329 = vector.extract_strided_slice %322 {offsets = [0, 32], sizes = [2, 32], strides = [1, 1]} : vector<2x128xf32> to vector<2x32xf32>
    %330 = arith.negf %329 : vector<2x32xf32>
    %331 = math.exp %330 : vector<2x32xf32>
    %cst_82 = arith.constant 1.000000e+00 : f32
    %332 = vector.broadcast %cst_82 : f32 to vector<2x32xf32>
    %333 = arith.addf %332, %331 : vector<2x32xf32>
    %334 = arith.divf %332, %333 : vector<2x32xf32>
    %335 = vector.extract_strided_slice %322 {offsets = [0, 64], sizes = [2, 32], strides = [1, 1]} : vector<2x128xf32> to vector<2x32xf32>
    %336 = math.tanh %335 : vector<2x32xf32>
    %337 = vector.extract_strided_slice %322 {offsets = [0, 96], sizes = [2, 32], strides = [1, 1]} : vector<2x128xf32> to vector<2x32xf32>
    %338 = arith.negf %337 : vector<2x32xf32>
    %339 = math.exp %338 : vector<2x32xf32>
    %cst_83 = arith.constant 1.000000e+00 : f32
    %340 = vector.broadcast %cst_83 : f32 to vector<2x32xf32>
    %341 = arith.addf %340, %339 : vector<2x32xf32>
    %342 = arith.divf %340, %341 : vector<2x32xf32>
    %343 = arith.mulf %334, %317 : vector<2x32xf32>
    %344 = arith.mulf %328, %336 : vector<2x32xf32>
    %345 = arith.addf %343, %344 : vector<2x32xf32>
    %346 = math.tanh %345 : vector<2x32xf32>
    %347 = arith.mulf %342, %346 : vector<2x32xf32>
    %348 = vector.extract_strided_slice %260 {offsets = [6, 0], sizes = [2, 128], strides = [1, 1]} : vector<16x128xf32> to vector<2x128xf32>
    %cst_84 = arith.constant dense<0.000000e+00> : vector<2x128xf32>
    %349 = tpu.matmul %347, %261, %cst_84 {dimension_numbers = #tpu.dot_dimension_numbers<[1], [0], [0], [1], [0, 0, 1, 1], [], []>} : vector<2x32xf32>, vector<32x128xf32>, vector<2x128xf32> -> vector<2x128xf32>
    %350 = arith.addf %348, %349 : vector<2x128xf32>
    %351 = vector.extract_strided_slice %350 {offsets = [0, 0], sizes = [2, 32], strides = [1, 1]} : vector<2x128xf32> to vector<2x32xf32>
    %352 = arith.negf %351 : vector<2x32xf32>
    %353 = math.exp %352 : vector<2x32xf32>
    %cst_85 = arith.constant 1.000000e+00 : f32
    %354 = vector.broadcast %cst_85 : f32 to vector<2x32xf32>
    %355 = arith.addf %354, %353 : vector<2x32xf32>
    %356 = arith.divf %354, %355 : vector<2x32xf32>
    %357 = vector.extract_strided_slice %350 {offsets = [0, 32], sizes = [2, 32], strides = [1, 1]} : vector<2x128xf32> to vector<2x32xf32>
    %358 = arith.negf %357 : vector<2x32xf32>
    %359 = math.exp %358 : vector<2x32xf32>
    %cst_86 = arith.constant 1.000000e+00 : f32
    %360 = vector.broadcast %cst_86 : f32 to vector<2x32xf32>
    %361 = arith.addf %360, %359 : vector<2x32xf32>
    %362 = arith.divf %360, %361 : vector<2x32xf32>
    %363 = vector.extract_strided_slice %350 {offsets = [0, 64], sizes = [2, 32], strides = [1, 1]} : vector<2x128xf32> to vector<2x32xf32>
    %364 = math.tanh %363 : vector<2x32xf32>
    %365 = vector.extract_strided_slice %350 {offsets = [0, 96], sizes = [2, 32], strides = [1, 1]} : vector<2x128xf32> to vector<2x32xf32>
    %366 = arith.negf %365 : vector<2x32xf32>
    %367 = math.exp %366 : vector<2x32xf32>
    %cst_87 = arith.constant 1.000000e+00 : f32
    %368 = vector.broadcast %cst_87 : f32 to vector<2x32xf32>
    %369 = arith.addf %368, %367 : vector<2x32xf32>
    %370 = arith.divf %368, %369 : vector<2x32xf32>
    %371 = arith.mulf %362, %345 : vector<2x32xf32>
    %372 = arith.mulf %356, %364 : vector<2x32xf32>
    %373 = arith.addf %371, %372 : vector<2x32xf32>
    %374 = math.tanh %373 : vector<2x32xf32>
    %375 = arith.mulf %370, %374 : vector<2x32xf32>
    %376 = vector.extract_strided_slice %260 {offsets = [8, 0], sizes = [2, 128], strides = [1, 1]} : vector<16x128xf32> to vector<2x128xf32>
    %cst_88 = arith.constant dense<0.000000e+00> : vector<2x128xf32>
    %377 = tpu.matmul %375, %261, %cst_88 {dimension_numbers = #tpu.dot_dimension_numbers<[1], [0], [0], [1], [0, 0, 1, 1], [], []>} : vector<2x32xf32>, vector<32x128xf32>, vector<2x128xf32> -> vector<2x128xf32>
    %378 = arith.addf %376, %377 : vector<2x128xf32>
    %379 = vector.extract_strided_slice %378 {offsets = [0, 0], sizes = [2, 32], strides = [1, 1]} : vector<2x128xf32> to vector<2x32xf32>
    %380 = arith.negf %379 : vector<2x32xf32>
    %381 = math.exp %380 : vector<2x32xf32>
    %cst_89 = arith.constant 1.000000e+00 : f32
    %382 = vector.broadcast %cst_89 : f32 to vector<2x32xf32>
    %383 = arith.addf %382, %381 : vector<2x32xf32>
    %384 = arith.divf %382, %383 : vector<2x32xf32>
    %385 = vector.extract_strided_slice %378 {offsets = [0, 32], sizes = [2, 32], strides = [1, 1]} : vector<2x128xf32> to vector<2x32xf32>
    %386 = arith.negf %385 : vector<2x32xf32>
    %387 = math.exp %386 : vector<2x32xf32>
    %cst_90 = arith.constant 1.000000e+00 : f32
    %388 = vector.broadcast %cst_90 : f32 to vector<2x32xf32>
    %389 = arith.addf %388, %387 : vector<2x32xf32>
    %390 = arith.divf %388, %389 : vector<2x32xf32>
    %391 = vector.extract_strided_slice %378 {offsets = [0, 64], sizes = [2, 32], strides = [1, 1]} : vector<2x128xf32> to vector<2x32xf32>
    %392 = math.tanh %391 : vector<2x32xf32>
    %393 = vector.extract_strided_slice %378 {offsets = [0, 96], sizes = [2, 32], strides = [1, 1]} : vector<2x128xf32> to vector<2x32xf32>
    %394 = arith.negf %393 : vector<2x32xf32>
    %395 = math.exp %394 : vector<2x32xf32>
    %cst_91 = arith.constant 1.000000e+00 : f32
    %396 = vector.broadcast %cst_91 : f32 to vector<2x32xf32>
    %397 = arith.addf %396, %395 : vector<2x32xf32>
    %398 = arith.divf %396, %397 : vector<2x32xf32>
    %399 = arith.mulf %390, %373 : vector<2x32xf32>
    %400 = arith.mulf %384, %392 : vector<2x32xf32>
    %401 = arith.addf %399, %400 : vector<2x32xf32>
    %402 = math.tanh %401 : vector<2x32xf32>
    %403 = arith.mulf %398, %402 : vector<2x32xf32>
    %404 = vector.extract_strided_slice %260 {offsets = [10, 0], sizes = [2, 128], strides = [1, 1]} : vector<16x128xf32> to vector<2x128xf32>
    %cst_92 = arith.constant dense<0.000000e+00> : vector<2x128xf32>
    %405 = tpu.matmul %403, %261, %cst_92 {dimension_numbers = #tpu.dot_dimension_numbers<[1], [0], [0], [1], [0, 0, 1, 1], [], []>} : vector<2x32xf32>, vector<32x128xf32>, vector<2x128xf32> -> vector<2x128xf32>
    %406 = arith.addf %404, %405 : vector<2x128xf32>
    %407 = vector.extract_strided_slice %406 {offsets = [0, 0], sizes = [2, 32], strides = [1, 1]} : vector<2x128xf32> to vector<2x32xf32>
    %408 = arith.negf %407 : vector<2x32xf32>
    %409 = math.exp %408 : vector<2x32xf32>
    %cst_93 = arith.constant 1.000000e+00 : f32
    %410 = vector.broadcast %cst_93 : f32 to vector<2x32xf32>
    %411 = arith.addf %410, %409 : vector<2x32xf32>
    %412 = arith.divf %410, %411 : vector<2x32xf32>
    %413 = vector.extract_strided_slice %406 {offsets = [0, 32], sizes = [2, 32], strides = [1, 1]} : vector<2x128xf32> to vector<2x32xf32>
    %414 = arith.negf %413 : vector<2x32xf32>
    %415 = math.exp %414 : vector<2x32xf32>
    %cst_94 = arith.constant 1.000000e+00 : f32
    %416 = vector.broadcast %cst_94 : f32 to vector<2x32xf32>
    %417 = arith.addf %416, %415 : vector<2x32xf32>
    %418 = arith.divf %416, %417 : vector<2x32xf32>
    %419 = vector.extract_strided_slice %406 {offsets = [0, 64], sizes = [2, 32], strides = [1, 1]} : vector<2x128xf32> to vector<2x32xf32>
    %420 = math.tanh %419 : vector<2x32xf32>
    %421 = vector.extract_strided_slice %406 {offsets = [0, 96], sizes = [2, 32], strides = [1, 1]} : vector<2x128xf32> to vector<2x32xf32>
    %422 = arith.negf %421 : vector<2x32xf32>
    %423 = math.exp %422 : vector<2x32xf32>
    %cst_95 = arith.constant 1.000000e+00 : f32
    %424 = vector.broadcast %cst_95 : f32 to vector<2x32xf32>
    %425 = arith.addf %424, %423 : vector<2x32xf32>
    %426 = arith.divf %424, %425 : vector<2x32xf32>
    %427 = arith.mulf %418, %401 : vector<2x32xf32>
    %428 = arith.mulf %412, %420 : vector<2x32xf32>
    %429 = arith.addf %427, %428 : vector<2x32xf32>
    %430 = math.tanh %429 : vector<2x32xf32>
    %431 = arith.mulf %426, %430 : vector<2x32xf32>
    %432 = vector.extract_strided_slice %260 {offsets = [12, 0], sizes = [2, 128], strides = [1, 1]} : vector<16x128xf32> to vector<2x128xf32>
    %cst_96 = arith.constant dense<0.000000e+00> : vector<2x128xf32>
    %433 = tpu.matmul %431, %261, %cst_96 {dimension_numbers = #tpu.dot_dimension_numbers<[1], [0], [0], [1], [0, 0, 1, 1], [], []>} : vector<2x32xf32>, vector<32x128xf32>, vector<2x128xf32> -> vector<2x128xf32>
    %434 = arith.addf %432, %433 : vector<2x128xf32>
    %435 = vector.extract_strided_slice %434 {offsets = [0, 0], sizes = [2, 32], strides = [1, 1]} : vector<2x128xf32> to vector<2x32xf32>
    %436 = arith.negf %435 : vector<2x32xf32>
    %437 = math.exp %436 : vector<2x32xf32>
    %cst_97 = arith.constant 1.000000e+00 : f32
    %438 = vector.broadcast %cst_97 : f32 to vector<2x32xf32>
    %439 = arith.addf %438, %437 : vector<2x32xf32>
    %440 = arith.divf %438, %439 : vector<2x32xf32>
    %441 = vector.extract_strided_slice %434 {offsets = [0, 32], sizes = [2, 32], strides = [1, 1]} : vector<2x128xf32> to vector<2x32xf32>
    %442 = arith.negf %441 : vector<2x32xf32>
    %443 = math.exp %442 : vector<2x32xf32>
    %cst_98 = arith.constant 1.000000e+00 : f32
    %444 = vector.broadcast %cst_98 : f32 to vector<2x32xf32>
    %445 = arith.addf %444, %443 : vector<2x32xf32>
    %446 = arith.divf %444, %445 : vector<2x32xf32>
    %447 = vector.extract_strided_slice %434 {offsets = [0, 64], sizes = [2, 32], strides = [1, 1]} : vector<2x128xf32> to vector<2x32xf32>
    %448 = math.tanh %447 : vector<2x32xf32>
    %449 = vector.extract_strided_slice %434 {offsets = [0, 96], sizes = [2, 32], strides = [1, 1]} : vector<2x128xf32> to vector<2x32xf32>
    %450 = arith.negf %449 : vector<2x32xf32>
    %451 = math.exp %450 : vector<2x32xf32>
    %cst_99 = arith.constant 1.000000e+00 : f32
    %452 = vector.broadcast %cst_99 : f32 to vector<2x32xf32>
    %453 = arith.addf %452, %451 : vector<2x32xf32>
    %454 = arith.divf %452, %453 : vector<2x32xf32>
    %455 = arith.mulf %446, %429 : vector<2x32xf32>
    %456 = arith.mulf %440, %448 : vector<2x32xf32>
    %457 = arith.addf %455, %456 : vector<2x32xf32>
    %458 = math.tanh %457 : vector<2x32xf32>
    %459 = arith.mulf %454, %458 : vector<2x32xf32>
    %460 = vector.extract_strided_slice %260 {offsets = [14, 0], sizes = [2, 128], strides = [1, 1]} : vector<16x128xf32> to vector<2x128xf32>
    %cst_100 = arith.constant dense<0.000000e+00> : vector<2x128xf32>
    %461 = tpu.matmul %459, %261, %cst_100 {dimension_numbers = #tpu.dot_dimension_numbers<[1], [0], [0], [1], [0, 0, 1, 1], [], []>} : vector<2x32xf32>, vector<32x128xf32>, vector<2x128xf32> -> vector<2x128xf32>
    %462 = arith.addf %460, %461 : vector<2x128xf32>
    %463 = vector.extract_strided_slice %462 {offsets = [0, 0], sizes = [2, 32], strides = [1, 1]} : vector<2x128xf32> to vector<2x32xf32>
    %464 = arith.negf %463 : vector<2x32xf32>
    %465 = math.exp %464 : vector<2x32xf32>
    %cst_101 = arith.constant 1.000000e+00 : f32
    %466 = vector.broadcast %cst_101 : f32 to vector<2x32xf32>
    %467 = arith.addf %466, %465 : vector<2x32xf32>
    %468 = arith.divf %466, %467 : vector<2x32xf32>
    %469 = vector.extract_strided_slice %462 {offsets = [0, 32], sizes = [2, 32], strides = [1, 1]} : vector<2x128xf32> to vector<2x32xf32>
    %470 = arith.negf %469 : vector<2x32xf32>
    %471 = math.exp %470 : vector<2x32xf32>
    %cst_102 = arith.constant 1.000000e+00 : f32
    %472 = vector.broadcast %cst_102 : f32 to vector<2x32xf32>
    %473 = arith.addf %472, %471 : vector<2x32xf32>
    %474 = arith.divf %472, %473 : vector<2x32xf32>
    %475 = vector.extract_strided_slice %462 {offsets = [0, 64], sizes = [2, 32], strides = [1, 1]} : vector<2x128xf32> to vector<2x32xf32>
    %476 = math.tanh %475 : vector<2x32xf32>
    %477 = vector.extract_strided_slice %462 {offsets = [0, 96], sizes = [2, 32], strides = [1, 1]} : vector<2x128xf32> to vector<2x32xf32>
    %478 = arith.negf %477 : vector<2x32xf32>
    %479 = math.exp %478 : vector<2x32xf32>
    %cst_103 = arith.constant 1.000000e+00 : f32
    %480 = vector.broadcast %cst_103 : f32 to vector<2x32xf32>
    %481 = arith.addf %480, %479 : vector<2x32xf32>
    %482 = arith.divf %480, %481 : vector<2x32xf32>
    %483 = arith.mulf %474, %457 : vector<2x32xf32>
    %484 = arith.mulf %468, %476 : vector<2x32xf32>
    %485 = arith.addf %483, %484 : vector<2x32xf32>
    %486 = math.tanh %485 : vector<2x32xf32>
    %487 = arith.mulf %482, %486 : vector<2x32xf32>
    %c0_104 = arith.constant 0 : index
    %c0_105 = arith.constant 0 : index
    %488 = vector.load %arg15[%c0_104, %c0_105] : memref<32x32xf32, #tpu.memory_space<vmem>>, vector<32x32xf32>
    %cst_106 = arith.constant dense<0.000000e+00> : vector<2x32xf32>
    %489 = tpu.matmul %487, %488, %cst_106 {dimension_numbers = #tpu.dot_dimension_numbers<[1], [0], [0], [1], [0, 0, 1, 1], [], []>} : vector<2x32xf32>, vector<32x32xf32>, vector<2x32xf32> -> vector<2x32xf32>
    %c0_107 = arith.constant 0 : index
    %c0_108 = arith.constant 0 : index
    %490 = vector.load %arg16[%c0_107, %c0_108] : memref<1x32xf32, #tpu.memory_space<vmem>>, vector<1x32xf32>
    %491 = vector.broadcast %490 : vector<1x32xf32> to vector<2x32xf32>
    %492 = arith.addf %489, %491 : vector<2x32xf32>
    %cst_109 = arith.constant 0.000000e+00 : f32
    %493 = vector.broadcast %cst_109 : f32 to vector<2x32xf32>
    %494 = arith.maximumf %492, %493 : vector<2x32xf32>
    %c0_110 = arith.constant 0 : index
    %c0_111 = arith.constant 0 : index
    %495 = vector.load %arg17[%c0_110, %c0_111] : memref<3x32xf32, #tpu.memory_space<vmem>>, vector<3x32xf32>
    %c0_112 = arith.constant 0 : index
    %c0_113 = arith.constant 0 : index
    %496 = vector.load %arg18[%c0_112, %c0_113] : memref<3x32xf32, #tpu.memory_space<vmem>>, vector<3x32xf32>
    %cst_114 = arith.constant dense<0.000000e+00> : vector<2xf32>
    %497 = vector.multi_reduction <add>, %14, %cst_114 [1] : vector<2x32xf32> to vector<2xf32>
    %498 = vector.shape_cast %497 : vector<2xf32> to vector<2x1xf32>
    %cst_115 = arith.constant dense<0.000000e+00> : vector<2xf32>
    %499 = vector.multi_reduction <add>, %254, %cst_115 [1] : vector<2x32xf32> to vector<2xf32>
    %500 = vector.shape_cast %499 : vector<2xf32> to vector<2x1xf32>
    %cst_116 = arith.constant dense<0.000000e+00> : vector<2xf32>
    %501 = vector.multi_reduction <add>, %494, %cst_116 [1] : vector<2x32xf32> to vector<2xf32>
    %502 = vector.shape_cast %501 : vector<2xf32> to vector<2x1xf32>
    %cst_117 = arith.constant 0.000000e+00 : f32
    %503 = vector.broadcast %cst_117 : f32 to vector<2x1xf32>
    %504 = arith.addf %503, %498 : vector<2x1xf32>
    %505 = arith.addf %504, %500 : vector<2x1xf32>
    %506 = arith.addf %505, %502 : vector<2x1xf32>
    %cst_118 = arith.constant 0.010416667 : f32
    %507 = vector.broadcast %cst_118 : f32 to vector<2x1xf32>
    %508 = arith.mulf %506, %507 : vector<2x1xf32>
    %509 = vector.broadcast %508 : vector<2x1xf32> to vector<2x32xf32>
    %510 = arith.subf %14, %509 : vector<2x32xf32>
    %511 = vector.broadcast %508 : vector<2x1xf32> to vector<2x32xf32>
    %512 = arith.subf %254, %511 : vector<2x32xf32>
    %513 = vector.broadcast %508 : vector<2x1xf32> to vector<2x32xf32>
    %514 = arith.subf %494, %513 : vector<2x32xf32>
    %515 = arith.mulf %510, %510 : vector<2x32xf32>
    %cst_119 = arith.constant dense<0.000000e+00> : vector<2xf32>
    %516 = vector.multi_reduction <add>, %515, %cst_119 [1] : vector<2x32xf32> to vector<2xf32>
    %517 = vector.shape_cast %516 : vector<2xf32> to vector<2x1xf32>
    %518 = arith.mulf %512, %512 : vector<2x32xf32>
    %cst_120 = arith.constant dense<0.000000e+00> : vector<2xf32>
    %519 = vector.multi_reduction <add>, %518, %cst_120 [1] : vector<2x32xf32> to vector<2xf32>
    %520 = vector.shape_cast %519 : vector<2xf32> to vector<2x1xf32>
    %521 = arith.mulf %514, %514 : vector<2x32xf32>
    %cst_121 = arith.constant dense<0.000000e+00> : vector<2xf32>
    %522 = vector.multi_reduction <add>, %521, %cst_121 [1] : vector<2x32xf32> to vector<2xf32>
    %523 = vector.shape_cast %522 : vector<2xf32> to vector<2x1xf32>
    %cst_122 = arith.constant 0.000000e+00 : f32
    %524 = vector.broadcast %cst_122 : f32 to vector<2x1xf32>
    %525 = arith.addf %524, %517 : vector<2x1xf32>
    %526 = arith.addf %525, %520 : vector<2x1xf32>
    %527 = arith.addf %526, %523 : vector<2x1xf32>
    %cst_123 = arith.constant 0.010416667 : f32
    %528 = vector.broadcast %cst_123 : f32 to vector<2x1xf32>
    %529 = arith.mulf %527, %528 : vector<2x1xf32>
    %cst_124 = arith.constant 9.99999974E-6 : f32
    %530 = vector.broadcast %cst_124 : f32 to vector<2x1xf32>
    %531 = arith.addf %529, %530 : vector<2x1xf32>
    %532 = math.rsqrt %531 : vector<2x1xf32>
    %533 = vector.broadcast %532 : vector<2x1xf32> to vector<2x32xf32>
    %534 = arith.mulf %510, %533 : vector<2x32xf32>
    %535 = vector.extract_strided_slice %495 {offsets = [0, 0], sizes = [1, 32], strides = [1, 1]} : vector<3x32xf32> to vector<1x32xf32>
    %536 = vector.broadcast %535 : vector<1x32xf32> to vector<2x32xf32>
    %537 = arith.mulf %534, %536 : vector<2x32xf32>
    %538 = vector.extract_strided_slice %496 {offsets = [0, 0], sizes = [1, 32], strides = [1, 1]} : vector<3x32xf32> to vector<1x32xf32>
    %539 = vector.broadcast %538 : vector<1x32xf32> to vector<2x32xf32>
    %540 = arith.addf %537, %539 : vector<2x32xf32>
    %541 = vector.broadcast %532 : vector<2x1xf32> to vector<2x32xf32>
    %542 = arith.mulf %512, %541 : vector<2x32xf32>
    %543 = vector.extract_strided_slice %495 {offsets = [1, 0], sizes = [1, 32], strides = [1, 1]} : vector<3x32xf32> to vector<1x32xf32>
    %544 = vector.broadcast %543 : vector<1x32xf32> to vector<2x32xf32>
    %545 = arith.mulf %542, %544 : vector<2x32xf32>
    %546 = vector.extract_strided_slice %496 {offsets = [1, 0], sizes = [1, 32], strides = [1, 1]} : vector<3x32xf32> to vector<1x32xf32>
    %547 = vector.broadcast %546 : vector<1x32xf32> to vector<2x32xf32>
    %548 = arith.addf %545, %547 : vector<2x32xf32>
    %549 = vector.broadcast %532 : vector<2x1xf32> to vector<2x32xf32>
    %550 = arith.mulf %514, %549 : vector<2x32xf32>
    %551 = vector.extract_strided_slice %495 {offsets = [2, 0], sizes = [1, 32], strides = [1, 1]} : vector<3x32xf32> to vector<1x32xf32>
    %552 = vector.broadcast %551 : vector<1x32xf32> to vector<2x32xf32>
    %553 = arith.mulf %550, %552 : vector<2x32xf32>
    %554 = vector.extract_strided_slice %496 {offsets = [2, 0], sizes = [1, 32], strides = [1, 1]} : vector<3x32xf32> to vector<1x32xf32>
    %555 = vector.broadcast %554 : vector<1x32xf32> to vector<2x32xf32>
    %556 = arith.addf %553, %555 : vector<2x32xf32>
    %c0_125 = arith.constant 0 : index
    %c0_126 = arith.constant 0 : index
    %557 = vector.load %arg19[%c0_125, %c0_126] : memref<32x96xf32, #tpu.memory_space<vmem>>, vector<32x96xf32>
    %c0_127 = arith.constant 0 : index
    %c0_128 = arith.constant 0 : index
    %558 = vector.load %arg20[%c0_127, %c0_128] : memref<1x96xf32, #tpu.memory_space<vmem>>, vector<1x96xf32>
    %cst_129 = arith.constant dense<0.000000e+00> : vector<2x96xf32>
    %559 = tpu.matmul %540, %557, %cst_129 {dimension_numbers = #tpu.dot_dimension_numbers<[1], [0], [0], [1], [0, 0, 1, 1], [], []>} : vector<2x32xf32>, vector<32x96xf32>, vector<2x96xf32> -> vector<2x96xf32>
    %560 = vector.broadcast %558 : vector<1x96xf32> to vector<2x96xf32>
    %561 = arith.addf %559, %560 : vector<2x96xf32>
    %cst_130 = arith.constant dense<0.000000e+00> : vector<2x96xf32>
    %562 = tpu.matmul %548, %557, %cst_130 {dimension_numbers = #tpu.dot_dimension_numbers<[1], [0], [0], [1], [0, 0, 1, 1], [], []>} : vector<2x32xf32>, vector<32x96xf32>, vector<2x96xf32> -> vector<2x96xf32>
    %563 = vector.broadcast %558 : vector<1x96xf32> to vector<2x96xf32>
    %564 = arith.addf %562, %563 : vector<2x96xf32>
    %cst_131 = arith.constant dense<0.000000e+00> : vector<2x96xf32>
    %565 = tpu.matmul %556, %557, %cst_131 {dimension_numbers = #tpu.dot_dimension_numbers<[1], [0], [0], [1], [0, 0, 1, 1], [], []>} : vector<2x32xf32>, vector<32x96xf32>, vector<2x96xf32> -> vector<2x96xf32>
    %566 = vector.broadcast %558 : vector<1x96xf32> to vector<2x96xf32>
    %567 = arith.addf %565, %566 : vector<2x96xf32>
    %568 = vector.extract_strided_slice %561 {offsets = [0, 0], sizes = [2, 8], strides = [1, 1]} : vector<2x96xf32> to vector<2x8xf32>
    %569 = vector.extract_strided_slice %564 {offsets = [0, 0], sizes = [2, 8], strides = [1, 1]} : vector<2x96xf32> to vector<2x8xf32>
    %570 = vector.extract_strided_slice %567 {offsets = [0, 0], sizes = [2, 8], strides = [1, 1]} : vector<2x96xf32> to vector<2x8xf32>
    %571 = vector.extract_strided_slice %561 {offsets = [0, 32], sizes = [2, 8], strides = [1, 1]} : vector<2x96xf32> to vector<2x8xf32>
    %572 = vector.extract_strided_slice %564 {offsets = [0, 32], sizes = [2, 8], strides = [1, 1]} : vector<2x96xf32> to vector<2x8xf32>
    %573 = vector.extract_strided_slice %567 {offsets = [0, 32], sizes = [2, 8], strides = [1, 1]} : vector<2x96xf32> to vector<2x8xf32>
    %574 = vector.extract_strided_slice %561 {offsets = [0, 64], sizes = [2, 8], strides = [1, 1]} : vector<2x96xf32> to vector<2x8xf32>
    %575 = vector.extract_strided_slice %564 {offsets = [0, 64], sizes = [2, 8], strides = [1, 1]} : vector<2x96xf32> to vector<2x8xf32>
    %576 = vector.extract_strided_slice %567 {offsets = [0, 64], sizes = [2, 8], strides = [1, 1]} : vector<2x96xf32> to vector<2x8xf32>
    %577 = arith.mulf %568, %571 : vector<2x8xf32>
    %cst_132 = arith.constant dense<0.000000e+00> : vector<2xf32>
    %578 = vector.multi_reduction <add>, %577, %cst_132 [1] : vector<2x8xf32> to vector<2xf32>
    %579 = vector.shape_cast %578 : vector<2xf32> to vector<2x1xf32>
    %580 = arith.mulf %568, %572 : vector<2x8xf32>
    %cst_133 = arith.constant dense<0.000000e+00> : vector<2xf32>
    %581 = vector.multi_reduction <add>, %580, %cst_133 [1] : vector<2x8xf32> to vector<2xf32>
    %582 = vector.shape_cast %581 : vector<2xf32> to vector<2x1xf32>
    %583 = arith.mulf %568, %573 : vector<2x8xf32>
    %cst_134 = arith.constant dense<0.000000e+00> : vector<2xf32>
    %584 = vector.multi_reduction <add>, %583, %cst_134 [1] : vector<2x8xf32> to vector<2xf32>
    %585 = vector.shape_cast %584 : vector<2xf32> to vector<2x1xf32>
    %586 = tpu.concatenate %579, %582, %585 in 1 : vector<2x1xf32>, vector<2x1xf32>, vector<2x1xf32> -> vector<2x3xf32>
    %cst_135 = arith.constant dense<0xFF800000> : vector<2xf32>
    %587 = vector.multi_reduction <maximumf>, %586, %cst_135 [1] : vector<2x3xf32> to vector<2xf32>
    %588 = vector.shape_cast %587 : vector<2xf32> to vector<2x1xf32>
    %589 = vector.broadcast %588 : vector<2x1xf32> to vector<2x3xf32>
    %590 = arith.subf %586, %589 : vector<2x3xf32>
    %591 = math.exp %590 : vector<2x3xf32>
    %cst_136 = arith.constant dense<0.000000e+00> : vector<2xf32>
    %592 = vector.multi_reduction <add>, %591, %cst_136 [1] : vector<2x3xf32> to vector<2xf32>
    %593 = vector.shape_cast %592 : vector<2xf32> to vector<2x1xf32>
    %594 = tpu.reciprocal %593 {approx = true} : vector<2x1xf32> -> vector<2x1xf32>
    %595 = vector.broadcast %594 : vector<2x1xf32> to vector<2x3xf32>
    %596 = arith.mulf %591, %595 : vector<2x3xf32>
    %cst_137 = arith.constant 0.353553385 : f32
    %597 = vector.broadcast %cst_137 : f32 to vector<2x3xf32>
    %598 = arith.mulf %596, %597 : vector<2x3xf32>
    %599 = vector.extract_strided_slice %598 {offsets = [0, 0], sizes = [2, 1], strides = [1, 1]} : vector<2x3xf32> to vector<2x1xf32>
    %600 = vector.broadcast %599 : vector<2x1xf32> to vector<2x8xf32>
    %601 = arith.mulf %600, %574 : vector<2x8xf32>
    %602 = vector.extract_strided_slice %598 {offsets = [0, 1], sizes = [2, 1], strides = [1, 1]} : vector<2x3xf32> to vector<2x1xf32>
    %603 = vector.broadcast %602 : vector<2x1xf32> to vector<2x8xf32>
    %604 = arith.mulf %603, %575 : vector<2x8xf32>
    %605 = arith.addf %601, %604 : vector<2x8xf32>
    %606 = vector.extract_strided_slice %598 {offsets = [0, 2], sizes = [2, 1], strides = [1, 1]} : vector<2x3xf32> to vector<2x1xf32>
    %607 = vector.broadcast %606 : vector<2x1xf32> to vector<2x8xf32>
    %608 = arith.mulf %607, %576 : vector<2x8xf32>
    %609 = arith.addf %605, %608 : vector<2x8xf32>
    %610 = arith.mulf %569, %571 : vector<2x8xf32>
    %cst_138 = arith.constant dense<0.000000e+00> : vector<2xf32>
    %611 = vector.multi_reduction <add>, %610, %cst_138 [1] : vector<2x8xf32> to vector<2xf32>
    %612 = vector.shape_cast %611 : vector<2xf32> to vector<2x1xf32>
    %613 = arith.mulf %569, %572 : vector<2x8xf32>
    %cst_139 = arith.constant dense<0.000000e+00> : vector<2xf32>
    %614 = vector.multi_reduction <add>, %613, %cst_139 [1] : vector<2x8xf32> to vector<2xf32>
    %615 = vector.shape_cast %614 : vector<2xf32> to vector<2x1xf32>
    %616 = arith.mulf %569, %573 : vector<2x8xf32>
    %cst_140 = arith.constant dense<0.000000e+00> : vector<2xf32>
    %617 = vector.multi_reduction <add>, %616, %cst_140 [1] : vector<2x8xf32> to vector<2xf32>
    %618 = vector.shape_cast %617 : vector<2xf32> to vector<2x1xf32>
    %619 = tpu.concatenate %612, %615, %618 in 1 : vector<2x1xf32>, vector<2x1xf32>, vector<2x1xf32> -> vector<2x3xf32>
    %cst_141 = arith.constant dense<0xFF800000> : vector<2xf32>
    %620 = vector.multi_reduction <maximumf>, %619, %cst_141 [1] : vector<2x3xf32> to vector<2xf32>
    %621 = vector.shape_cast %620 : vector<2xf32> to vector<2x1xf32>
    %622 = vector.broadcast %621 : vector<2x1xf32> to vector<2x3xf32>
    %623 = arith.subf %619, %622 : vector<2x3xf32>
    %624 = math.exp %623 : vector<2x3xf32>
    %cst_142 = arith.constant dense<0.000000e+00> : vector<2xf32>
    %625 = vector.multi_reduction <add>, %624, %cst_142 [1] : vector<2x3xf32> to vector<2xf32>
    %626 = vector.shape_cast %625 : vector<2xf32> to vector<2x1xf32>
    %627 = tpu.reciprocal %626 {approx = true} : vector<2x1xf32> -> vector<2x1xf32>
    %628 = vector.broadcast %627 : vector<2x1xf32> to vector<2x3xf32>
    %629 = arith.mulf %624, %628 : vector<2x3xf32>
    %cst_143 = arith.constant 0.353553385 : f32
    %630 = vector.broadcast %cst_143 : f32 to vector<2x3xf32>
    %631 = arith.mulf %629, %630 : vector<2x3xf32>
    %632 = vector.extract_strided_slice %631 {offsets = [0, 0], sizes = [2, 1], strides = [1, 1]} : vector<2x3xf32> to vector<2x1xf32>
    %633 = vector.broadcast %632 : vector<2x1xf32> to vector<2x8xf32>
    %634 = arith.mulf %633, %574 : vector<2x8xf32>
    %635 = vector.extract_strided_slice %631 {offsets = [0, 1], sizes = [2, 1], strides = [1, 1]} : vector<2x3xf32> to vector<2x1xf32>
    %636 = vector.broadcast %635 : vector<2x1xf32> to vector<2x8xf32>
    %637 = arith.mulf %636, %575 : vector<2x8xf32>
    %638 = arith.addf %634, %637 : vector<2x8xf32>
    %639 = vector.extract_strided_slice %631 {offsets = [0, 2], sizes = [2, 1], strides = [1, 1]} : vector<2x3xf32> to vector<2x1xf32>
    %640 = vector.broadcast %639 : vector<2x1xf32> to vector<2x8xf32>
    %641 = arith.mulf %640, %576 : vector<2x8xf32>
    %642 = arith.addf %638, %641 : vector<2x8xf32>
    %643 = arith.mulf %570, %571 : vector<2x8xf32>
    %cst_144 = arith.constant dense<0.000000e+00> : vector<2xf32>
    %644 = vector.multi_reduction <add>, %643, %cst_144 [1] : vector<2x8xf32> to vector<2xf32>
    %645 = vector.shape_cast %644 : vector<2xf32> to vector<2x1xf32>
    %646 = arith.mulf %570, %572 : vector<2x8xf32>
    %cst_145 = arith.constant dense<0.000000e+00> : vector<2xf32>
    %647 = vector.multi_reduction <add>, %646, %cst_145 [1] : vector<2x8xf32> to vector<2xf32>
    %648 = vector.shape_cast %647 : vector<2xf32> to vector<2x1xf32>
    %649 = arith.mulf %570, %573 : vector<2x8xf32>
    %cst_146 = arith.constant dense<0.000000e+00> : vector<2xf32>
    %650 = vector.multi_reduction <add>, %649, %cst_146 [1] : vector<2x8xf32> to vector<2xf32>
    %651 = vector.shape_cast %650 : vector<2xf32> to vector<2x1xf32>
    %652 = tpu.concatenate %645, %648, %651 in 1 : vector<2x1xf32>, vector<2x1xf32>, vector<2x1xf32> -> vector<2x3xf32>
    %cst_147 = arith.constant dense<0xFF800000> : vector<2xf32>
    %653 = vector.multi_reduction <maximumf>, %652, %cst_147 [1] : vector<2x3xf32> to vector<2xf32>
    %654 = vector.shape_cast %653 : vector<2xf32> to vector<2x1xf32>
    %655 = vector.broadcast %654 : vector<2x1xf32> to vector<2x3xf32>
    %656 = arith.subf %652, %655 : vector<2x3xf32>
    %657 = math.exp %656 : vector<2x3xf32>
    %cst_148 = arith.constant dense<0.000000e+00> : vector<2xf32>
    %658 = vector.multi_reduction <add>, %657, %cst_148 [1] : vector<2x3xf32> to vector<2xf32>
    %659 = vector.shape_cast %658 : vector<2xf32> to vector<2x1xf32>
    %660 = tpu.reciprocal %659 {approx = true} : vector<2x1xf32> -> vector<2x1xf32>
    %661 = vector.broadcast %660 : vector<2x1xf32> to vector<2x3xf32>
    %662 = arith.mulf %657, %661 : vector<2x3xf32>
    %cst_149 = arith.constant 0.353553385 : f32
    %663 = vector.broadcast %cst_149 : f32 to vector<2x3xf32>
    %664 = arith.mulf %662, %663 : vector<2x3xf32>
    %665 = vector.extract_strided_slice %664 {offsets = [0, 0], sizes = [2, 1], strides = [1, 1]} : vector<2x3xf32> to vector<2x1xf32>
    %666 = vector.broadcast %665 : vector<2x1xf32> to vector<2x8xf32>
    %667 = arith.mulf %666, %574 : vector<2x8xf32>
    %668 = vector.extract_strided_slice %664 {offsets = [0, 1], sizes = [2, 1], strides = [1, 1]} : vector<2x3xf32> to vector<2x1xf32>
    %669 = vector.broadcast %668 : vector<2x1xf32> to vector<2x8xf32>
    %670 = arith.mulf %669, %575 : vector<2x8xf32>
    %671 = arith.addf %667, %670 : vector<2x8xf32>
    %672 = vector.extract_strided_slice %664 {offsets = [0, 2], sizes = [2, 1], strides = [1, 1]} : vector<2x3xf32> to vector<2x1xf32>
    %673 = vector.broadcast %672 : vector<2x1xf32> to vector<2x8xf32>
    %674 = arith.mulf %673, %576 : vector<2x8xf32>
    %675 = arith.addf %671, %674 : vector<2x8xf32>
    %676 = vector.extract_strided_slice %561 {offsets = [0, 8], sizes = [2, 8], strides = [1, 1]} : vector<2x96xf32> to vector<2x8xf32>
    %677 = vector.extract_strided_slice %564 {offsets = [0, 8], sizes = [2, 8], strides = [1, 1]} : vector<2x96xf32> to vector<2x8xf32>
    %678 = vector.extract_strided_slice %567 {offsets = [0, 8], sizes = [2, 8], strides = [1, 1]} : vector<2x96xf32> to vector<2x8xf32>
    %679 = vector.extract_strided_slice %561 {offsets = [0, 40], sizes = [2, 8], strides = [1, 1]} : vector<2x96xf32> to vector<2x8xf32>
    %680 = vector.extract_strided_slice %564 {offsets = [0, 40], sizes = [2, 8], strides = [1, 1]} : vector<2x96xf32> to vector<2x8xf32>
    %681 = vector.extract_strided_slice %567 {offsets = [0, 40], sizes = [2, 8], strides = [1, 1]} : vector<2x96xf32> to vector<2x8xf32>
    %682 = vector.extract_strided_slice %561 {offsets = [0, 72], sizes = [2, 8], strides = [1, 1]} : vector<2x96xf32> to vector<2x8xf32>
    %683 = vector.extract_strided_slice %564 {offsets = [0, 72], sizes = [2, 8], strides = [1, 1]} : vector<2x96xf32> to vector<2x8xf32>
    %684 = vector.extract_strided_slice %567 {offsets = [0, 72], sizes = [2, 8], strides = [1, 1]} : vector<2x96xf32> to vector<2x8xf32>
    %685 = arith.mulf %676, %679 : vector<2x8xf32>
    %cst_150 = arith.constant dense<0.000000e+00> : vector<2xf32>
    %686 = vector.multi_reduction <add>, %685, %cst_150 [1] : vector<2x8xf32> to vector<2xf32>
    %687 = vector.shape_cast %686 : vector<2xf32> to vector<2x1xf32>
    %688 = arith.mulf %676, %680 : vector<2x8xf32>
    %cst_151 = arith.constant dense<0.000000e+00> : vector<2xf32>
    %689 = vector.multi_reduction <add>, %688, %cst_151 [1] : vector<2x8xf32> to vector<2xf32>
    %690 = vector.shape_cast %689 : vector<2xf32> to vector<2x1xf32>
    %691 = arith.mulf %676, %681 : vector<2x8xf32>
    %cst_152 = arith.constant dense<0.000000e+00> : vector<2xf32>
    %692 = vector.multi_reduction <add>, %691, %cst_152 [1] : vector<2x8xf32> to vector<2xf32>
    %693 = vector.shape_cast %692 : vector<2xf32> to vector<2x1xf32>
    %694 = tpu.concatenate %687, %690, %693 in 1 : vector<2x1xf32>, vector<2x1xf32>, vector<2x1xf32> -> vector<2x3xf32>
    %cst_153 = arith.constant dense<0xFF800000> : vector<2xf32>
    %695 = vector.multi_reduction <maximumf>, %694, %cst_153 [1] : vector<2x3xf32> to vector<2xf32>
    %696 = vector.shape_cast %695 : vector<2xf32> to vector<2x1xf32>
    %697 = vector.broadcast %696 : vector<2x1xf32> to vector<2x3xf32>
    %698 = arith.subf %694, %697 : vector<2x3xf32>
    %699 = math.exp %698 : vector<2x3xf32>
    %cst_154 = arith.constant dense<0.000000e+00> : vector<2xf32>
    %700 = vector.multi_reduction <add>, %699, %cst_154 [1] : vector<2x3xf32> to vector<2xf32>
    %701 = vector.shape_cast %700 : vector<2xf32> to vector<2x1xf32>
    %702 = tpu.reciprocal %701 {approx = true} : vector<2x1xf32> -> vector<2x1xf32>
    %703 = vector.broadcast %702 : vector<2x1xf32> to vector<2x3xf32>
    %704 = arith.mulf %699, %703 : vector<2x3xf32>
    %cst_155 = arith.constant 0.353553385 : f32
    %705 = vector.broadcast %cst_155 : f32 to vector<2x3xf32>
    %706 = arith.mulf %704, %705 : vector<2x3xf32>
    %707 = vector.extract_strided_slice %706 {offsets = [0, 0], sizes = [2, 1], strides = [1, 1]} : vector<2x3xf32> to vector<2x1xf32>
    %708 = vector.broadcast %707 : vector<2x1xf32> to vector<2x8xf32>
    %709 = arith.mulf %708, %682 : vector<2x8xf32>
    %710 = vector.extract_strided_slice %706 {offsets = [0, 1], sizes = [2, 1], strides = [1, 1]} : vector<2x3xf32> to vector<2x1xf32>
    %711 = vector.broadcast %710 : vector<2x1xf32> to vector<2x8xf32>
    %712 = arith.mulf %711, %683 : vector<2x8xf32>
    %713 = arith.addf %709, %712 : vector<2x8xf32>
    %714 = vector.extract_strided_slice %706 {offsets = [0, 2], sizes = [2, 1], strides = [1, 1]} : vector<2x3xf32> to vector<2x1xf32>
    %715 = vector.broadcast %714 : vector<2x1xf32> to vector<2x8xf32>
    %716 = arith.mulf %715, %684 : vector<2x8xf32>
    %717 = arith.addf %713, %716 : vector<2x8xf32>
    %718 = arith.mulf %677, %679 : vector<2x8xf32>
    %cst_156 = arith.constant dense<0.000000e+00> : vector<2xf32>
    %719 = vector.multi_reduction <add>, %718, %cst_156 [1] : vector<2x8xf32> to vector<2xf32>
    %720 = vector.shape_cast %719 : vector<2xf32> to vector<2x1xf32>
    %721 = arith.mulf %677, %680 : vector<2x8xf32>
    %cst_157 = arith.constant dense<0.000000e+00> : vector<2xf32>
    %722 = vector.multi_reduction <add>, %721, %cst_157 [1] : vector<2x8xf32> to vector<2xf32>
    %723 = vector.shape_cast %722 : vector<2xf32> to vector<2x1xf32>
    %724 = arith.mulf %677, %681 : vector<2x8xf32>
    %cst_158 = arith.constant dense<0.000000e+00> : vector<2xf32>
    %725 = vector.multi_reduction <add>, %724, %cst_158 [1] : vector<2x8xf32> to vector<2xf32>
    %726 = vector.shape_cast %725 : vector<2xf32> to vector<2x1xf32>
    %727 = tpu.concatenate %720, %723, %726 in 1 : vector<2x1xf32>, vector<2x1xf32>, vector<2x1xf32> -> vector<2x3xf32>
    %cst_159 = arith.constant dense<0xFF800000> : vector<2xf32>
    %728 = vector.multi_reduction <maximumf>, %727, %cst_159 [1] : vector<2x3xf32> to vector<2xf32>
    %729 = vector.shape_cast %728 : vector<2xf32> to vector<2x1xf32>
    %730 = vector.broadcast %729 : vector<2x1xf32> to vector<2x3xf32>
    %731 = arith.subf %727, %730 : vector<2x3xf32>
    %732 = math.exp %731 : vector<2x3xf32>
    %cst_160 = arith.constant dense<0.000000e+00> : vector<2xf32>
    %733 = vector.multi_reduction <add>, %732, %cst_160 [1] : vector<2x3xf32> to vector<2xf32>
    %734 = vector.shape_cast %733 : vector<2xf32> to vector<2x1xf32>
    %735 = tpu.reciprocal %734 {approx = true} : vector<2x1xf32> -> vector<2x1xf32>
    %736 = vector.broadcast %735 : vector<2x1xf32> to vector<2x3xf32>
    %737 = arith.mulf %732, %736 : vector<2x3xf32>
    %cst_161 = arith.constant 0.353553385 : f32
    %738 = vector.broadcast %cst_161 : f32 to vector<2x3xf32>
    %739 = arith.mulf %737, %738 : vector<2x3xf32>
    %740 = vector.extract_strided_slice %739 {offsets = [0, 0], sizes = [2, 1], strides = [1, 1]} : vector<2x3xf32> to vector<2x1xf32>
    %741 = vector.broadcast %740 : vector<2x1xf32> to vector<2x8xf32>
    %742 = arith.mulf %741, %682 : vector<2x8xf32>
    %743 = vector.extract_strided_slice %739 {offsets = [0, 1], sizes = [2, 1], strides = [1, 1]} : vector<2x3xf32> to vector<2x1xf32>
    %744 = vector.broadcast %743 : vector<2x1xf32> to vector<2x8xf32>
    %745 = arith.mulf %744, %683 : vector<2x8xf32>
    %746 = arith.addf %742, %745 : vector<2x8xf32>
    %747 = vector.extract_strided_slice %739 {offsets = [0, 2], sizes = [2, 1], strides = [1, 1]} : vector<2x3xf32> to vector<2x1xf32>
    %748 = vector.broadcast %747 : vector<2x1xf32> to vector<2x8xf32>
    %749 = arith.mulf %748, %684 : vector<2x8xf32>
    %750 = arith.addf %746, %749 : vector<2x8xf32>
    %751 = arith.mulf %678, %679 : vector<2x8xf32>
    %cst_162 = arith.constant dense<0.000000e+00> : vector<2xf32>
    %752 = vector.multi_reduction <add>, %751, %cst_162 [1] : vector<2x8xf32> to vector<2xf32>
    %753 = vector.shape_cast %752 : vector<2xf32> to vector<2x1xf32>
    %754 = arith.mulf %678, %680 : vector<2x8xf32>
    %cst_163 = arith.constant dense<0.000000e+00> : vector<2xf32>
    %755 = vector.multi_reduction <add>, %754, %cst_163 [1] : vector<2x8xf32> to vector<2xf32>
    %756 = vector.shape_cast %755 : vector<2xf32> to vector<2x1xf32>
    %757 = arith.mulf %678, %681 : vector<2x8xf32>
    %cst_164 = arith.constant dense<0.000000e+00> : vector<2xf32>
    %758 = vector.multi_reduction <add>, %757, %cst_164 [1] : vector<2x8xf32> to vector<2xf32>
    %759 = vector.shape_cast %758 : vector<2xf32> to vector<2x1xf32>
    %760 = tpu.concatenate %753, %756, %759 in 1 : vector<2x1xf32>, vector<2x1xf32>, vector<2x1xf32> -> vector<2x3xf32>
    %cst_165 = arith.constant dense<0xFF800000> : vector<2xf32>
    %761 = vector.multi_reduction <maximumf>, %760, %cst_165 [1] : vector<2x3xf32> to vector<2xf32>
    %762 = vector.shape_cast %761 : vector<2xf32> to vector<2x1xf32>
    %763 = vector.broadcast %762 : vector<2x1xf32> to vector<2x3xf32>
    %764 = arith.subf %760, %763 : vector<2x3xf32>
    %765 = math.exp %764 : vector<2x3xf32>
    %cst_166 = arith.constant dense<0.000000e+00> : vector<2xf32>
    %766 = vector.multi_reduction <add>, %765, %cst_166 [1] : vector<2x3xf32> to vector<2xf32>
    %767 = vector.shape_cast %766 : vector<2xf32> to vector<2x1xf32>
    %768 = tpu.reciprocal %767 {approx = true} : vector<2x1xf32> -> vector<2x1xf32>
    %769 = vector.broadcast %768 : vector<2x1xf32> to vector<2x3xf32>
    %770 = arith.mulf %765, %769 : vector<2x3xf32>
    %cst_167 = arith.constant 0.353553385 : f32
    %771 = vector.broadcast %cst_167 : f32 to vector<2x3xf32>
    %772 = arith.mulf %770, %771 : vector<2x3xf32>
    %773 = vector.extract_strided_slice %772 {offsets = [0, 0], sizes = [2, 1], strides = [1, 1]} : vector<2x3xf32> to vector<2x1xf32>
    %774 = vector.broadcast %773 : vector<2x1xf32> to vector<2x8xf32>
    %775 = arith.mulf %774, %682 : vector<2x8xf32>
    %776 = vector.extract_strided_slice %772 {offsets = [0, 1], sizes = [2, 1], strides = [1, 1]} : vector<2x3xf32> to vector<2x1xf32>
    %777 = vector.broadcast %776 : vector<2x1xf32> to vector<2x8xf32>
    %778 = arith.mulf %777, %683 : vector<2x8xf32>
    %779 = arith.addf %775, %778 : vector<2x8xf32>
    %780 = vector.extract_strided_slice %772 {offsets = [0, 2], sizes = [2, 1], strides = [1, 1]} : vector<2x3xf32> to vector<2x1xf32>
    %781 = vector.broadcast %780 : vector<2x1xf32> to vector<2x8xf32>
    %782 = arith.mulf %781, %684 : vector<2x8xf32>
    %783 = arith.addf %779, %782 : vector<2x8xf32>
    %784 = vector.extract_strided_slice %561 {offsets = [0, 16], sizes = [2, 8], strides = [1, 1]} : vector<2x96xf32> to vector<2x8xf32>
    %785 = vector.extract_strided_slice %564 {offsets = [0, 16], sizes = [2, 8], strides = [1, 1]} : vector<2x96xf32> to vector<2x8xf32>
    %786 = vector.extract_strided_slice %567 {offsets = [0, 16], sizes = [2, 8], strides = [1, 1]} : vector<2x96xf32> to vector<2x8xf32>
    %787 = vector.extract_strided_slice %561 {offsets = [0, 48], sizes = [2, 8], strides = [1, 1]} : vector<2x96xf32> to vector<2x8xf32>
    %788 = vector.extract_strided_slice %564 {offsets = [0, 48], sizes = [2, 8], strides = [1, 1]} : vector<2x96xf32> to vector<2x8xf32>
    %789 = vector.extract_strided_slice %567 {offsets = [0, 48], sizes = [2, 8], strides = [1, 1]} : vector<2x96xf32> to vector<2x8xf32>
    %790 = vector.extract_strided_slice %561 {offsets = [0, 80], sizes = [2, 8], strides = [1, 1]} : vector<2x96xf32> to vector<2x8xf32>
    %791 = vector.extract_strided_slice %564 {offsets = [0, 80], sizes = [2, 8], strides = [1, 1]} : vector<2x96xf32> to vector<2x8xf32>
    %792 = vector.extract_strided_slice %567 {offsets = [0, 80], sizes = [2, 8], strides = [1, 1]} : vector<2x96xf32> to vector<2x8xf32>
    %793 = arith.mulf %784, %787 : vector<2x8xf32>
    %cst_168 = arith.constant dense<0.000000e+00> : vector<2xf32>
    %794 = vector.multi_reduction <add>, %793, %cst_168 [1] : vector<2x8xf32> to vector<2xf32>
    %795 = vector.shape_cast %794 : vector<2xf32> to vector<2x1xf32>
    %796 = arith.mulf %784, %788 : vector<2x8xf32>
    %cst_169 = arith.constant dense<0.000000e+00> : vector<2xf32>
    %797 = vector.multi_reduction <add>, %796, %cst_169 [1] : vector<2x8xf32> to vector<2xf32>
    %798 = vector.shape_cast %797 : vector<2xf32> to vector<2x1xf32>
    %799 = arith.mulf %784, %789 : vector<2x8xf32>
    %cst_170 = arith.constant dense<0.000000e+00> : vector<2xf32>
    %800 = vector.multi_reduction <add>, %799, %cst_170 [1] : vector<2x8xf32> to vector<2xf32>
    %801 = vector.shape_cast %800 : vector<2xf32> to vector<2x1xf32>
    %802 = tpu.concatenate %795, %798, %801 in 1 : vector<2x1xf32>, vector<2x1xf32>, vector<2x1xf32> -> vector<2x3xf32>
    %cst_171 = arith.constant dense<0xFF800000> : vector<2xf32>
    %803 = vector.multi_reduction <maximumf>, %802, %cst_171 [1] : vector<2x3xf32> to vector<2xf32>
    %804 = vector.shape_cast %803 : vector<2xf32> to vector<2x1xf32>
    %805 = vector.broadcast %804 : vector<2x1xf32> to vector<2x3xf32>
    %806 = arith.subf %802, %805 : vector<2x3xf32>
    %807 = math.exp %806 : vector<2x3xf32>
    %cst_172 = arith.constant dense<0.000000e+00> : vector<2xf32>
    %808 = vector.multi_reduction <add>, %807, %cst_172 [1] : vector<2x3xf32> to vector<2xf32>
    %809 = vector.shape_cast %808 : vector<2xf32> to vector<2x1xf32>
    %810 = tpu.reciprocal %809 {approx = true} : vector<2x1xf32> -> vector<2x1xf32>
    %811 = vector.broadcast %810 : vector<2x1xf32> to vector<2x3xf32>
    %812 = arith.mulf %807, %811 : vector<2x3xf32>
    %cst_173 = arith.constant 0.353553385 : f32
    %813 = vector.broadcast %cst_173 : f32 to vector<2x3xf32>
    %814 = arith.mulf %812, %813 : vector<2x3xf32>
    %815 = vector.extract_strided_slice %814 {offsets = [0, 0], sizes = [2, 1], strides = [1, 1]} : vector<2x3xf32> to vector<2x1xf32>
    %816 = vector.broadcast %815 : vector<2x1xf32> to vector<2x8xf32>
    %817 = arith.mulf %816, %790 : vector<2x8xf32>
    %818 = vector.extract_strided_slice %814 {offsets = [0, 1], sizes = [2, 1], strides = [1, 1]} : vector<2x3xf32> to vector<2x1xf32>
    %819 = vector.broadcast %818 : vector<2x1xf32> to vector<2x8xf32>
    %820 = arith.mulf %819, %791 : vector<2x8xf32>
    %821 = arith.addf %817, %820 : vector<2x8xf32>
    %822 = vector.extract_strided_slice %814 {offsets = [0, 2], sizes = [2, 1], strides = [1, 1]} : vector<2x3xf32> to vector<2x1xf32>
    %823 = vector.broadcast %822 : vector<2x1xf32> to vector<2x8xf32>
    %824 = arith.mulf %823, %792 : vector<2x8xf32>
    %825 = arith.addf %821, %824 : vector<2x8xf32>
    %826 = arith.mulf %785, %787 : vector<2x8xf32>
    %cst_174 = arith.constant dense<0.000000e+00> : vector<2xf32>
    %827 = vector.multi_reduction <add>, %826, %cst_174 [1] : vector<2x8xf32> to vector<2xf32>
    %828 = vector.shape_cast %827 : vector<2xf32> to vector<2x1xf32>
    %829 = arith.mulf %785, %788 : vector<2x8xf32>
    %cst_175 = arith.constant dense<0.000000e+00> : vector<2xf32>
    %830 = vector.multi_reduction <add>, %829, %cst_175 [1] : vector<2x8xf32> to vector<2xf32>
    %831 = vector.shape_cast %830 : vector<2xf32> to vector<2x1xf32>
    %832 = arith.mulf %785, %789 : vector<2x8xf32>
    %cst_176 = arith.constant dense<0.000000e+00> : vector<2xf32>
    %833 = vector.multi_reduction <add>, %832, %cst_176 [1] : vector<2x8xf32> to vector<2xf32>
    %834 = vector.shape_cast %833 : vector<2xf32> to vector<2x1xf32>
    %835 = tpu.concatenate %828, %831, %834 in 1 : vector<2x1xf32>, vector<2x1xf32>, vector<2x1xf32> -> vector<2x3xf32>
    %cst_177 = arith.constant dense<0xFF800000> : vector<2xf32>
    %836 = vector.multi_reduction <maximumf>, %835, %cst_177 [1] : vector<2x3xf32> to vector<2xf32>
    %837 = vector.shape_cast %836 : vector<2xf32> to vector<2x1xf32>
    %838 = vector.broadcast %837 : vector<2x1xf32> to vector<2x3xf32>
    %839 = arith.subf %835, %838 : vector<2x3xf32>
    %840 = math.exp %839 : vector<2x3xf32>
    %cst_178 = arith.constant dense<0.000000e+00> : vector<2xf32>
    %841 = vector.multi_reduction <add>, %840, %cst_178 [1] : vector<2x3xf32> to vector<2xf32>
    %842 = vector.shape_cast %841 : vector<2xf32> to vector<2x1xf32>
    %843 = tpu.reciprocal %842 {approx = true} : vector<2x1xf32> -> vector<2x1xf32>
    %844 = vector.broadcast %843 : vector<2x1xf32> to vector<2x3xf32>
    %845 = arith.mulf %840, %844 : vector<2x3xf32>
    %cst_179 = arith.constant 0.353553385 : f32
    %846 = vector.broadcast %cst_179 : f32 to vector<2x3xf32>
    %847 = arith.mulf %845, %846 : vector<2x3xf32>
    %848 = vector.extract_strided_slice %847 {offsets = [0, 0], sizes = [2, 1], strides = [1, 1]} : vector<2x3xf32> to vector<2x1xf32>
    %849 = vector.broadcast %848 : vector<2x1xf32> to vector<2x8xf32>
    %850 = arith.mulf %849, %790 : vector<2x8xf32>
    %851 = vector.extract_strided_slice %847 {offsets = [0, 1], sizes = [2, 1], strides = [1, 1]} : vector<2x3xf32> to vector<2x1xf32>
    %852 = vector.broadcast %851 : vector<2x1xf32> to vector<2x8xf32>
    %853 = arith.mulf %852, %791 : vector<2x8xf32>
    %854 = arith.addf %850, %853 : vector<2x8xf32>
    %855 = vector.extract_strided_slice %847 {offsets = [0, 2], sizes = [2, 1], strides = [1, 1]} : vector<2x3xf32> to vector<2x1xf32>
    %856 = vector.broadcast %855 : vector<2x1xf32> to vector<2x8xf32>
    %857 = arith.mulf %856, %792 : vector<2x8xf32>
    %858 = arith.addf %854, %857 : vector<2x8xf32>
    %859 = arith.mulf %786, %787 : vector<2x8xf32>
    %cst_180 = arith.constant dense<0.000000e+00> : vector<2xf32>
    %860 = vector.multi_reduction <add>, %859, %cst_180 [1] : vector<2x8xf32> to vector<2xf32>
    %861 = vector.shape_cast %860 : vector<2xf32> to vector<2x1xf32>
    %862 = arith.mulf %786, %788 : vector<2x8xf32>
    %cst_181 = arith.constant dense<0.000000e+00> : vector<2xf32>
    %863 = vector.multi_reduction <add>, %862, %cst_181 [1] : vector<2x8xf32> to vector<2xf32>
    %864 = vector.shape_cast %863 : vector<2xf32> to vector<2x1xf32>
    %865 = arith.mulf %786, %789 : vector<2x8xf32>
    %cst_182 = arith.constant dense<0.000000e+00> : vector<2xf32>
    %866 = vector.multi_reduction <add>, %865, %cst_182 [1] : vector<2x8xf32> to vector<2xf32>
    %867 = vector.shape_cast %866 : vector<2xf32> to vector<2x1xf32>
    %868 = tpu.concatenate %861, %864, %867 in 1 : vector<2x1xf32>, vector<2x1xf32>, vector<2x1xf32> -> vector<2x3xf32>
    %cst_183 = arith.constant dense<0xFF800000> : vector<2xf32>
    %869 = vector.multi_reduction <maximumf>, %868, %cst_183 [1] : vector<2x3xf32> to vector<2xf32>
    %870 = vector.shape_cast %869 : vector<2xf32> to vector<2x1xf32>
    %871 = vector.broadcast %870 : vector<2x1xf32> to vector<2x3xf32>
    %872 = arith.subf %868, %871 : vector<2x3xf32>
    %873 = math.exp %872 : vector<2x3xf32>
    %cst_184 = arith.constant dense<0.000000e+00> : vector<2xf32>
    %874 = vector.multi_reduction <add>, %873, %cst_184 [1] : vector<2x3xf32> to vector<2xf32>
    %875 = vector.shape_cast %874 : vector<2xf32> to vector<2x1xf32>
    %876 = tpu.reciprocal %875 {approx = true} : vector<2x1xf32> -> vector<2x1xf32>
    %877 = vector.broadcast %876 : vector<2x1xf32> to vector<2x3xf32>
    %878 = arith.mulf %873, %877 : vector<2x3xf32>
    %cst_185 = arith.constant 0.353553385 : f32
    %879 = vector.broadcast %cst_185 : f32 to vector<2x3xf32>
    %880 = arith.mulf %878, %879 : vector<2x3xf32>
    %881 = vector.extract_strided_slice %880 {offsets = [0, 0], sizes = [2, 1], strides = [1, 1]} : vector<2x3xf32> to vector<2x1xf32>
    %882 = vector.broadcast %881 : vector<2x1xf32> to vector<2x8xf32>
    %883 = arith.mulf %882, %790 : vector<2x8xf32>
    %884 = vector.extract_strided_slice %880 {offsets = [0, 1], sizes = [2, 1], strides = [1, 1]} : vector<2x3xf32> to vector<2x1xf32>
    %885 = vector.broadcast %884 : vector<2x1xf32> to vector<2x8xf32>
    %886 = arith.mulf %885, %791 : vector<2x8xf32>
    %887 = arith.addf %883, %886 : vector<2x8xf32>
    %888 = vector.extract_strided_slice %880 {offsets = [0, 2], sizes = [2, 1], strides = [1, 1]} : vector<2x3xf32> to vector<2x1xf32>
    %889 = vector.broadcast %888 : vector<2x1xf32> to vector<2x8xf32>
    %890 = arith.mulf %889, %792 : vector<2x8xf32>
    %891 = arith.addf %887, %890 : vector<2x8xf32>
    %892 = vector.extract_strided_slice %561 {offsets = [0, 24], sizes = [2, 8], strides = [1, 1]} : vector<2x96xf32> to vector<2x8xf32>
    %893 = vector.extract_strided_slice %564 {offsets = [0, 24], sizes = [2, 8], strides = [1, 1]} : vector<2x96xf32> to vector<2x8xf32>
    %894 = vector.extract_strided_slice %567 {offsets = [0, 24], sizes = [2, 8], strides = [1, 1]} : vector<2x96xf32> to vector<2x8xf32>
    %895 = vector.extract_strided_slice %561 {offsets = [0, 56], sizes = [2, 8], strides = [1, 1]} : vector<2x96xf32> to vector<2x8xf32>
    %896 = vector.extract_strided_slice %564 {offsets = [0, 56], sizes = [2, 8], strides = [1, 1]} : vector<2x96xf32> to vector<2x8xf32>
    %897 = vector.extract_strided_slice %567 {offsets = [0, 56], sizes = [2, 8], strides = [1, 1]} : vector<2x96xf32> to vector<2x8xf32>
    %898 = vector.extract_strided_slice %561 {offsets = [0, 88], sizes = [2, 8], strides = [1, 1]} : vector<2x96xf32> to vector<2x8xf32>
    %899 = vector.extract_strided_slice %564 {offsets = [0, 88], sizes = [2, 8], strides = [1, 1]} : vector<2x96xf32> to vector<2x8xf32>
    %900 = vector.extract_strided_slice %567 {offsets = [0, 88], sizes = [2, 8], strides = [1, 1]} : vector<2x96xf32> to vector<2x8xf32>
    %901 = arith.mulf %892, %895 : vector<2x8xf32>
    %cst_186 = arith.constant dense<0.000000e+00> : vector<2xf32>
    %902 = vector.multi_reduction <add>, %901, %cst_186 [1] : vector<2x8xf32> to vector<2xf32>
    %903 = vector.shape_cast %902 : vector<2xf32> to vector<2x1xf32>
    %904 = arith.mulf %892, %896 : vector<2x8xf32>
    %cst_187 = arith.constant dense<0.000000e+00> : vector<2xf32>
    %905 = vector.multi_reduction <add>, %904, %cst_187 [1] : vector<2x8xf32> to vector<2xf32>
    %906 = vector.shape_cast %905 : vector<2xf32> to vector<2x1xf32>
    %907 = arith.mulf %892, %897 : vector<2x8xf32>
    %cst_188 = arith.constant dense<0.000000e+00> : vector<2xf32>
    %908 = vector.multi_reduction <add>, %907, %cst_188 [1] : vector<2x8xf32> to vector<2xf32>
    %909 = vector.shape_cast %908 : vector<2xf32> to vector<2x1xf32>
    %910 = tpu.concatenate %903, %906, %909 in 1 : vector<2x1xf32>, vector<2x1xf32>, vector<2x1xf32> -> vector<2x3xf32>
    %cst_189 = arith.constant dense<0xFF800000> : vector<2xf32>
    %911 = vector.multi_reduction <maximumf>, %910, %cst_189 [1] : vector<2x3xf32> to vector<2xf32>
    %912 = vector.shape_cast %911 : vector<2xf32> to vector<2x1xf32>
    %913 = vector.broadcast %912 : vector<2x1xf32> to vector<2x3xf32>
    %914 = arith.subf %910, %913 : vector<2x3xf32>
    %915 = math.exp %914 : vector<2x3xf32>
    %cst_190 = arith.constant dense<0.000000e+00> : vector<2xf32>
    %916 = vector.multi_reduction <add>, %915, %cst_190 [1] : vector<2x3xf32> to vector<2xf32>
    %917 = vector.shape_cast %916 : vector<2xf32> to vector<2x1xf32>
    %918 = tpu.reciprocal %917 {approx = true} : vector<2x1xf32> -> vector<2x1xf32>
    %919 = vector.broadcast %918 : vector<2x1xf32> to vector<2x3xf32>
    %920 = arith.mulf %915, %919 : vector<2x3xf32>
    %cst_191 = arith.constant 0.353553385 : f32
    %921 = vector.broadcast %cst_191 : f32 to vector<2x3xf32>
    %922 = arith.mulf %920, %921 : vector<2x3xf32>
    %923 = vector.extract_strided_slice %922 {offsets = [0, 0], sizes = [2, 1], strides = [1, 1]} : vector<2x3xf32> to vector<2x1xf32>
    %924 = vector.broadcast %923 : vector<2x1xf32> to vector<2x8xf32>
    %925 = arith.mulf %924, %898 : vector<2x8xf32>
    %926 = vector.extract_strided_slice %922 {offsets = [0, 1], sizes = [2, 1], strides = [1, 1]} : vector<2x3xf32> to vector<2x1xf32>
    %927 = vector.broadcast %926 : vector<2x1xf32> to vector<2x8xf32>
    %928 = arith.mulf %927, %899 : vector<2x8xf32>
    %929 = arith.addf %925, %928 : vector<2x8xf32>
    %930 = vector.extract_strided_slice %922 {offsets = [0, 2], sizes = [2, 1], strides = [1, 1]} : vector<2x3xf32> to vector<2x1xf32>
    %931 = vector.broadcast %930 : vector<2x1xf32> to vector<2x8xf32>
    %932 = arith.mulf %931, %900 : vector<2x8xf32>
    %933 = arith.addf %929, %932 : vector<2x8xf32>
    %934 = arith.mulf %893, %895 : vector<2x8xf32>
    %cst_192 = arith.constant dense<0.000000e+00> : vector<2xf32>
    %935 = vector.multi_reduction <add>, %934, %cst_192 [1] : vector<2x8xf32> to vector<2xf32>
    %936 = vector.shape_cast %935 : vector<2xf32> to vector<2x1xf32>
    %937 = arith.mulf %893, %896 : vector<2x8xf32>
    %cst_193 = arith.constant dense<0.000000e+00> : vector<2xf32>
    %938 = vector.multi_reduction <add>, %937, %cst_193 [1] : vector<2x8xf32> to vector<2xf32>
    %939 = vector.shape_cast %938 : vector<2xf32> to vector<2x1xf32>
    %940 = arith.mulf %893, %897 : vector<2x8xf32>
    %cst_194 = arith.constant dense<0.000000e+00> : vector<2xf32>
    %941 = vector.multi_reduction <add>, %940, %cst_194 [1] : vector<2x8xf32> to vector<2xf32>
    %942 = vector.shape_cast %941 : vector<2xf32> to vector<2x1xf32>
    %943 = tpu.concatenate %936, %939, %942 in 1 : vector<2x1xf32>, vector<2x1xf32>, vector<2x1xf32> -> vector<2x3xf32>
    %cst_195 = arith.constant dense<0xFF800000> : vector<2xf32>
    %944 = vector.multi_reduction <maximumf>, %943, %cst_195 [1] : vector<2x3xf32> to vector<2xf32>
    %945 = vector.shape_cast %944 : vector<2xf32> to vector<2x1xf32>
    %946 = vector.broadcast %945 : vector<2x1xf32> to vector<2x3xf32>
    %947 = arith.subf %943, %946 : vector<2x3xf32>
    %948 = math.exp %947 : vector<2x3xf32>
    %cst_196 = arith.constant dense<0.000000e+00> : vector<2xf32>
    %949 = vector.multi_reduction <add>, %948, %cst_196 [1] : vector<2x3xf32> to vector<2xf32>
    %950 = vector.shape_cast %949 : vector<2xf32> to vector<2x1xf32>
    %951 = tpu.reciprocal %950 {approx = true} : vector<2x1xf32> -> vector<2x1xf32>
    %952 = vector.broadcast %951 : vector<2x1xf32> to vector<2x3xf32>
    %953 = arith.mulf %948, %952 : vector<2x3xf32>
    %cst_197 = arith.constant 0.353553385 : f32
    %954 = vector.broadcast %cst_197 : f32 to vector<2x3xf32>
    %955 = arith.mulf %953, %954 : vector<2x3xf32>
    %956 = vector.extract_strided_slice %955 {offsets = [0, 0], sizes = [2, 1], strides = [1, 1]} : vector<2x3xf32> to vector<2x1xf32>
    %957 = vector.broadcast %956 : vector<2x1xf32> to vector<2x8xf32>
    %958 = arith.mulf %957, %898 : vector<2x8xf32>
    %959 = vector.extract_strided_slice %955 {offsets = [0, 1], sizes = [2, 1], strides = [1, 1]} : vector<2x3xf32> to vector<2x1xf32>
    %960 = vector.broadcast %959 : vector<2x1xf32> to vector<2x8xf32>
    %961 = arith.mulf %960, %899 : vector<2x8xf32>
    %962 = arith.addf %958, %961 : vector<2x8xf32>
    %963 = vector.extract_strided_slice %955 {offsets = [0, 2], sizes = [2, 1], strides = [1, 1]} : vector<2x3xf32> to vector<2x1xf32>
    %964 = vector.broadcast %963 : vector<2x1xf32> to vector<2x8xf32>
    %965 = arith.mulf %964, %900 : vector<2x8xf32>
    %966 = arith.addf %962, %965 : vector<2x8xf32>
    %967 = arith.mulf %894, %895 : vector<2x8xf32>
    %cst_198 = arith.constant dense<0.000000e+00> : vector<2xf32>
    %968 = vector.multi_reduction <add>, %967, %cst_198 [1] : vector<2x8xf32> to vector<2xf32>
    %969 = vector.shape_cast %968 : vector<2xf32> to vector<2x1xf32>
    %970 = arith.mulf %894, %896 : vector<2x8xf32>
    %cst_199 = arith.constant dense<0.000000e+00> : vector<2xf32>
    %971 = vector.multi_reduction <add>, %970, %cst_199 [1] : vector<2x8xf32> to vector<2xf32>
    %972 = vector.shape_cast %971 : vector<2xf32> to vector<2x1xf32>
    %973 = arith.mulf %894, %897 : vector<2x8xf32>
    %cst_200 = arith.constant dense<0.000000e+00> : vector<2xf32>
    %974 = vector.multi_reduction <add>, %973, %cst_200 [1] : vector<2x8xf32> to vector<2xf32>
    %975 = vector.shape_cast %974 : vector<2xf32> to vector<2x1xf32>
    %976 = tpu.concatenate %969, %972, %975 in 1 : vector<2x1xf32>, vector<2x1xf32>, vector<2x1xf32> -> vector<2x3xf32>
    %cst_201 = arith.constant dense<0xFF800000> : vector<2xf32>
    %977 = vector.multi_reduction <maximumf>, %976, %cst_201 [1] : vector<2x3xf32> to vector<2xf32>
    %978 = vector.shape_cast %977 : vector<2xf32> to vector<2x1xf32>
    %979 = vector.broadcast %978 : vector<2x1xf32> to vector<2x3xf32>
    %980 = arith.subf %976, %979 : vector<2x3xf32>
    %981 = math.exp %980 : vector<2x3xf32>
    %cst_202 = arith.constant dense<0.000000e+00> : vector<2xf32>
    %982 = vector.multi_reduction <add>, %981, %cst_202 [1] : vector<2x3xf32> to vector<2xf32>
    %983 = vector.shape_cast %982 : vector<2xf32> to vector<2x1xf32>
    %984 = tpu.reciprocal %983 {approx = true} : vector<2x1xf32> -> vector<2x1xf32>
    %985 = vector.broadcast %984 : vector<2x1xf32> to vector<2x3xf32>
    %986 = arith.mulf %981, %985 : vector<2x3xf32>
    %cst_203 = arith.constant 0.353553385 : f32
    %987 = vector.broadcast %cst_203 : f32 to vector<2x3xf32>
    %988 = arith.mulf %986, %987 : vector<2x3xf32>
    %989 = vector.extract_strided_slice %988 {offsets = [0, 0], sizes = [2, 1], strides = [1, 1]} : vector<2x3xf32> to vector<2x1xf32>
    %990 = vector.broadcast %989 : vector<2x1xf32> to vector<2x8xf32>
    %991 = arith.mulf %990, %898 : vector<2x8xf32>
    %992 = vector.extract_strided_slice %988 {offsets = [0, 1], sizes = [2, 1], strides = [1, 1]} : vector<2x3xf32> to vector<2x1xf32>
    %993 = vector.broadcast %992 : vector<2x1xf32> to vector<2x8xf32>
    %994 = arith.mulf %993, %899 : vector<2x8xf32>
    %995 = arith.addf %991, %994 : vector<2x8xf32>
    %996 = vector.extract_strided_slice %988 {offsets = [0, 2], sizes = [2, 1], strides = [1, 1]} : vector<2x3xf32> to vector<2x1xf32>
    %997 = vector.broadcast %996 : vector<2x1xf32> to vector<2x8xf32>
    %998 = arith.mulf %997, %900 : vector<2x8xf32>
    %999 = arith.addf %995, %998 : vector<2x8xf32>
    %c0_204 = arith.constant 0 : index
    %c0_205 = arith.constant 0 : index
    %1000 = vector.load %arg21[%c0_204, %c0_205] : memref<32x32xf32, #tpu.memory_space<vmem>>, vector<32x32xf32>
    %c0_206 = arith.constant 0 : index
    %c0_207 = arith.constant 0 : index
    %1001 = vector.load %arg22[%c0_206, %c0_207] : memref<1x32xf32, #tpu.memory_space<vmem>>, vector<1x32xf32>
    %1002 = tpu.concatenate %609, %717, %825, %933 in 1 : vector<2x8xf32>, vector<2x8xf32>, vector<2x8xf32>, vector<2x8xf32> -> vector<2x32xf32>
    %cst_208 = arith.constant dense<0.000000e+00> : vector<2x32xf32>
    %1003 = tpu.matmul %1002, %1000, %cst_208 {dimension_numbers = #tpu.dot_dimension_numbers<[1], [0], [0], [1], [0, 0, 1, 1], [], []>} : vector<2x32xf32>, vector<32x32xf32>, vector<2x32xf32> -> vector<2x32xf32>
    %1004 = vector.broadcast %1001 : vector<1x32xf32> to vector<2x32xf32>
    %1005 = arith.addf %1003, %1004 : vector<2x32xf32>
    %1006 = tpu.concatenate %642, %750, %858, %966 in 1 : vector<2x8xf32>, vector<2x8xf32>, vector<2x8xf32>, vector<2x8xf32> -> vector<2x32xf32>
    %cst_209 = arith.constant dense<0.000000e+00> : vector<2x32xf32>
    %1007 = tpu.matmul %1006, %1000, %cst_209 {dimension_numbers = #tpu.dot_dimension_numbers<[1], [0], [0], [1], [0, 0, 1, 1], [], []>} : vector<2x32xf32>, vector<32x32xf32>, vector<2x32xf32> -> vector<2x32xf32>
    %1008 = vector.broadcast %1001 : vector<1x32xf32> to vector<2x32xf32>
    %1009 = arith.addf %1007, %1008 : vector<2x32xf32>
    %1010 = tpu.concatenate %675, %783, %891, %999 in 1 : vector<2x8xf32>, vector<2x8xf32>, vector<2x8xf32>, vector<2x8xf32> -> vector<2x32xf32>
    %cst_210 = arith.constant dense<0.000000e+00> : vector<2x32xf32>
    %1011 = tpu.matmul %1010, %1000, %cst_210 {dimension_numbers = #tpu.dot_dimension_numbers<[1], [0], [0], [1], [0, 0, 1, 1], [], []>} : vector<2x32xf32>, vector<32x32xf32>, vector<2x32xf32> -> vector<2x32xf32>
    %1012 = vector.broadcast %1001 : vector<1x32xf32> to vector<2x32xf32>
    %1013 = arith.addf %1011, %1012 : vector<2x32xf32>
    %1014 = arith.addf %1005, %14 : vector<2x32xf32>
    %1015 = arith.addf %1009, %254 : vector<2x32xf32>
    %1016 = arith.addf %1013, %494 : vector<2x32xf32>
    %c0_211 = arith.constant 0 : index
    %c0_212 = arith.constant 0 : index
    %1017 = vector.load %arg23[%c0_211, %c0_212] : memref<3x32xf32, #tpu.memory_space<vmem>>, vector<3x32xf32>
    %c0_213 = arith.constant 0 : index
    %c0_214 = arith.constant 0 : index
    %1018 = vector.load %arg24[%c0_213, %c0_214] : memref<3x32xf32, #tpu.memory_space<vmem>>, vector<3x32xf32>
    %cst_215 = arith.constant dense<0.000000e+00> : vector<2xf32>
    %1019 = vector.multi_reduction <add>, %1014, %cst_215 [1] : vector<2x32xf32> to vector<2xf32>
    %1020 = vector.shape_cast %1019 : vector<2xf32> to vector<2x1xf32>
    %cst_216 = arith.constant dense<0.000000e+00> : vector<2xf32>
    %1021 = vector.multi_reduction <add>, %1015, %cst_216 [1] : vector<2x32xf32> to vector<2xf32>
    %1022 = vector.shape_cast %1021 : vector<2xf32> to vector<2x1xf32>
    %cst_217 = arith.constant dense<0.000000e+00> : vector<2xf32>
    %1023 = vector.multi_reduction <add>, %1016, %cst_217 [1] : vector<2x32xf32> to vector<2xf32>
    %1024 = vector.shape_cast %1023 : vector<2xf32> to vector<2x1xf32>
    %cst_218 = arith.constant 0.000000e+00 : f32
    %1025 = vector.broadcast %cst_218 : f32 to vector<2x1xf32>
    %1026 = arith.addf %1025, %1020 : vector<2x1xf32>
    %1027 = arith.addf %1026, %1022 : vector<2x1xf32>
    %1028 = arith.addf %1027, %1024 : vector<2x1xf32>
    %cst_219 = arith.constant 0.010416667 : f32
    %1029 = vector.broadcast %cst_219 : f32 to vector<2x1xf32>
    %1030 = arith.mulf %1028, %1029 : vector<2x1xf32>
    %1031 = vector.broadcast %1030 : vector<2x1xf32> to vector<2x32xf32>
    %1032 = arith.subf %1014, %1031 : vector<2x32xf32>
    %1033 = vector.broadcast %1030 : vector<2x1xf32> to vector<2x32xf32>
    %1034 = arith.subf %1015, %1033 : vector<2x32xf32>
    %1035 = vector.broadcast %1030 : vector<2x1xf32> to vector<2x32xf32>
    %1036 = arith.subf %1016, %1035 : vector<2x32xf32>
    %1037 = arith.mulf %1032, %1032 : vector<2x32xf32>
    %cst_220 = arith.constant dense<0.000000e+00> : vector<2xf32>
    %1038 = vector.multi_reduction <add>, %1037, %cst_220 [1] : vector<2x32xf32> to vector<2xf32>
    %1039 = vector.shape_cast %1038 : vector<2xf32> to vector<2x1xf32>
    %1040 = arith.mulf %1034, %1034 : vector<2x32xf32>
    %cst_221 = arith.constant dense<0.000000e+00> : vector<2xf32>
    %1041 = vector.multi_reduction <add>, %1040, %cst_221 [1] : vector<2x32xf32> to vector<2xf32>
    %1042 = vector.shape_cast %1041 : vector<2xf32> to vector<2x1xf32>
    %1043 = arith.mulf %1036, %1036 : vector<2x32xf32>
    %cst_222 = arith.constant dense<0.000000e+00> : vector<2xf32>
    %1044 = vector.multi_reduction <add>, %1043, %cst_222 [1] : vector<2x32xf32> to vector<2xf32>
    %1045 = vector.shape_cast %1044 : vector<2xf32> to vector<2x1xf32>
    %cst_223 = arith.constant 0.000000e+00 : f32
    %1046 = vector.broadcast %cst_223 : f32 to vector<2x1xf32>
    %1047 = arith.addf %1046, %1039 : vector<2x1xf32>
    %1048 = arith.addf %1047, %1042 : vector<2x1xf32>
    %1049 = arith.addf %1048, %1045 : vector<2x1xf32>
    %cst_224 = arith.constant 0.010416667 : f32
    %1050 = vector.broadcast %cst_224 : f32 to vector<2x1xf32>
    %1051 = arith.mulf %1049, %1050 : vector<2x1xf32>
    %cst_225 = arith.constant 9.99999974E-6 : f32
    %1052 = vector.broadcast %cst_225 : f32 to vector<2x1xf32>
    %1053 = arith.addf %1051, %1052 : vector<2x1xf32>
    %1054 = math.rsqrt %1053 : vector<2x1xf32>
    %1055 = vector.broadcast %1054 : vector<2x1xf32> to vector<2x32xf32>
    %1056 = arith.mulf %1032, %1055 : vector<2x32xf32>
    %1057 = vector.extract_strided_slice %1017 {offsets = [0, 0], sizes = [1, 32], strides = [1, 1]} : vector<3x32xf32> to vector<1x32xf32>
    %1058 = vector.broadcast %1057 : vector<1x32xf32> to vector<2x32xf32>
    %1059 = arith.mulf %1056, %1058 : vector<2x32xf32>
    %1060 = vector.extract_strided_slice %1018 {offsets = [0, 0], sizes = [1, 32], strides = [1, 1]} : vector<3x32xf32> to vector<1x32xf32>
    %1061 = vector.broadcast %1060 : vector<1x32xf32> to vector<2x32xf32>
    %1062 = arith.addf %1059, %1061 : vector<2x32xf32>
    %1063 = vector.broadcast %1054 : vector<2x1xf32> to vector<2x32xf32>
    %1064 = arith.mulf %1034, %1063 : vector<2x32xf32>
    %1065 = vector.extract_strided_slice %1017 {offsets = [1, 0], sizes = [1, 32], strides = [1, 1]} : vector<3x32xf32> to vector<1x32xf32>
    %1066 = vector.broadcast %1065 : vector<1x32xf32> to vector<2x32xf32>
    %1067 = arith.mulf %1064, %1066 : vector<2x32xf32>
    %1068 = vector.extract_strided_slice %1018 {offsets = [1, 0], sizes = [1, 32], strides = [1, 1]} : vector<3x32xf32> to vector<1x32xf32>
    %1069 = vector.broadcast %1068 : vector<1x32xf32> to vector<2x32xf32>
    %1070 = arith.addf %1067, %1069 : vector<2x32xf32>
    %1071 = vector.broadcast %1054 : vector<2x1xf32> to vector<2x32xf32>
    %1072 = arith.mulf %1036, %1071 : vector<2x32xf32>
    %1073 = vector.extract_strided_slice %1017 {offsets = [2, 0], sizes = [1, 32], strides = [1, 1]} : vector<3x32xf32> to vector<1x32xf32>
    %1074 = vector.broadcast %1073 : vector<1x32xf32> to vector<2x32xf32>
    %1075 = arith.mulf %1072, %1074 : vector<2x32xf32>
    %1076 = vector.extract_strided_slice %1018 {offsets = [2, 0], sizes = [1, 32], strides = [1, 1]} : vector<3x32xf32> to vector<1x32xf32>
    %1077 = vector.broadcast %1076 : vector<1x32xf32> to vector<2x32xf32>
    %1078 = arith.addf %1075, %1077 : vector<2x32xf32>
    %c0_226 = arith.constant 0 : index
    %c0_227 = arith.constant 0 : index
    %1079 = vector.load %arg25[%c0_226, %c0_227] : memref<32x32xf32, #tpu.memory_space<vmem>>, vector<32x32xf32>
    %c0_228 = arith.constant 0 : index
    %c0_229 = arith.constant 0 : index
    %1080 = vector.load %arg26[%c0_228, %c0_229] : memref<1x32xf32, #tpu.memory_space<vmem>>, vector<1x32xf32>
    %cst_230 = arith.constant dense<0.000000e+00> : vector<2x32xf32>
    %1081 = tpu.matmul %1062, %1079, %cst_230 {dimension_numbers = #tpu.dot_dimension_numbers<[1], [0], [0], [1], [0, 0, 1, 1], [], []>} : vector<2x32xf32>, vector<32x32xf32>, vector<2x32xf32> -> vector<2x32xf32>
    %1082 = vector.broadcast %1080 : vector<1x32xf32> to vector<2x32xf32>
    %1083 = arith.addf %1081, %1082 : vector<2x32xf32>
    %1084 = arith.addf %1083, %1014 : vector<2x32xf32>
    %cst_231 = arith.constant dense<0.000000e+00> : vector<2x32xf32>
    %1085 = tpu.matmul %1070, %1079, %cst_231 {dimension_numbers = #tpu.dot_dimension_numbers<[1], [0], [0], [1], [0, 0, 1, 1], [], []>} : vector<2x32xf32>, vector<32x32xf32>, vector<2x32xf32> -> vector<2x32xf32>
    %1086 = vector.broadcast %1080 : vector<1x32xf32> to vector<2x32xf32>
    %1087 = arith.addf %1085, %1086 : vector<2x32xf32>
    %1088 = arith.addf %1087, %1015 : vector<2x32xf32>
    %cst_232 = arith.constant dense<0.000000e+00> : vector<2x32xf32>
    %1089 = tpu.matmul %1078, %1079, %cst_232 {dimension_numbers = #tpu.dot_dimension_numbers<[1], [0], [0], [1], [0, 0, 1, 1], [], []>} : vector<2x32xf32>, vector<32x32xf32>, vector<2x32xf32> -> vector<2x32xf32>
    %1090 = vector.broadcast %1080 : vector<1x32xf32> to vector<2x32xf32>
    %1091 = arith.addf %1089, %1090 : vector<2x32xf32>
    %1092 = arith.addf %1091, %1016 : vector<2x32xf32>
    %1093 = tpu.concatenate %1084, %1088, %1092 in 1 : vector<2x32xf32>, vector<2x32xf32>, vector<2x32xf32> -> vector<2x96xf32>
    %c0_233 = arith.constant 0 : index
    %c0_234 = arith.constant 0 : index
    %1094 = vector.load %arg27[%c0_233, %c0_234] : memref<96x32xf32, #tpu.memory_space<vmem>>, vector<96x32xf32>
    %cst_235 = arith.constant dense<0.000000e+00> : vector<2x32xf32>
    %1095 = tpu.matmul %1093, %1094, %cst_235 {dimension_numbers = #tpu.dot_dimension_numbers<[1], [0], [0], [1], [0, 0, 1, 1], [], []>} : vector<2x96xf32>, vector<96x32xf32>, vector<2x32xf32> -> vector<2x32xf32>
    %c0_236 = arith.constant 0 : index
    %c0_237 = arith.constant 0 : index
    %1096 = vector.load %arg28[%c0_236, %c0_237] : memref<1x32xf32, #tpu.memory_space<vmem>>, vector<1x32xf32>
    %1097 = vector.broadcast %1096 : vector<1x32xf32> to vector<2x32xf32>
    %1098 = arith.addf %1095, %1097 : vector<2x32xf32>
    %cst_238 = arith.constant 0.000000e+00 : f32
    %1099 = vector.broadcast %cst_238 : f32 to vector<2x32xf32>
    %1100 = arith.maximumf %1098, %1099 : vector<2x32xf32>
    %c0_239 = arith.constant 0 : index
    %c0_240 = arith.constant 0 : index
    %1101 = vector.load %arg29[%c0_239, %c0_240] : memref<32x2xf32, #tpu.memory_space<vmem>>, vector<32x2xf32>
    %cst_241 = arith.constant dense<0.000000e+00> : vector<2x2xf32>
    %1102 = tpu.matmul %1100, %1101, %cst_241 {dimension_numbers = #tpu.dot_dimension_numbers<[1], [0], [0], [1], [0, 0, 1, 1], [], []>} : vector<2x32xf32>, vector<32x2xf32>, vector<2x2xf32> -> vector<2x2xf32>
    %c0_242 = arith.constant 0 : index
    %c0_243 = arith.constant 0 : index
    %1103 = vector.load %arg30[%c0_242, %c0_243] : memref<1x2xf32, #tpu.memory_space<vmem>>, vector<1x2xf32>
    %1104 = vector.broadcast %1103 : vector<1x2xf32> to vector<2x2xf32>
    %1105 = arith.addf %1102, %1104 : vector<2x2xf32>
    %cst_244 = arith.constant dense<0xFF800000> : vector<2xf32>
    %1106 = vector.multi_reduction <maximumf>, %1105, %cst_244 [1] : vector<2x2xf32> to vector<2xf32>
    %1107 = vector.shape_cast %1106 : vector<2xf32> to vector<2x1xf32>
    %1108 = vector.broadcast %1107 : vector<2x1xf32> to vector<2x2xf32>
    %1109 = arith.subf %1105, %1108 : vector<2x2xf32>
    %1110 = math.exp %1109 : vector<2x2xf32>
    %cst_245 = arith.constant dense<0.000000e+00> : vector<2xf32>
    %1111 = vector.multi_reduction <add>, %1110, %cst_245 [1] : vector<2x2xf32> to vector<2xf32>
    %1112 = vector.shape_cast %1111 : vector<2xf32> to vector<2x1xf32>
    %1113 = tpu.reciprocal %1112 {approx = true} : vector<2x1xf32> -> vector<2x1xf32>
    %1114 = vector.broadcast %1113 : vector<2x1xf32> to vector<2x2xf32>
    %1115 = arith.mulf %1110, %1114 : vector<2x2xf32>
    %c0_246 = arith.constant 0 : index
    %c0_247 = arith.constant 0 : index
    %1116 = vector.load %arg31[%c0_246, %c0_247] : memref<2x2xf32, #tpu.memory_space<vmem>>, vector<2x2xf32>
    tpu.vector_store %arg31[%c0_246, %c0_247], %1115 {strides = array<i32>} : memref<2x2xf32, #tpu.memory_space<vmem>>, vector<2x2xf32>,
    return
  }
}

</mosaic_0001>

<bundles_post_ra>
// kernel: run_pallas.1
= control target key start
LH: loop header
LB: loop body
LE: loop exit
PB: predicated region body
PF: predicated region fallthrough
CT: control target
= control target key end

     0   :  { %s6097_s6 = smov 1   ;;  %s6098_s10 = smov 2   ;;  %s7245_s0 = inlined_call_operand.smem [shape: u32[32], index: -1, kind: input, shape index: {}] }
   0x1   :  { %s6170_s5 = sld [smem:[%s7245_s0]]   ;;  %s6099_s14 = smov 3  }
   0x2   :  { %s6175_s9 = sld [smem:[%s7245_s0 + %s6097_s6]]   ;;  %s6100_s18 = smov 4  }
   0x3   :  { %s6180_s13 = sld [smem:[%s7245_s0 + %s6098_s10]]   ;;  %s6101_s22 = smov 5  }
   0x4   :  { %s6185_s17 = sld [smem:[%s7245_s0 + %s6099_s14]]   ;;  %s6102_s26 = smov 6  }
   0x5   :  { %s6190_s21 = sld [smem:[%s7245_s0 + %s6100_s18]]   ;;  %s6103_s30 = smov 7  }
   0x6   :  { %s6195_s25 = sld [smem:[%s7245_s0 + %s6101_s22]]   ;;  %s6104_s4 = smov 8  }
   0x7   :  { %s6200_s29 = sld [smem:[%s7245_s0 + %s6102_s26]]   ;;  %s6105_s10 = smov 9  }
   0x8   :  { %7256 = sst [smem:[#allocation44_spill]] %s6175_s9  ;;  %s6106_s15 = smov 10  }
   0x9   :  { %s6205_s3 = sld [smem:[%s7245_s0 + %s6103_s30]]   ;;  %s6107_s20 = smov 11  }
   0xa   :  { %s6210_s8 = sld [smem:[%s7245_s0 + %s6104_s4]]   ;;  %s6108_s26 = smov 12  }
   0xb   :  { %7257 = sst [smem:[#allocation45_spill]] %s6190_s21  ;;  %s6109_s1 = smov 13  }
   0xc   :  { %7258 = sst [smem:[#allocation46_spill]] %s6195_s25  ;;  %s6110_s7 = smov 14  }
   0xd   :  { %s6215_s14 = sld [smem:[%s7245_s0 + %s6105_s10]]   ;;  %s6112_s22 = smov 16  }
   0xe   :  { %s6220_s19 = sld [smem:[%s7245_s0 + %s6106_s15]]   ;;  %s6111_s15 = smov 15  }
   0xf   :  { %7259 = sst [smem:[#allocation47_spill]] %s6205_s3  ;;  %s6113_s28 = smov 17  }
  0x10   :  { %7260 = sst [smem:[#allocation48_spill]] %s6210_s8 }
  0x11   :  { %s6225_s24 = sld [smem:[%s7245_s0 + %s6107_s20]]  }
  0x12   :  { %s6230_s30 = sld [smem:[%s7245_s0 + %s6108_s26]]  }
  0x13   :  { %s6235_s6 = sld [smem:[%s7245_s0 + %s6109_s1]]  }
  0x14   :  { %7261 = sst [smem:[#allocation49_spill]] %s6220_s19 }
  0x15   :  { %s6240_s12 = sld [smem:[%s7245_s0 + %s6110_s7]]   ;;  %s6114_s7 = smov 18  }
  0x16   :  { %s6245_s20 = sld [smem:[%s7245_s0 + %s6111_s15]]   ;;  %s6115_s15 = smov 19  }
  0x17   :  { %s6250_s27 = sld [smem:[%s7245_s0 + %s6112_s22]]   ;;  %s6116_s22 = smov 20  }
  0x18   :  { %7262 = sst [smem:[#allocation50_spill]] %s6230_s30 }
  0x19   :  { %7263 = sst [smem:[#allocation51_spill]] %s6235_s6 }
  0x1a   :  { %s6255_s4 = sld [smem:[%s7245_s0 + %s6113_s28]]   ;;  %s6117_s28 = smov 21  }
  0x1b   :  { %s6260_s6 = sld [smem:[%s7245_s0 + %s6114_s7]]   ;;  %s6118_s7 = smov 22  }
  0x1c   :  { %7264 = sst [smem:[#allocation52_spill]] %s6245_s20 }
  0x1d   :  { %s6265_s20 = sld [smem:[%s7245_s0 + %s6115_s15]]   ;;  %s6119_s15 = smov 23  }
  0x1e   :  { %s6270_s19 = sld [smem:[%s7245_s0 + %s6116_s22]]   ;;  %s6120_s22 = smov 24  }
  0x1f   :  { %s6275_s30 = sld [smem:[%s7245_s0 + %s6117_s28]]   ;;  %s6121_s28 = smov 25  }
  0x20   :  { %s6280_s21 = sld [smem:[%s7245_s0 + %s6118_s7]]   ;;  %s6122_s7 = smov 26  }
  0x21   :  { %s6290_s8 = sld [smem:[%s7245_s0 + %s6120_s22]]   ;;  %s6124_s22 = smov 28  }
  0x22   :  { %s6295_s9 = sld [smem:[%s7245_s0 + %s6121_s28]]   ;;  %s6125_s28 = smov 29  }
  0x23   :  { %7265 = sst [smem:[#allocation53_spill]] %s6265_s20 }
  0x24   :  { %s6285_s20 = sld [smem:[%s7245_s0 + %s6119_s15]]   ;;  %s6123_s15 = smov 27  }
  0x25   :  { %s6300_s3 = sld [smem:[%s7245_s0 + %s6122_s7]]   ;;  %s6126_s7 = smov 30  }
  0x26   :  { %7266 = sst [smem:[#allocation54_spill]] %s6280_s21 }
  0x27   :  { %7267 = sst [smem:[#allocation55_spill]] %s6290_s8 }
  0x28   :  { %s6305_s25 = sld [smem:[%s7245_s0 + %s6123_s15]]   ;;  %s6127_s15 = smov 31  }
  0x29   :  { %s6310_s8 = sld [smem:[%s7245_s0 + %s6124_s22]]  }
  0x2a   :  { %s6315_s21 = sld [smem:[%s7245_s0 + %s6125_s28]]  }
  0x2b   :  { %7268 = sst [smem:[#allocation56_spill]] %s6300_s3 }
  0x2c   :  { %s6320_s3 = sld [smem:[%s7245_s0 + %s6126_s7]]  }
  0x2e   :  { %7269 = sst [smem:[#allocation57_spill]] %s6305_s25 }
  0x2f   :  { %s6325_s25 = sld [smem:[%s7245_s0 + %s6127_s15]]  }
  0x30   :  { %68 = vsyncpa [#allocation3], 0 }
  0x31   :  { %69 = vsyncpa [#allocation6], 0 }
  0x32   :  { %70 = vsyncpa [#allocation9], 0 }
  0x33   :  { %71 = vsyncpa [#allocation12], 0 }
  0x34   :  { %72 = vsyncpa [#allocation15], 0 }
  0x35   :  { %73 = vsyncpa [#allocation18], 0 }
  0x36   :  { %74 = vsyncpa [#allocation21], 0 }
  0x37   :  { %75 = vsyncpa [#allocation24], 0 }
  0x38   :  { %76 = vsyncpa [#allocation27], 0 }
  0x39   :  { %77 = vsyncpa [#allocation30], 0 }
  0x3a   :  { %78 = vsyncpa [#allocation4], 0  ;;  %s6128_s22 = smov [#allocation5]  }
  0x3b   :  { %s96_s23 = sshll.u32 %s6128_s22, 4  ;;  %s97_s23 = int_to_ptr.vmem [resolvable:$true] %s96_s23 }
  0x3c   :  { %s5683_s26 = scalar_lea.vmem %s97_s23, 256  ;;  %p5688_p1 = scmp.lt.s32.totalorder %s97_s23, %s97_s23 }
  0x3d   :  { %p5684_p0 = scmp.ne.s32.totalorder %s97_s23, %s5683_s26  ;;  %p5689_p2 = scmp.lt.s32.totalorder %s5683_s26, %s5683_s26 }
  0x3f   :  { %p5690_p3 = por %p5689_p2, %p5688_p1 }
  0x41   :  { %p5691_p4 = pnand %p5690_p3, %p5684_p0 }
  0x43   :  { %5694 = shalt.err (!%p5691_p4)
}
  0x44   :  { %s6129_s0 = smov 128   ;;  %s6130_s28 = smov 8  }
  0x45   :  { %102 = dma.hbm_to_vmem [thread:$0]  %s6180_s13, 256, %s97_s23, [#allocation6], %s6129_s0, %s6129_s0, %s6130_s28  }
  0x46   :  { %s6131_s1 = smov [#allocation8]   ;;  %s6132_s7 = smov [#allocation11]  }
  0x47   :  { %s125_s2 = sshll.u32 %s6131_s1, 4  ;;  %s151_s10 = sshll.u32 %s6132_s7, 4  ;;  %s126_s2 = int_to_ptr.vmem [resolvable:$true] %s125_s2  ;;  %s152_s10 = int_to_ptr.vmem [resolvable:$true] %s151_s10 }
  0x48   :  { %s5703_s11 = scalar_lea.vmem %s126_s2, 16  ;;  %s5707_s15 = scalar_lea.vmem %s126_s2, 32 }
  0x49   :  { %p5704_p5 = scmp.ne.s32.totalorder %s126_s2, %s5703_s11  ;;  %p5708_p6 = scmp.lt.s32.totalorder %s126_s2, %s126_s2 }
  0x4a   :  { %p5709_p7 = scmp.lt.s32.totalorder %s5707_s15, %s5703_s11 }
  0x4c   :  { %p5710_p8 = por %p5709_p7, %p5708_p6 }
  0x4e   :  { %p5711_p9 = pnand %p5710_p8, %p5704_p5 }
  0x50   :  { %5714 = shalt.err (!%p5711_p9)
}
  0x51   :  { %128 = dma.hbm_to_vmem [thread:$0]  %s6200_s29, 16, %s126_s2, [#allocation9]  }
  0x52   :  { %s5723_s16 = scalar_lea.vmem %s152_s10, 16  ;;  %s5727_s18 = scalar_lea.vmem %s152_s10, 32 }
  0x53   :  { %p5724_p10 = scmp.ne.s32.totalorder %s152_s10, %s5723_s16  ;;  %p5728_p11 = scmp.lt.s32.totalorder %s152_s10, %s152_s10 }
  0x54   :  { %p5729_p12 = scmp.lt.s32.totalorder %s5727_s18, %s5723_s16 }
  0x56   :  { %p5730_p13 = por %p5729_p12, %p5728_p11 }
  0x58   :  { %p5731_p0 = pnand %p5730_p13, %p5724_p10 }
  0x5a   :  { %5734 = shalt.err (!%p5731_p0)
}
  0x5b   :  { %154 = dma.hbm_to_vmem [thread:$0]  %s6225_s24, 16, %s152_s10, [#allocation12]  }
  0x5c   :  { %s6133_s13 = smov [#allocation14]   ;;  %s6134_s23 = smov [#allocation17]  }
  0x5d   :  { %s177_s22 = sshll.u32 %s6133_s13, 4  ;;  %s197_s26 = sshll.u32 %s6134_s23, 4  ;;  %s178_s22 = int_to_ptr.vmem [resolvable:$true] %s177_s22  ;;  %s198_s26 = int_to_ptr.vmem [resolvable:$true] %s197_s26 }
  0x5e   :  { %s5743_s1 = scalar_lea.vmem %s178_s22, 16  ;;  %s5747_s7 = scalar_lea.vmem %s178_s22, 32 }
  0x5f   :  { %p5744_p1 = scmp.ne.s32.totalorder %s178_s22, %s5743_s1  ;;  %p5748_p2 = scmp.lt.s32.totalorder %s178_s22, %s178_s22 }
  0x60   :  { %p5749_p3 = scmp.lt.s32.totalorder %s5747_s7, %s5743_s1 }
  0x62   :  { %p5750_p4 = por %p5749_p3, %p5748_p2 }
  0x64   :  { %p5751_p5 = pnand %p5750_p4, %p5744_p1 }
  0x66   :  { %5754 = shalt.err (!%p5751_p5)
}
  0x67   :  { %180 = dma.hbm_to_vmem [thread:$0]  %s6250_s27, 16, %s178_s22, [#allocation15]  }
  0x68   :  { %s5763_s29 = scalar_lea.vmem %s198_s26, 64  ;;  %p5768_p7 = scmp.lt.s32.totalorder %s198_s26, %s198_s26 }
  0x69   :  { %p5764_p6 = scmp.ne.s32.totalorder %s198_s26, %s5763_s29  ;;  %p5769_p8 = scmp.lt.s32.totalorder %s5763_s29, %s5763_s29 }
  0x6b   :  { %p5770_p9 = por %p5769_p8, %p5768_p7 }
  0x6d   :  { %p5771_p10 = pnand %p5770_p9, %p5764_p6 }
  0x6f   :  { %5774 = shalt.err (!%p5771_p10)
}
  0x70   :  { %200 = dma.hbm_to_vmem [thread:$0]  %s6260_s6, 64, %s198_s26, [#allocation18]  }
  0x71   :  { %s6135_s24 = smov [#allocation20]   ;;  %s6136_s10 = smov [#allocation23]  }
  0x72   :  { %s218_s2 = sshll.u32 %s6135_s24, 4  ;;  %s241_s11 = sshll.u32 %s6136_s10, 4  ;;  %s219_s2 = int_to_ptr.vmem [resolvable:$true] %s218_s2  ;;  %s242_s11 = int_to_ptr.vmem [resolvable:$true] %s241_s11 }
  0x73   :  { %s5783_s15 = scalar_lea.vmem %s219_s2, 512  ;;  %p5788_p12 = scmp.lt.s32.totalorder %s219_s2, %s219_s2 }
  0x74   :  { %p5784_p11 = scmp.ne.s32.totalorder %s219_s2, %s5783_s15  ;;  %p5789_p13 = scmp.lt.s32.totalorder %s5783_s15, %s5783_s15 }
  0x76   :  { %p5790_p0 = por %p5789_p13, %p5788_p12 }
  0x78   :  { %p5791_p1 = pnand %p5790_p0, %p5784_p11 }
  0x7a   :  { %5794 = shalt.err (!%p5791_p1)
}
  0x7b   :  { %224 = dma.hbm_to_vmem [thread:$0]  %s6275_s30, 512, %s219_s2, [#allocation21], %s6129_s0, %s6129_s0, %s6130_s28  }
  0x7c   :  { %s5803_s27 = scalar_lea.vmem %s242_s11, 64  ;;  %p5808_p3 = scmp.lt.s32.totalorder %s242_s11, %s242_s11 }
  0x7d   :  { %p5804_p2 = scmp.ne.s32.totalorder %s242_s11, %s5803_s27  ;;  %p5809_p4 = scmp.lt.s32.totalorder %s5803_s27, %s5803_s27 }
  0x7f   :  { %p5810_p5 = por %p5809_p4, %p5808_p3 }
  0x81   :  { %p5811_p6 = pnand %p5810_p5, %p5804_p2 }
  0x83   :  { %5814 = shalt.err (!%p5811_p6)
}
  0x84   :  { %244 = dma.hbm_to_vmem [thread:$0]  %s6285_s20, 64, %s242_s11, [#allocation24]  }
  0x85   :  { %s6137_s6 = smov [#allocation26]   ;;  %s6138_s18 = smov [#allocation29]  }
  0x86   :  { %s260_s16 = sshll.u32 %s6137_s6, 4  ;;  %s285_s13 = sshll.u32 %s6138_s18, 4  ;;  %s261_s16 = int_to_ptr.vmem [resolvable:$true] %s260_s16  ;;  %s286_s13 = int_to_ptr.vmem [resolvable:$true] %s285_s13 }
  0x87   :  { %s5823_s22 = scalar_lea.vmem %s261_s16, 512  ;;  %p5828_p8 = scmp.lt.s32.totalorder %s261_s16, %s261_s16 }
  0x88   :  { %p5824_p7 = scmp.ne.s32.totalorder %s261_s16, %s5823_s22  ;;  %p5829_p9 = scmp.lt.s32.totalorder %s5823_s22, %s5823_s22 }
  0x8a   :  { %p5830_p10 = por %p5829_p9, %p5828_p8 }
  0x8c   :  { %p5831_p11 = pnand %p5830_p10, %p5824_p7 }
  0x8e   :  { %5834 = shalt.err (!%p5831_p11)
}
  0x8f   :  { %266 = dma.hbm_to_vmem [thread:$0]  %s6295_s9, 512, %s261_s16, [#allocation27], %s6129_s0, %s6129_s0, %s6130_s28  }
  0x90   :  { %s5843_s30 = scalar_lea.vmem %s286_s13, 16  ;;  %s5847_s20 = scalar_lea.vmem %s286_s13, 32 }
  0x91   :  { %p5844_p12 = scmp.ne.s32.totalorder %s286_s13, %s5843_s30  ;;  %p5848_p13 = scmp.lt.s32.totalorder %s286_s13, %s286_s13 }
  0x92   :  { %p5849_p0 = scmp.lt.s32.totalorder %s5847_s20, %s5843_s30 }
  0x94   :  { %p5850_p1 = por %p5849_p0, %p5848_p13 }
  0x96   :  { %p5851_p2 = pnand %p5850_p1, %p5844_p12 }
  0x98   :  { %5854 = shalt.err (!%p5851_p2)
}
  0x99   :  { %288 = dma.hbm_to_vmem [thread:$0]  %s6310_s8, 16, %s286_s13, [#allocation30]  }
  0x9a   :  { %s6139_s23 = smov [#allocation2]   ;;  %s6140_s1 = smov [#allocation7]  }
  0x9b   :  { %s85_s26 = sshll.u32 %s6139_s23, 4  ;;  %s108_s7 = sshll.u32 %s6140_s1, 4  ;;  %s86_s26 = int_to_ptr.vmem [resolvable:$true] %s85_s26  ;;  %s109_s7 = int_to_ptr.vmem [resolvable:$true] %s108_s7 }
  0x9c   :  { %s5863_s29 = scalar_lea.vmem %s86_s26, 192  ;;  %p5868_p4 = scmp.lt.s32.totalorder %s86_s26, %s86_s26 }
  0x9d   :  { %p5864_p3 = scmp.ne.s32.totalorder %s86_s26, %s5863_s29  ;;  %p5869_p5 = scmp.lt.s32.totalorder %s5863_s29, %s5863_s29 }
  0x9f   :  { %p5870_p6 = por %p5869_p5, %p5868_p4 }
  0xa1   :  { %p5871_p7 = pnand %p5870_p6, %p5864_p3 }
  0xa3   :  { %5874 = shalt.err (!%p5871_p7)
}
  0xa4   :  { %88 = dma.hbm_to_vmem [thread:$0]  %s6170_s5, 192, %s86_s26, [#allocation3]  }
  0xa5   :  { %s5883_s9 = scalar_lea.vmem %s109_s7, 12288  ;;  %p5888_p9 = scmp.lt.s32.totalorder %s109_s7, %s109_s7 }
  0xa6   :  { %p5884_p8 = scmp.ne.s32.totalorder %s109_s7, %s5883_s9  ;;  %p5889_p10 = scmp.lt.s32.totalorder %s5883_s9, %s5883_s9 }
  0xa8   :  { %p5890_p11 = por %p5889_p10, %p5888_p9 }
  0xaa   :  { %p5891_p12 = pnand %p5890_p11, %p5884_p8 }
  0xac   :  { %5894 = shalt.err (!%p5891_p12)
}
  0xad   :  { %114 = dma.hbm_to_vmem [thread:$0]  %s6185_s17, 12288, %s109_s7, [#allocation6], %s6129_s0, %s6129_s0, %s6130_s28  }
  0xae   :  { %s6141_s8 = smov [#allocation10]   ;;  %s6142_s2 = smov [#allocation13]  }
  0xaf   :  { %s139_s24 = sshll.u32 %s6141_s8, 4  ;;  %s165_s10 = sshll.u32 %s6142_s2, 4  ;;  %s140_s24 = int_to_ptr.vmem [resolvable:$true] %s139_s24  ;;  %s166_s10 = int_to_ptr.vmem [resolvable:$true] %s165_s10 }
  0xb0   :  { %s5903_s11 = scalar_lea.vmem %s140_s24, 16  ;;  %s5907_s5 = scalar_lea.vmem %s140_s24, 32 }
  0xb1   :  { %p5904_p13 = scmp.ne.s32.totalorder %s140_s24, %s5903_s11  ;;  %p5908_p0 = scmp.lt.s32.totalorder %s140_s24, %s140_s24 }
  0xb2   :  { %p5909_p1 = scmp.lt.s32.totalorder %s5907_s5, %s5903_s11 }
  0xb4   :  { %p5910_p2 = por %p5909_p1, %p5908_p0 }
  0xb6   :  { %p5911_p3 = pnand %p5910_p2, %p5904_p13 }
  0xb8   :  { %5914 = shalt.err (!%p5911_p3)
}
  0xb9   :  { %142 = dma.hbm_to_vmem [thread:$0]  %s6215_s14, 16, %s140_s24, [#allocation9]  }
  0xba   :  { %s5923_s15 = scalar_lea.vmem %s166_s10, 16  ;;  %s5927_s27 = scalar_lea.vmem %s166_s10, 32 }
  0xbb   :  { %p5924_p4 = scmp.ne.s32.totalorder %s166_s10, %s5923_s15  ;;  %p5928_p5 = scmp.lt.s32.totalorder %s166_s10, %s166_s10 }
  0xbc   :  { %p5929_p6 = scmp.lt.s32.totalorder %s5927_s27, %s5923_s15 }
  0xbe   :  { %p5930_p7 = por %p5929_p6, %p5928_p5 }
  0xc0   :  { %p5931_p8 = pnand %p5930_p7, %p5924_p4 }
  0xc2   :  { %5934 = shalt.err (!%p5931_p8)
}
  0xc3   :  { %168 = dma.hbm_to_vmem [thread:$0]  %s6240_s12, 16, %s166_s10, [#allocation12]  }
  0xc4   :  { %s6143_s17 = smov [#allocation16]   ;;  %s6144_s28 = smov [#allocation19]  }
  0xc5   :  { %s187_s0 = sshll.u32 %s6143_s17, 4  ;;  %s209_s6 = sshll.u32 %s6144_s28, 4  ;;  %s188_s0 = int_to_ptr.vmem [resolvable:$true] %s187_s0  ;;  %s210_s6 = int_to_ptr.vmem [resolvable:$true] %s209_s6 }
  0xc6   :  { %s5943_s16 = scalar_lea.vmem %s188_s0, 64  ;;  %p5948_p10 = scmp.lt.s32.totalorder %s188_s0, %s188_s0 }
  0xc7   :  { %p5944_p9 = scmp.ne.s32.totalorder %s188_s0, %s5943_s16  ;;  %p5949_p11 = scmp.lt.s32.totalorder %s5943_s16, %s5943_s16 }
  0xc9   :  { %p5950_p12 = por %p5949_p11, %p5948_p10 }
  0xcb   :  { %p5951_p13 = pnand %p5950_p12, %p5944_p9 }
  0xcd   :  { %5954 = shalt.err (!%p5951_p13)
}
  0xce   :  { %190 = dma.hbm_to_vmem [thread:$0]  %s6255_s4, 64, %s188_s0, [#allocation15]  }
  0xcf   :  { %s5963_s14 = scalar_lea.vmem %s210_s6, 16  ;;  %s5967_s18 = scalar_lea.vmem %s210_s6, 32 }
  0xd0   :  { %p5964_p0 = scmp.ne.s32.totalorder %s210_s6, %s5963_s14  ;;  %p5968_p1 = scmp.lt.s32.totalorder %s210_s6, %s210_s6 }
  0xd1   :  { %p5969_p2 = scmp.lt.s32.totalorder %s5967_s18, %s5963_s14 }
  0xd3   :  { %p5970_p3 = por %p5969_p2, %p5968_p1 }
  0xd5   :  { %p5971_p4 = pnand %p5970_p3, %p5964_p0 }
  0xd7   :  { %5974 = shalt.err (!%p5971_p4)
}
  0xd8   :  { %212 = dma.hbm_to_vmem [thread:$0]  %s6270_s19, 16, %s210_s6, [#allocation18]  }
  0xd9   :  { %s6145_s12 = smov [#allocation22]   ;;  %s6146_s22 = smov [#allocation25]  }
  0xda   :  { %s231_s13 = sshll.u32 %s6145_s12, 4  ;;  %s251_s30 = sshll.u32 %s6146_s22, 4  ;;  %s232_s13 = int_to_ptr.vmem [resolvable:$true] %s231_s13  ;;  %s252_s30 = int_to_ptr.vmem [resolvable:$true] %s251_s30 }
  0xdb   :  { %s5983_s20 = scalar_lea.vmem %s232_s13, 16  ;;  %s5987_s23 = scalar_lea.vmem %s232_s13, 32 }
  0xdc   :  { %p5984_p5 = scmp.ne.s32.totalorder %s232_s13, %s5983_s20  ;;  %p5988_p6 = scmp.lt.s32.totalorder %s232_s13, %s232_s13 }
  0xdd   :  { %p5989_p7 = scmp.lt.s32.totalorder %s5987_s23, %s5983_s20 }
  0xdf   :  { %p5990_p8 = por %p5989_p7, %p5988_p6 }
  0xe1   :  { %p5991_p9 = pnand %p5990_p8, %p5984_p5 }
  0xe3   :  { %5994 = shalt.err (!%p5991_p9)
}
  0xe4   :  { %s7270_s4 = sld [smem:[#allocation54_spill]]  ;;  %s6003_s26 = scalar_lea.vmem %s252_s30, 64 }
  0xe5   :  { %p6004_p10 = scmp.ne.s32.totalorder %s252_s30, %s6003_s26  ;;  %p6008_p11 = scmp.lt.s32.totalorder %s252_s30, %s252_s30 }
  0xe6   :  { %p6009_p12 = scmp.lt.s32.totalorder %s6003_s26, %s6003_s26 }
  0xe8   :  { %p6010_p13 = por %p6009_p12, %p6008_p11 }
  0xea   :  { %234 = dma.hbm_to_vmem [thread:$0]  %s7270_s4, 16, %s232_s13, [#allocation21]  }
  0xeb   :  { %p6011_p0 = pnand %p6010_p13, %p6004_p10 }
  0xed   :  { %6014 = shalt.err (!%p6011_p0)
}
  0xee   :  { %s7271_s19 = sld [smem:[#allocation55_spill]]  ;;  %s6147_s1 = smov [#allocation28]  }
  0xef   :  { %s273_s7 = sshll.u32 %s6147_s1, 4  ;;  %s6148_s29 = smov [#allocation31]   ;;  %s274_s7 = int_to_ptr.vmem [resolvable:$true] %s273_s7 }
  0xf0   :  { %s297_s9 = sshll.u32 %s6148_s29, 4  ;;  %s6023_s8 = scalar_lea.vmem %s274_s7, 16  ;;  %s298_s9 = int_to_ptr.vmem [resolvable:$true] %s297_s9 }
  0xf1   :  { %p6024_p1 = scmp.ne.s32.totalorder %s274_s7, %s6023_s8  ;;  %s6027_s24 = scalar_lea.vmem %s274_s7, 32 }
  0xf2   :  { %p6028_p2 = scmp.lt.s32.totalorder %s274_s7, %s274_s7  ;;  %p6029_p3 = scmp.lt.s32.totalorder %s6027_s24, %s6023_s8 }
  0xf4   :  { %254 = dma.hbm_to_vmem [thread:$0]  %s7271_s19, 64, %s252_s30, [#allocation24]  }
  0xf5   :  { %p6030_p4 = por %p6029_p3, %p6028_p2 }
  0xf7   :  { %p6031_p5 = pnand %p6030_p4, %p6024_p1 }
  0xf9   :  { %6034 = shalt.err (!%p6031_p5)
}
  0xfa   :  { %s7272_s2 = sld [smem:[#allocation56_spill]]  ;;  %s6043_s10 = scalar_lea.vmem %s298_s9, 16 }
  0xfb   :  { %p6044_p6 = scmp.ne.s32.totalorder %s298_s9, %s6043_s10  ;;  %s6047_s11 = scalar_lea.vmem %s298_s9, 32 }
  0xfc   :  { %p6048_p7 = scmp.lt.s32.totalorder %s298_s9, %s298_s9  ;;  %p6049_p8 = scmp.lt.s32.totalorder %s6047_s11, %s6043_s10 }
  0xfe   :  { %p6050_p9 = por %p6049_p8, %p6048_p7 }
 0x100   :  { %276 = dma.hbm_to_vmem [thread:$0]  %s7272_s2, 16, %s274_s7, [#allocation27]  }
 0x101   :  { %p6051_p10 = pnand %p6050_p9, %p6044_p6 }
 0x103   :  { %6054 = shalt.err (!%p6051_p10)
}
 0x104   :  { %300 = dma.hbm_to_vmem [thread:$0]  %s6320_s3, 16, %s298_s9, [#allocation30]  }
 0x105   :  { %6075 = dma.done.wait [#allocation3], 192  }
 0x106   :  { %6076 = vsyncadd [#allocation3], 4294967104 }
 0x107   :  { %6077 = dma.done.wait [#allocation6], 12544  }
 0x108   :  { %6078 = vsyncadd [#allocation6], 4294954752 }
 0x109   :  { %6079 = dma.done.wait [#allocation9], 32  }
 0x10a   :  { %6080 = vsyncadd [#allocation9], 4294967264 }
 0x10b   :  { %6081 = dma.done.wait [#allocation12], 32  }
 0x10c   :  { %6082 = vsyncadd [#allocation12], 4294967264 }
 0x10d   :  { %6083 = dma.done.wait [#allocation15], 80  }
 0x10e   :  { %6084 = vsyncadd [#allocation15], 4294967216 }
 0x10f   :  { %6085 = dma.done.wait [#allocation18], 80  }
 0x110   :  { %6086 = vsyncadd [#allocation18], 4294967216 }
 0x111   :  { %6087 = dma.done.wait [#allocation21], 528  }
 0x112   :  { %6088 = vsyncadd [#allocation21], 4294966768 }
 0x113   :  { %6089 = dma.done.wait [#allocation24], 128  }
 0x114   :  { %6090 = vsyncadd [#allocation24], 4294967168 }
 0x115   :  { %6091 = dma.done.wait [#allocation27], 528  }
 0x116   :  { %6092 = vsyncadd [#allocation27], 4294966768 }
 0x117   :  { %6093 = dma.done.wait [#allocation30], 32  }
 0x118   :  { %6094 = vsyncadd [#allocation30], 4294967264  ;;  %v391_v0 = vld [vmem:[#allocation7 + $0xf8] sm:$0xff]  ;;  %v390_v2 = vld [vmem:[#allocation7 + $0xf0] sm:$0xff]  ;;  %v6149_v27 = vmov 1983009808   ;;  %v469_v29 = vlaneseq }
 0x119   :  { %v375_v1 = vld [vmem:[#allocation7 + $0x78] sm:$0xff]  ;;  %4693 = vmatprep.subr.mxu0 %v391_v0  ;;  %v374_v4 = vld [vmem:[#allocation7 + $0x70] sm:$0xff]  ;;  %v389_v6 = vld [vmem:[#allocation7 + $0xe8] sm:$0xff]  ;;  %v467_v28 = vunpack.c.l.s4 %v6149_v27  ;;  %s7273_s3 = sld [smem:[#allocation46_spill]]  ;;  %vm827_vm0 = vcmask 1041408   ;;  %vm6151_vm1 = vmmov 0  }
 0x11a   :  { %v423_v3 = vld [vmem:[#allocation7 + $0x1f8] sm:$0xff]  ;;  %4694 = vmatpush3.msra.mxu0 %v375_v1  ;;  %v422_v7 = vld [vmem:[#allocation7 + $0x1f0] sm:$0xff]  ;;  %v373_v8 = vld [vmem:[#allocation7 + $0x68] sm:$0xff]  ;;  %v6358_v39 = vshrl.u32 %v469_v29, 7  ;;  %s7274_s5 = sld [smem:[#allocation47_spill]]  ;;  %vm820_vm2 = vcmask 605184  }
 0x11b   :  { %v407_v5 = vld [vmem:[#allocation7 + $0x178] sm:$0xff]  ;;  %4728 = vmatprep.subr.mxu1 %v423_v3  ;;  %4695 = vmatprep.subr.mxu0 %v390_v2  ;;  %v406_v9 = vld [vmem:[#allocation7 + $0x170] sm:$0xff]  ;;  %v421_v10 = vld [vmem:[#allocation7 + $0x1e8] sm:$0xff]  ;;  %v468_v38 = vunpack.c.0.s8 %v467_v28  ;;  %s7275_s15 = sld [smem:[#allocation44_spill]]  ;;  %s6152_s0 = smov 64   ;;  %vm910_vm3 = vcmask 261120  }
 0x11c   :  { %4729 = vmatpush3.msra.mxu1 %v407_v5  ;;  %4696 = vmatpush3.msra.mxu0 %v374_v4  ;;  %v388_v11 = vld [vmem:[#allocation7 + $0xe0] sm:$0xff]  ;;  %v405_v12 = vld [vmem:[#allocation7 + $0x168] sm:$0xff]  ;;  %v387_v15 = vld [vmem:[#allocation7 + $0xd8] sm:$0xff]  ;;  %s7276_s27 = sld [smem:[#allocation48_spill]]  ;;  %s6153_s28 = smov 32   ;;  %vm1863_vm4 = vcmask 1046528  }
 0x11d   :  { %4730 = vmatprep.subr.mxu1 %v422_v7  ;;  %4697 = vmatprep.subr.mxu0 %v389_v6  ;;  %v372_v13 = vld [vmem:[#allocation7 + $0x60] sm:$0xff]  ;;  %v371_v17 = vld [vmem:[#allocation7 + $0x58] sm:$0xff]  ;;  %v386_v19 = vld [vmem:[#allocation7 + $0xd0] sm:$0xff]  ;;  %v471_v48 = vsub.s32 %v468_v38, %v6358_v39  ;;  %s7277_s17 = sld [smem:[#allocation45_spill]]  ;;  %vm1856_vm5 = vcmask 384000   ;;  %vm2875_vm6 = vcmask 254976  }
 0x11e   :  { %4731 = vmatpush3.msra.mxu1 %v406_v9  ;;  %v420_v14 = vld [vmem:[#allocation7 + $0x1e0] sm:$0xff]  ;;  %4698 = vmatpush3.msra.mxu0 %v373_v8  ;;  %v419_v18 = vld [vmem:[#allocation7 + $0x1d8] sm:$0xff]  ;;  %v370_v21 = vld [vmem:[#allocation7 + $0x50] sm:$0xff]  ;;  %s7278_s6 = sld [smem:[#allocation50_spill]]  ;;  %s6154_s13 = smov 96   ;;  %vm3178_vm7 = vcmask 58368  }
 0x11f   :  { %4732 = vmatprep.subr.mxu1 %v421_v10  ;;  %v404_v16 = vld [vmem:[#allocation7 + $0x160] sm:$0xff]  ;;  %4699 = vmatprep.subr.mxu0 %v388_v11  ;;  %v403_v20 = vld [vmem:[#allocation7 + $0x158] sm:$0xff]  ;;  %v418_v22 = vld [vmem:[#allocation7 + $0x1d0] sm:$0xff]  ;;  %s7279_s16 = sld [smem:[#allocation49_spill]]  ;;  %s6155_s22 = smov 120   ;;  %vm3200_vm8 = vcmask 15360  }
 0x120   :  { %4733 = vmatpush3.msra.mxu1 %v405_v12  ;;  %4700 = vmatpush3.msra.mxu0 %v372_v13  ;;  %v385_v23 = vld [vmem:[#allocation7 + $0xc8] sm:$0xff]  ;;  %v402_v24 = vld [vmem:[#allocation7 + $0x150] sm:$0xff]  ;;  %v384_v30 = vld [vmem:[#allocation7 + $0xc0] sm:$0xff]  ;;  %s7280_s14 = sld [smem:[#allocation51_spill]]  ;;  %s6156_s30 = smov 112   ;;  %vm3198_vm9 = vcmask 7168  }
 0x121   :  { %4734 = vmatprep.subr.mxu1 %v420_v14  ;;  %4701 = vmatprep.subr.mxu0 %v387_v15  ;;  %v369_v25 = vld [vmem:[#allocation7 + $0x48] sm:$0xff]  ;;  %v368_v32 = vld [vmem:[#allocation7 + $0x40] sm:$0xff]  ;;  %v383_v34 = vld [vmem:[#allocation7 + $0xb8] sm:$0xff]  ;;  %s7281_s18 = sld [smem:[#allocation52_spill]]  ;;  %s6157_s20 = smov 104   ;;  %vm3202_vm10 = vcmask 17408  }
 0x122   :  { %4735 = vmatpush3.msra.mxu1 %v404_v16  ;;  %4702 = vmatpush3.msra.mxu0 %v371_v17  ;;  %v417_v26 = vld [vmem:[#allocation7 + $0x1c8] sm:$0xff]  ;;  %v416_v33 = vld [vmem:[#allocation7 + $0x1c0] sm:$0xff]  ;;  %v367_v36 = vld [vmem:[#allocation7 + $0x38] sm:$0xff]  ;;  %s7282_s12 = sld [smem:[#allocation53_spill]]  ;;  %vm3801_vm11 = vcmask 64512   ;;  %vm3803_vm12 = vcmask 130048  }
 0x123   :  { %4736 = vmatprep.subr.mxu1 %v419_v18  ;;  %4703 = vmatprep.subr.mxu0 %v386_v19  ;;  %v401_v31 = vld [vmem:[#allocation7 + $0x148] sm:$0xff]  ;;  %v400_v35 = vld [vmem:[#allocation7 + $0x140] sm:$0xff]  ;;  %v415_v37 = vld [vmem:[#allocation7 + $0x1b8] sm:$0xff]  ;;  %vm3805_vm13 = vcmask 195584   ;;  %s7283_s23 = sld [smem:[#allocation57_spill]]  ;;  %vm4384_vm14 = vcmask 523264  }
 0x124   :  { %4737 = vmatpush3.msra.mxu1 %v403_v20  ;;  %4704 = vmatpush3.msra.mxu0 %v370_v21  ;;  %v382_v40 = vld [vmem:[#allocation7 + $0xb0] sm:$0xff]  ;;  %v399_v41 = vld [vmem:[#allocation7 + $0x138] sm:$0xff]  ;;  %v381_v44 = vld [vmem:[#allocation7 + $0xa8] sm:$0xff]  ;;  %vm4405_vm15 = vcmask 785408  }
 0x125   :  { %4738 = vmatprep.subr.mxu1 %v418_v22  ;;  %4705 = vmatprep.subr.mxu0 %v385_v23  ;;  %v366_v42 = vld [vmem:[#allocation7 + $0x30] sm:$0xff]  ;;  %v365_v46 = vld [vmem:[#allocation7 + $0x28] sm:$0xff]  ;;  %v380_v49 = vld [vmem:[#allocation7 + $0xa0] sm:$0xff] }
 0x126   :  { %4739 = vmatpush3.msra.mxu1 %v402_v24  ;;  %4706 = vmatpush3.msra.mxu0 %v369_v25  ;;  %v414_v43 = vld [vmem:[#allocation7 + $0x1b0] sm:$0xff]  ;;  %v413_v47 = vld [vmem:[#allocation7 + $0x1a8] sm:$0xff]  ;;  %v364_v52 = vld [vmem:[#allocation7 + $0x20] sm:$0xff] }
 0x127   :  { %4740 = vmatprep.subr.mxu1 %v417_v26  ;;  %4707 = vmatprep.subr.mxu0 %v384_v30  ;;  %v398_v45 = vld [vmem:[#allocation7 + $0x130] sm:$0xff]  ;;  %v397_v50 = vld [vmem:[#allocation7 + $0x128] sm:$0xff]  ;;  %v412_v53 = vld [vmem:[#allocation7 + $0x1a0] sm:$0xff] }
 0x128   :  { %4741 = vmatpush3.msra.mxu1 %v401_v31  ;;  %4708 = vmatpush3.msra.mxu0 %v368_v32  ;;  %v358_v51 = vld [vmem:[#allocation2] sm:$0xff]  ;;  %v379_v54 = vld [vmem:[#allocation7 + $0x98] sm:$0xff]  ;;  %v378_v60 = vld [vmem:[#allocation7 + $0x90] sm:$0xff] }
 0x129   :  { %4742 = vmatprep.subr.mxu1 %v416_v33  ;;  %4709 = vmatprep.subr.mxu0 %v383_v34  ;;  %v396_v55 = vld [vmem:[#allocation7 + $0x120] sm:$0xff]  ;;  %v363_v56 = vld [vmem:[#allocation7 + $0x18] sm:$0xff]  ;;  %v472_v58 = vrot.slane %v358_v51, %v471_v48  ;;  %v465_v59 = vcombine.high %v358_v51, %v358_v51  ;;  %v362_v62 = vld [vmem:[#allocation7 + $0x10] sm:$0xff] }
 0x12a   :  { %4743 = vmatpush3.msra.mxu1 %v400_v35  ;;  %4710 = vmatpush3.msra.mxu0 %v367_v36  ;;  %v411_v57 = vld [vmem:[#allocation7 + $0x198] sm:$0xff]  ;;  %v410_v63 = vld [vmem:[#allocation7 + $0x190] sm:$0xff]  ;;  %v377_v0 = vld [vmem:[#allocation7 + $0x88] sm:$0xff] }
 0x12b   :  { %4744 = vmatprep.subr.mxu1 %v415_v37  ;;  %4711 = vmatprep.subr.mxu0 %v382_v40  ;;  %v395_v61 = vld [vmem:[#allocation7 + $0x118] sm:$0xff]  ;;  %v394_v1 = vld [vmem:[#allocation7 + $0x110] sm:$0xff]  ;;  %v361_v2 = vld [vmem:[#allocation7 + $0x8] sm:$0xff]  ;;  %v480_v4 = vcombine.high %v472_v58, %v472_v58  ;;  %v479_v5 = vrot.slane %v465_v59, %v471_v48  ;;  %v6150_v48 = vmov 0.0  }
 0x12c   :  { %4745 = vmatpush3.msra.mxu1 %v399_v41  ;;  %4712 = vmatpush3.msra.mxu0 %v366_v42  ;;  %v409_v3 = vld [vmem:[#allocation7 + $0x188] sm:$0xff]  ;;  %v376_v6 = vld [vmem:[#allocation7 + $0x80] sm:$0xff]  ;;  %v455_v10 = vld [vmem:[#allocation7 + $0x2f8] sm:$0xff] }
 0x12d   :  { %4746 = vmatprep.subr.mxu1 %v414_v43  ;;  %4713 = vmatprep.subr.mxu0 %v381_v44  ;;  %v360_v7 = vld [vmem:[#allocation7] sm:$0xff]  ;;  %v393_v8 = vld [vmem:[#allocation7 + $0x108] sm:$0xff]  ;;  %v481_v12 = vcombine.high %v479_v5, %v479_v5  ;;  %v439_v13 = vld [vmem:[#allocation7 + $0x278] sm:$0xff] }
 0x12e   :  { %4747 = vmatpush3.msra.mxu1 %v398_v45  ;;  %4714 = vmatpush3.msra.mxu0 %v365_v46  ;;  %v408_v9 = vld [vmem:[#allocation7 + $0x180] sm:$0xff]  ;;  %v6361_v14 = vld.sshfl [vmem:[#allocation2 + $0x8] sm:$0x33 pattern:$0x76325410]  ;;  %v454_v15 = vld [vmem:[#allocation7 + $0x2f0] sm:$0xff] }
 0x12f   :  { %4748 = vmatprep.subr.mxu1 %v413_v47  ;;  %4715 = vmatprep.subr.mxu0 %v380_v49  ;;  %v392_v11 = vld [vmem:[#allocation7 + $0x100] sm:$0xff]  ;;  %v489_v16 = vcombine.high %v6361_v14, %v6361_v14  ;;  %v438_v17 = vld [vmem:[#allocation7 + $0x270] sm:$0xff]  ;;  %v453_v18 = vld [vmem:[#allocation7 + $0x2e8] sm:$0xff] }
 0x130   :  { %4749 = vmatpush3.msra.mxu1 %v397_v50  ;;  %4716 = vmatpush3.msra.mxu0 %v364_v52  ;;  %v437_v19 = vld [vmem:[#allocation7 + $0x268] sm:$0xff]  ;;  %v452_v20 = vld [vmem:[#allocation7 + $0x2e0] sm:$0xff]  ;;  %v451_v22 = vld [vmem:[#allocation7 + $0x2d8] sm:$0xff] }
 0x131   :  { %4750 = vmatprep.subr.mxu1 %v412_v53  ;;  %4717 = vmatprep.subr.mxu0 %v379_v54  ;;  %v436_v21 = vld [vmem:[#allocation7 + $0x260] sm:$0xff]  ;;  %v435_v23 = vld [vmem:[#allocation7 + $0x258] sm:$0xff]  ;;  %v450_v24 = vld [vmem:[#allocation7 + $0x2d0] sm:$0xff] }
 0x132   :  { %4751 = vmatpush3.msra.mxu1 %v396_v55  ;;  %4718 = vmatpush3.msra.mxu0 %v363_v56  ;;  %v434_v25 = vld [vmem:[#allocation7 + $0x250] sm:$0xff]  ;;  %v449_v26 = vld [vmem:[#allocation7 + $0x2c8] sm:$0xff]  ;;  %v448_v28 = vld [vmem:[#allocation7 + $0x2c0] sm:$0xff] }
 0x133   :  { %4752 = vmatprep.subr.mxu1 %v411_v57  ;;  %4719 = vmatprep.subr.mxu0 %v378_v60  ;;  %v433_v27 = vld [vmem:[#allocation7 + $0x248] sm:$0xff]  ;;  %v432_v29 = vld [vmem:[#allocation7 + $0x240] sm:$0xff]  ;;  %v447_v30 = vld [vmem:[#allocation7 + $0x2b8] sm:$0xff] }
 0x134   :  { %4753 = vmatpush3.msra.mxu1 %v395_v61  ;;  %4720 = vmatpush3.msra.mxu0 %v362_v62  ;;  %v431_v31 = vld [vmem:[#allocation7 + $0x238] sm:$0xff]  ;;  %v446_v32 = vld [vmem:[#allocation7 + $0x2b0] sm:$0xff]  ;;  %v445_v34 = vld [vmem:[#allocation7 + $0x2a8] sm:$0xff] }
 0x135   :  { %4754 = vmatprep.subr.mxu1 %v410_v63  ;;  %4721 = vmatprep.subr.mxu0 %v377_v0  ;;  %v430_v33 = vld [vmem:[#allocation7 + $0x230] sm:$0xff]  ;;  %v429_v35 = vld [vmem:[#allocation7 + $0x228] sm:$0xff]  ;;  %v444_v36 = vld [vmem:[#allocation7 + $0x2a0] sm:$0xff] }
 0x136   :  { %4755 = vmatpush3.msra.mxu1 %v394_v1  ;;  %4722 = vmatpush3.msra.mxu0 %v361_v2  ;;  %v428_v37 = vld [vmem:[#allocation7 + $0x220] sm:$0xff]  ;;  %v443_v38 = vld [vmem:[#allocation7 + $0x298] sm:$0xff]  ;;  %v442_v41 = vld [vmem:[#allocation7 + $0x290] sm:$0xff] }
 0x137   :  { %4756 = vmatprep.subr.mxu1 %v409_v3  ;;  %4723 = vmatprep.subr.mxu0 %v376_v6  ;;  %v427_v40 = vld [vmem:[#allocation7 + $0x218] sm:$0xff]  ;;  %v426_v42 = vld [vmem:[#allocation7 + $0x210] sm:$0xff]  ;;  %v441_v43 = vld [vmem:[#allocation7 + $0x288] sm:$0xff] }
 0x138   :  { %560 = vmatprep.mubr.f32.mxu0 %v480_v4  ;;  %4724 = vmatpush3.msra.mxu0 %v360_v7  ;;  %v425_v44 = vld [vmem:[#allocation7 + $0x208] sm:$0xff]  ;;  %v440_v45 = vld [vmem:[#allocation7 + $0x280] sm:$0xff]  ;;  %v721_v49 = vld [vmem:[%s7273_s3 + $0x70] sm:$0xff] }
 0x139   :  { %4757 = vmatpush3.msra.mxu1 %v393_v8  ;;  %561 = vmatmul.mubr.f32.vlgmr.msra.gmra.mxu0 %v472_v58  ;;  %v424_v46 = vld [vmem:[#allocation7 + $0x200] sm:$0xff]  ;;  %v812_v50 = vld [vmem:[%s7274_s5 + $0x48] sm:$0x3]  ;;  %v809_v55 = vld [vmem:[%s7274_s5 + $0x30] sm:$0xff] }
 0x13a   :  { %4758 = vmatprep.subr.mxu1 %v408_v9  ;;  %4763 = vmatprep.subr.mxu0 %v455_v10  ;;  %v722_v47 = vld [vmem:[%s7273_s3 + $0x78] sm:$0xff]  ;;  %v720_v51 = vld [vmem:[%s7273_s3 + $0x68] sm:$0xff]  ;;  %v811_v52 = vld [vmem:[%s7274_s5 + $0x40] sm:$0xff] }
 0x13b   :  { %4759 = vmatpush3.msra.mxu1 %v392_v11  ;;  %630 = vmatprep.mubr.f32.mxu1 %v481_v12  ;;  %v810_v53 = vld [vmem:[%s7274_s5 + $0x38] sm:$0xff]  ;;  %v719_v54 = vld [vmem:[%s7273_s3 + $0x60] sm:$0xff]  ;;  %v808_v57 = vld [vmem:[%s7274_s5 + $0x28] sm:$0xff] }
 0x13c   :  { %4764 = vmatpush3.msra.mxu0 %v439_v13  ;;  %631 = vmatmul.mubr.f32.vlgmr.msra.gmra.mxu1 %v479_v5  ;;  %v718_v56 = vld [vmem:[%s7273_s3 + $0x58] sm:$0xff]  ;;  %v717_v58 = vld [vmem:[%s7273_s3 + $0x50] sm:$0xff]  ;;  %v716_v59 = vld [vmem:[%s7273_s3 + $0x48] sm:$0xff] }
 0x13d   :  { %4765 = vmatprep.subr.mxu0 %v454_v15  ;;  %700 = vmatprep.mubr.f32.mxu0 %v489_v16  ;;  %v715_v60 = vld [vmem:[%s7273_s3 + $0x40] sm:$0xff]  ;;  %v714_v61 = vld [vmem:[%s7273_s3 + $0x38] sm:$0xff]  ;;  %v713_v62 = vld [vmem:[%s7273_s3 + $0x30] sm:$0xff] }
 0x13e   :  { %4766 = vmatpush3.msra.mxu0 %v438_v17  ;;  %4988 = vmatprep.subr.mxu1 %v6150_v48  ;;  %v712_v63 = vld [vmem:[%s7273_s3 + $0x28] sm:$0xff]  ;;  %v711_v0 = vld [vmem:[%s7273_s3 + $0x20] sm:$0xff]  ;;  %v710_v2 = vld [vmem:[%s7273_s3 + $0x18] sm:$0xff] }
 0x13f   :  { %4767 = vmatprep.subr.mxu0 %v453_v18  ;;  %4989 = vmatpush3.msra.mxu1 %v722_v47  ;;  %v807_v1 = vld [vmem:[%s7274_s5 + $0x20] sm:$0xff]  ;;  %v806_v3 = vld [vmem:[%s7274_s5 + $0x18] sm:$0xff]  ;;  %v709_v4 = vld [vmem:[%s7273_s3 + $0x10] sm:$0xff] }
 0x140   :  { %4768 = vmatpush3.msra.mxu0 %v437_v19  ;;  %4990 = vmatprep.subr.mxu1 %v6150_v48  ;;  %v805_v5 = vld [vmem:[%s7274_s5 + $0x10] sm:$0xff]  ;;  %v708_v6 = vld [vmem:[%s7273_s3 + $0x8] sm:$0xff]  ;;  %v707_v8 = vld [vmem:[%s7273_s3] sm:$0xff] }
 0x141   :  { %4769 = vmatprep.subr.mxu0 %v452_v20  ;;  %4991 = vmatpush3.msra.mxu1 %v721_v49  ;;  %v804_v7 = vld [vmem:[%s7274_s5 + $0x8] sm:$0xff]  ;;  %v803_v9 = vld [vmem:[%s7274_s5] sm:$0xff]  ;;  %v6415_v12 = vld [vmem:[%s7276_s27 + $0x18] sm:$0xff] }
 0x142   :  { %4770 = vmatpush3.msra.mxu0 %v436_v21  ;;  %4992 = vmatprep.subr.mxu1 %v6150_v48  ;;  %v801_v10 = vld [vmem:[%s7275_s15] sm:$0xff]  ;;  %v802_v11 = vld [vmem:[%s7275_s15 + $0x8] sm:$0xff]  ;;  %v6421_v13 = vld [vmem:[%s7276_s27 + $0x10] sm:$0xff] }
 0x143   :  { %4771 = vmatprep.subr.mxu0 %v451_v22  ;;  %4993 = vmatpush3.msra.mxu1 %v720_v51  ;;  %v6431_v15 = vld [vmem:[%s7276_s27] sm:$0xff] }
 0x144   :  { %4772 = vmatpush3.msra.mxu0 %v435_v23  ;;  %4994 = vmatprep.subr.mxu1 %v6150_v48  ;;  %v4632_v20 = vld [vmem:[%s7277_s17] ss:$0 sm:$0xff] }
 0x145   :  { %4773 = vmatprep.subr.mxu0 %v450_v24  ;;  %4995 = vmatpush3.msra.mxu1 %v719_v54 }
 0x146   :  { %4774 = vmatpush3.msra.mxu0 %v434_v25  ;;  %4996 = vmatprep.subr.mxu1 %v6150_v48 }
 0x147   :  { %4775 = vmatprep.subr.mxu0 %v449_v26  ;;  %4997 = vmatpush3.msra.mxu1 %v718_v56 }
 0x148   :  { %4776 = vmatpush3.msra.mxu0 %v433_v27  ;;  %4998 = vmatprep.subr.mxu1 %v6150_v48 }
 0x149   :  { %4777 = vmatprep.subr.mxu0 %v448_v28  ;;  %4999 = vmatpush3.msra.mxu1 %v717_v58 }
 0x14a   :  { %4778 = vmatpush3.msra.mxu0 %v432_v29  ;;  %5000 = vmatprep.subr.mxu1 %v6150_v48 }
 0x14b   :  { %4779 = vmatprep.subr.mxu0 %v447_v30  ;;  %5001 = vmatpush3.msra.mxu1 %v716_v59 }
 0x14c   :  { %4780 = vmatpush3.msra.mxu0 %v431_v31  ;;  %5002 = vmatprep.subr.mxu1 %v6150_v48  ;;  %v4635_v31 = vld [vmem:[#allocation10] ss:$0 sm:$0xff] }
 0x14d   :  { %4781 = vmatprep.subr.mxu0 %v446_v32  ;;  %5003 = vmatpush3.msra.mxu1 %v715_v60 }
 0x14e   :  { %4782 = vmatpush3.msra.mxu0 %v430_v33  ;;  %5004 = vmatprep.subr.mxu1 %v6150_v48 }
 0x14f   :  { %4783 = vmatprep.subr.mxu0 %v445_v34  ;;  %5005 = vmatpush3.msra.mxu1 %v714_v61 }
 0x150   :  { %4784 = vmatpush3.msra.mxu0 %v429_v35  ;;  %5006 = vmatprep.subr.mxu1 %v6150_v48 }
 0x151   :  { %4785 = vmatprep.subr.mxu0 %v444_v36  ;;  %5007 = vmatpush3.msra.mxu1 %v713_v62 }
 0x152   :  { %4786 = vmatpush3.msra.mxu0 %v428_v37  ;;  %5008 = vmatprep.subr.mxu1 %v6150_v48 }
 0x153   :  { %4787 = vmatprep.subr.mxu0 %v443_v38  ;;  %5009 = vmatpush3.msra.mxu1 %v712_v63 }
 0x154   :  { %4788 = vmatpush3.msra.mxu0 %v427_v40  ;;  %5010 = vmatprep.subr.mxu1 %v6150_v48 }
 0x155   :  { %4789 = vmatprep.subr.mxu0 %v442_v41  ;;  %5011 = vmatpush3.msra.mxu1 %v711_v0 }
 0x156   :  { %4790 = vmatpush3.msra.mxu0 %v426_v42  ;;  %5012 = vmatprep.subr.mxu1 %v6150_v48 }
 0x157   :  { %4791 = vmatprep.subr.mxu0 %v441_v43  ;;  %5013 = vmatpush3.msra.mxu1 %v710_v2 }
 0x158   :  { %4792 = vmatpush3.msra.mxu0 %v425_v44  ;;  %5014 = vmatprep.subr.mxu1 %v6150_v48 }
 0x159   :  { %4793 = vmatprep.subr.mxu0 %v440_v45  ;;  %5015 = vmatpush3.msra.mxu1 %v709_v4 }
 0x15a   :  { %4794 = vmatpush3.msra.mxu0 %v424_v46  ;;  %5016 = vmatprep.subr.mxu1 %v6150_v48 }
 0x15b   :  { %701 = vmatmul.mubr.f32.vlgmr.msra.gmra.mxu0 %v6361_v14  ;;  %5023 = vmatprep.subr.msk.mxu0 %vm827_vm0, %v812_v50  ;;  %v6426_v14 = vld [vmem:[%s7276_s27 + $0x8] sm:$0xff] }
 0x15c   :  { %5024 = vmatpush3.msk.msra.mxu0 %vm827_vm0, %v812_v50  ;;  %5017 = vmatpush3.msra.mxu1 %v708_v6  ;;  %vm4564_vm0 = vcmask 9216  }
 0x15d   :  { %5025 = vmatprep.subr.mxu0 %v811_v52  ;;  %5018 = vmatprep.subr.mxu1 %v6150_v48 }
 0x15e   :  { %5026 = vmatpush3.msra.mxu0 %v811_v52  ;;  %5019 = vmatpush3.msra.mxu1 %v707_v8 }
 0x15f   :  { %5027 = vmatprep.subr.mxu0 %v810_v53  ;;  %5020 = vmatprep.mubr.msk.f32.mxu1 %vm6151_vm1, %v6150_v48 }
 0x160   :  { %5028 = vmatpush3.msra.mxu0 %v810_v53  ;;  %5046 = vmatprep.subr.mxu1 %v6150_v48 }
 0x161   :  { %5029 = vmatprep.subr.mxu0 %v809_v55  ;;  %5043 = vmatprep.mubr.msk.f32.mxu0 %vm820_vm2, %v801_v10 }
 0x162   :  { %5030 = vmatpush3.msra.mxu0 %v809_v55 }
 0x163   :  { %5031 = vmatprep.subr.mxu0 %v808_v57 }
 0x164   :  { %5032 = vmatpush3.msra.mxu0 %v808_v57 }
 0x165   :  { %5033 = vmatprep.subr.mxu0 %v807_v1 }
 0x166   :  { %5034 = vmatpush3.msra.mxu0 %v807_v1 }
 0x167   :  { %5035 = vmatprep.subr.mxu0 %v806_v3 }
 0x168   :  { %5036 = vmatpush3.msra.mxu0 %v806_v3 }
 0x169   :  { %5037 = vmatprep.subr.mxu0 %v805_v5 }
 0x16a   :  { %5038 = vmatpush3.msra.mxu0 %v805_v5 }
 0x16b   :  { %5039 = vmatprep.subr.mxu0 %v804_v7 }
 0x16c   :  { %5040 = vmatpush3.msra.mxu0 %v804_v7 }
 0x16d   :  { %5041 = vmatprep.subr.mxu0 %v803_v9 }
 0x16e   :  { %5042 = vmatpush3.msra.mxu0 %v803_v9 }
 0x16f   :  { %5079 = vmatprep.subr.mxu0 %v6150_v48  ;;  %5044 = vmatmul.mubr.msk.f32.vlgmr.msra.gmra.mxu0 %vm820_vm2, %v802_v11 }
 0x170   :  { %5080 = vmatpush3.msra.mxu0 %v6415_v12  ;;  %5087 = vmatprep.mubr.msk.f32.mxu0 %vm6151_vm1, %v6150_v48 }
 0x171   :  { %5081 = vmatprep.subr.mxu0 %v6150_v48 }
 0x172   :  { %5082 = vmatpush3.msra.mxu0 %v6421_v13 }
 0x173   :  { %5083 = vmatprep.subr.mxu0 %v6150_v48 }
 0x174   :  { %5084 = vmatpush3.msra.mxu0 %v6426_v14 }
 0x175   :  { %5085 = vmatprep.subr.mxu0 %v6150_v48 }
 0x176   :  { %5086 = vmatpush3.msra.mxu0 %v6431_v15 }
 0x177   :  { %5101 = vmatprep.subr.mxu0 %v6150_v48 }
 0x1f9   :  { %v4725_v16 = vpop.f32.mrf.mxu0 }
 0x1fb   :  { %v4726_v17 = vpop.f32.mrf.mxu0 }
 0x1fc   :  { %v4760_v18 = vpop.f32.mrf.mxu1  ;;  %v4727_v19 = vadd.f32 %v4726_v17, %v4725_v16 }
 0x1fe   :  { %v4761_v21 = vpop.f32.mrf.mxu1  ;;  %v563_v22 = vadd.f32 %v4727_v19, %v4632_v20 }
 0x1ff   :  { %v4762_v23 = vadd.f32 %v4761_v21, %v4760_v18 }
 0x201   :  { %v633_v26 = vadd.f32 %v4762_v23, %v563_v22 }
 0x21b   :  { %v4795_v24 = vpop.f32.mrf.mxu0 }
 0x21d   :  { %v4796_v25 = vpop.f32.mrf.mxu0 }
 0x21e   :  { %v4797_v27 = vadd.f32 %v4796_v25, %v4795_v24 }
 0x220   :  { %v703_v28 = vadd.f32 %v4797_v27, %v633_v26 }
 0x222   :  { %v706_v29 = vmax.f32 %v703_v28, 0.0 }
 0x224   :  { %5021 = vmatmul.mubr.f32.vlgmr.msra.gmra.mxu1 %v706_v29 }
 0x225   :  { %5047 = vmatpush3.msra.mxu1 %v6415_v12  ;;  %5054 = vmatprep.mubr.msk.f32.mxu1 %vm6151_vm1, %v6150_v48 }
 0x226   :  { %5048 = vmatprep.subr.mxu1 %v6150_v48 }
 0x227   :  { %5049 = vmatpush3.msra.mxu1 %v6421_v13 }
 0x228   :  { %5050 = vmatprep.subr.mxu1 %v6150_v48 }
 0x229   :  { %5051 = vmatpush3.msra.mxu1 %v6426_v14 }
 0x22a   :  { %5052 = vmatprep.subr.mxu1 %v6150_v48 }
 0x22b   :  { %5053 = vmatpush3.msra.mxu1 %v6431_v15 }
 0x22c   :  { %5055 = vmatmul.mubr.f32.vlgmr.msra.gmra.mxu1 %v6150_v48  ;;  %5057 = vmatprep.subr.mxu1 %v6150_v48 }
 0x22d   :  { %5058 = vmatpush3.msra.mxu1 %v6415_v12  ;;  %5065 = vmatprep.mubr.msk.f32.mxu1 %vm6151_vm1, %v6150_v48 }
 0x22e   :  { %5059 = vmatprep.subr.mxu1 %v6150_v48 }
 0x22f   :  { %5060 = vmatpush3.msra.mxu1 %v6421_v13  ;;  %v5045_v30 = vpop.f32.mrf.mxu0 }
 0x230   :  { %5061 = vmatprep.subr.mxu1 %v6150_v48  ;;  %v6458_v32 = vadd.f32 %v5045_v30, %v4635_v31 }
 0x231   :  { %5062 = vmatpush3.msra.mxu1 %v6426_v14  ;;  %v897_v35 = vpop.f32.mrf.mxu0 }
 0x232   :  { %5063 = vmatprep.subr.mxu1 %v6150_v48  ;;  %v6462_v36 = vadd.f32 %v4635_v31, %v897_v35 }
 0x233   :  { %5064 = vmatpush3.msra.mxu1 %v6431_v15 }
 0x234   :  { %5068 = vmatprep.subr.mxu1 %v6150_v48 }
 0x2e4   :  { %v6460_v33 = vpop.f32.mrf.mxu1 }
 0x2e6   :  { %v5022_v34 = vpop.f32.mrf.mxu1 }
 0x2ec   :  { %v980_v37 = vpop.f32.mrf.mxu1 }
 0x2ed   :  { %v984_v38 = vadd.f32 %v980_v37, %v6462_v36 }
 0x2ee   :  { %v5056_v40 = vpop.f32.mrf.mxu1 }
 0x2ef   :  { %5491 = vtanh.f32 %v984_v38  ;;  %v4639_v42 = vmul.f32 -1.442695, %v984_v38 }
 0x2f1   :  { %5493 = vpow2.f32 %v4639_v42 }
 0x2fc   :  { %v5492_v41 = vpop.eup %5491 }
 0x2fd   :  { %994 = vrot.lane.b32.xlu0 %v5492_v41, %s6152_s0 }
 0x2fe   :  { %v5494_v43 = vpop.eup %5493 }
 0x2ff   :  { %v988_v44 = vadd.f32 1.0, %v5494_v43 }
 0x301   :  { %5495 = vrcp.f32 %v988_v44 }
 0x30e   :  { %v5496_v45 = vpop.eup %5495 }
 0x30f   :  { %v992_v49 = vmul.f32 0.0, %v5496_v45 }
 0x36f   :  { %v995_v46 = vpop.permute.xlu0 %994 }
 0x370   :  { %v997_v47 = vmul.f32 %v5496_v45, %v995_v46 }
 0x372   :  { %999 = vrot.lane.b32.xlu0 %v997_v47, %s6153_s28 }
 0x3e4   :  { %v1000_v50 = vpop.permute.xlu0 %999 }
 0x3e5   :  { %v1002_v51 = vadd.f32 %v1000_v50, %v992_v49 }
 0x3e7   :  { %5497 = vtanh.f32 %v1002_v51  ;;  %v1096_v3 = vrot.slane %v1002_v51, 6 }
 0x3f4   :  { %v5498_v52 = vpop.eup %5497 }
 0x3f5   :  { %1005 = vrot.lane.b32.xlu1 %v5498_v52, %s6152_s0 }
 0x467   :  { %v1006_v53 = vpop.permute.xlu1 %1005 }
 0x468   :  { %v1008_v54 = vmul.f32 %v5496_v45, %v1006_v53 }
 0x46a   :  { %1010 = vrot.lane.b32.xlu1 %v1008_v54, %s6153_s28 }
 0x4dc   :  { %v1011_v55 = vpop.permute.xlu1 %1010 }
 0x4dd   :  { %5066 = vmatmul.mubr.msk.f32.vlgmr.msra.gmra.mxu1 %vm910_vm3, %v1011_v55 }
 0x4de   :  { %5069 = vmatpush3.msra.mxu1 %v6415_v12  ;;  %5076 = vmatprep.mubr.msk.f32.mxu1 %vm6151_vm1, %v6150_v48 }
 0x4df   :  { %5070 = vmatprep.subr.mxu1 %v6150_v48 }
 0x4e0   :  { %5071 = vmatpush3.msra.mxu1 %v6421_v13 }
 0x4e1   :  { %5072 = vmatprep.subr.mxu1 %v6150_v48 }
 0x4e2   :  { %5073 = vmatpush3.msra.mxu1 %v6426_v14 }
 0x4e3   :  { %5074 = vmatprep.subr.mxu1 %v6150_v48 }
 0x4e4   :  { %5075 = vmatpush3.msra.mxu1 %v6431_v15 }
 0x4e5   :  { %5090 = vmatprep.subr.mxu1 %v6150_v48 }
 0x59d   :  { %v1080_v56 = vpop.f32.mrf.mxu1 }
 0x59e   :  { %v1085_v57 = vrot.slane %v1080_v56, 6 }
 0x59f   :  { %v5067_v58 = vpop.f32.mrf.mxu1 }
 0x5a0   :  { %v1087_v59 = vadd.f32 %v1085_v57, %v6462_v36 }
 0x5a2   :  { %5499 = vtanh.f32 %v1087_v59  ;;  %v4641_v61 = vmul.f32 -1.442695, %v1087_v59 }
 0x5a4   :  { %5501 = vpow2.f32 %v4641_v61 }
 0x5af   :  { %v5500_v60 = vpop.eup %5499 }
 0x5b0   :  { %1100 = vrot.lane.b32.xlu0 %v5500_v60, %s6152_s0 }
 0x5b1   :  { %v5502_v62 = vpop.eup %5501 }
 0x5b2   :  { %v1091_v63 = vadd.f32 1.0, %v5502_v62 }
 0x5b4   :  { %5503 = vrcp.f32 %v1091_v63 }
 0x5c1   :  { %v5504_v0 = vpop.eup %5503 }
 0x5c2   :  { %v1098_v4 = vmul.f32 %v5504_v0, %v1096_v3 }
 0x622   :  { %v1101_v1 = vpop.permute.xlu0 %1100 }
 0x623   :  { %v1103_v2 = vmul.f32 %v5504_v0, %v1101_v1 }
 0x625   :  { %1105 = vrot.lane.b32.xlu1 %v1103_v2, %s6153_s28 }
 0x697   :  { %v1106_v5 = vpop.permute.xlu1 %1105 }
 0x698   :  { %v1108_v6 = vadd.f32 %v1106_v5, %v1098_v4 }
 0x69a   :  { %5505 = vtanh.f32 %v1108_v6  ;;  %v1203_v27 = vrot.slane %v1108_v6, 6 }
 0x6a7   :  { %v5506_v7 = vpop.eup %5505 }
 0x6a8   :  { %1111 = vrot.lane.b32.xlu0 %v5506_v7, %s6152_s0 }
 0x71a   :  { %v1112_v8 = vpop.permute.xlu0 %1111 }
 0x71b   :  { %v1114_v9 = vmul.f32 %v5504_v0, %v1112_v8 }
 0x71d   :  { %v1116_v10 = vrot.slane %v1114_v9, 2 }
 0x71f   :  { %1117 = vrot.lane.b32.xlu1 %v1116_v10, %s6153_s28 }
 0x791   :  { %v1118_v11 = vpop.permute.xlu1 %1117 }
 0x792   :  { %5077 = vmatmul.mubr.msk.f32.vlgmr.msra.gmra.mxu1 %vm910_vm3, %v1118_v11 }
 0x793   :  { %5091 = vmatpush3.msra.mxu1 %v6415_v12  ;;  %5098 = vmatprep.mubr.msk.f32.mxu1 %vm6151_vm1, %v6150_v48 }
 0x794   :  { %5092 = vmatprep.subr.mxu1 %v6150_v48 }
 0x795   :  { %5093 = vmatpush3.msra.mxu1 %v6421_v13 }
 0x796   :  { %5094 = vmatprep.subr.mxu1 %v6150_v48 }
 0x797   :  { %5095 = vmatpush3.msra.mxu1 %v6426_v14 }
 0x798   :  { %5096 = vmatprep.subr.mxu1 %v6150_v48 }
 0x799   :  { %5097 = vmatpush3.msra.mxu1 %v6431_v15 }
 0x79a   :  { %5112 = vmatprep.subr.mxu1 %v6150_v48 }
 0x852   :  { %v1187_v16 = vpop.f32.mrf.mxu1 }
 0x853   :  { %v1192_v17 = vrot.slane %v1187_v16, 4 }
 0x854   :  { %v5078_v18 = vpop.f32.mrf.mxu1 }
 0x855   :  { %v1194_v19 = vadd.f32 %v1192_v17, %v6462_v36 }
 0x857   :  { %5507 = vtanh.f32 %v1194_v19  ;;  %v4643_v21 = vmul.f32 -1.442695, %v1194_v19 }
 0x859   :  { %5509 = vpow2.f32 %v4643_v21 }
 0x864   :  { %v5508_v20 = vpop.eup %5507 }
 0x865   :  { %1207 = vrot.lane.b32.xlu0 %v5508_v20, %s6152_s0 }
 0x866   :  { %v5510_v22 = vpop.eup %5509 }
 0x867   :  { %v1198_v23 = vadd.f32 1.0, %v5510_v22 }
 0x869   :  { %5511 = vrcp.f32 %v1198_v23 }
 0x876   :  { %v5512_v24 = vpop.eup %5511 }
 0x877   :  { %v1205_v28 = vmul.f32 %v5512_v24, %v1203_v27 }
 0x8d7   :  { %v1208_v25 = vpop.permute.xlu0 %1207 }
 0x8d8   :  { %v1210_v26 = vmul.f32 %v5512_v24, %v1208_v25 }
 0x8da   :  { %1212 = vrot.lane.b32.xlu1 %v1210_v26, %s6153_s28 }
 0x94c   :  { %v1213_v29 = vpop.permute.xlu1 %1212 }
 0x94d   :  { %v1215_v30 = vadd.f32 %v1213_v29, %v1205_v28 }
 0x94f   :  { %5513 = vtanh.f32 %v1215_v30  ;;  %v1310_v52 = vrot.slane %v1215_v30, 6 }
 0x95c   :  { %v5514_v31 = vpop.eup %5513 }
 0x95d   :  { %1218 = vrot.lane.b32.xlu0 %v5514_v31, %s6152_s0 }
 0x9cf   :  { %v1219_v34 = vpop.permute.xlu0 %1218 }
 0x9d0   :  { %v1221_v35 = vmul.f32 %v5512_v24, %v1219_v34 }
 0x9d2   :  { %v1223_v37 = vrot.slane %v1221_v35, 4 }
 0x9d4   :  { %1224 = vrot.lane.b32.xlu1 %v1223_v37, %s6153_s28 }
 0xa46   :  { %v1225_v38 = vpop.permute.xlu1 %1224 }
 0xa47   :  { %5088 = vmatmul.mubr.msk.f32.vlgmr.msra.gmra.mxu0 %vm910_vm3, %v1225_v38 }
 0xa48   :  { %5102 = vmatpush3.msra.mxu0 %v6415_v12  ;;  %5109 = vmatprep.mubr.msk.f32.mxu0 %vm6151_vm1, %v6150_v48 }
 0xa49   :  { %5103 = vmatprep.subr.mxu0 %v6150_v48 }
 0xa4a   :  { %5104 = vmatpush3.msra.mxu0 %v6421_v13 }
 0xa4b   :  { %5105 = vmatprep.subr.mxu0 %v6150_v48 }
 0xa4c   :  { %5106 = vmatpush3.msra.mxu0 %v6426_v14 }
 0xa4d   :  { %5107 = vmatprep.subr.mxu0 %v6150_v48 }
 0xa4e   :  { %5108 = vmatpush3.msra.mxu0 %v6431_v15 }
 0xa4f   :  { %5123 = vmatprep.subr.mxu0 %v6150_v48 }
 0xb07   :  { %v1294_v40 = vpop.f32.mrf.mxu0 }
 0xb08   :  { %v1299_v41 = vrot.slane %v1294_v40, 2 }
 0xb09   :  { %v5089_v42 = vpop.f32.mrf.mxu0 }
 0xb0a   :  { %v1301_v43 = vadd.f32 %v1299_v41, %v6462_v36 }
 0xb0c   :  { %5515 = vtanh.f32 %v1301_v43  ;;  %v4645_v45 = vmul.f32 -1.442695, %v1301_v43 }
 0xb0e   :  { %5517 = vpow2.f32 %v4645_v45 }
 0xb19   :  { %v5516_v44 = vpop.eup %5515 }
 0xb1a   :  { %1314 = vrot.lane.b32.xlu0 %v5516_v44, %s6152_s0 }
 0xb1b   :  { %v5518_v46 = vpop.eup %5517 }
 0xb1c   :  { %v1305_v47 = vadd.f32 1.0, %v5518_v46 }
 0xb1e   :  { %5519 = vrcp.f32 %v1305_v47 }
 0xb2b   :  { %v5520_v49 = vpop.eup %5519 }
 0xb2c   :  { %v1312_v53 = vmul.f32 %v5520_v49, %v1310_v52 }
 0xb8c   :  { %v1315_v50 = vpop.permute.xlu0 %1314 }
 0xb8d   :  { %v1317_v51 = vmul.f32 %v5520_v49, %v1315_v50 }
 0xb8f   :  { %1319 = vrot.lane.b32.xlu1 %v1317_v51, %s6153_s28 }
 0xc01   :  { %v1320_v54 = vpop.permute.xlu1 %1319 }
 0xc02   :  { %v1322_v55 = vadd.f32 %v1320_v54, %v1312_v53 }
 0xc04   :  { %5521 = vtanh.f32 %v1322_v55  ;;  %v1414_v6 = vrot.slane %v1322_v55, 6 }
 0xc11   :  { %v5522_v36 = vpop.eup %5521 }
 0xc12   :  { %1325 = vrot.lane.b32.xlu0 %v5522_v36, %s6152_s0 }
 0xc84   :  { %v1326_v56 = vpop.permute.xlu0 %1325 }
 0xc85   :  { %v1328_v57 = vmul.f32 %v5520_v49, %v1326_v56 }
 0xc87   :  { %v1330_v58 = vrot.slane %v1328_v57, 6 }
 0xc89   :  { %1331 = vrot.lane.b32.xlu1 %v1330_v58, %s6153_s28 }
 0xcfb   :  { %v1332_v59 = vpop.permute.xlu1 %1331 }
 0xcfc   :  { %5099 = vmatmul.mubr.msk.f32.vlgmr.msra.gmra.mxu1 %vm910_vm3, %v1332_v59 }
 0xcfd   :  { %5113 = vmatpush3.msra.mxu1 %v6415_v12  ;;  %5120 = vmatprep.mubr.msk.f32.mxu1 %vm6151_vm1, %v6150_v48 }
 0xcfe   :  { %5114 = vmatprep.subr.mxu1 %v6150_v48 }
 0xcff   :  { %5115 = vmatpush3.msra.mxu1 %v6421_v13 }
 0xd00   :  { %5116 = vmatprep.subr.mxu1 %v6150_v48 }
 0xd01   :  { %5117 = vmatpush3.msra.mxu1 %v6426_v14 }
 0xd02   :  { %5118 = vmatprep.subr.mxu1 %v6150_v48 }
 0xd03   :  { %5119 = vmatpush3.msra.mxu1 %v6431_v15 }
 0xd04   :  { %5134 = vmatprep.subr.mxu1 %v6150_v48 }
 0xdbc   :  { %v1401_v60 = vpop.f32.mrf.mxu1 }
 0xdbd   :  { %v1405_v61 = vadd.f32 %v1401_v60, %v6458_v32 }
 0xdbe   :  { %v5100_v62 = vpop.f32.mrf.mxu1 }
 0xdbf   :  { %5523 = vtanh.f32 %v1405_v61  ;;  %v4647_v0 = vmul.f32 -1.442695, %v1405_v61 }
 0xdc1   :  { %5525 = vpow2.f32 %v4647_v0 }
 0xdcc   :  { %v5524_v63 = vpop.eup %5523 }
 0xdcd   :  { %1418 = vrot.lane.b32.xlu0 %v5524_v63, %s6152_s0 }
 0xdce   :  { %v5526_v1 = vpop.eup %5525 }
 0xdcf   :  { %v1409_v2 = vadd.f32 1.0, %v5526_v1 }
 0xdd1   :  { %5527 = vrcp.f32 %v1409_v2 }
 0xdde   :  { %v5528_v3 = vpop.eup %5527 }
 0xddf   :  { %v1416_v7 = vmul.f32 %v5528_v3, %v1414_v6 }
 0xe3f   :  { %v1419_v4 = vpop.permute.xlu0 %1418 }
 0xe40   :  { %v1421_v5 = vmul.f32 %v5528_v3, %v1419_v4 }
 0xe42   :  { %1423 = vrot.lane.b32.xlu1 %v1421_v5, %s6153_s28 }
 0xeb4   :  { %v1424_v8 = vpop.permute.xlu1 %1423 }
 0xeb5   :  { %v1426_v9 = vadd.f32 %v1424_v8, %v1416_v7  ;;  %v1848_v8 = vld [vmem:[%s7278_s6 + $0x28] sm:$0x7f] }
 0xeb7   :  { %5529 = vtanh.f32 %v1426_v9 }
 0xec4   :  { %v5530_v10 = vpop.eup %5529 }
 0xec5   :  { %1429 = vrot.lane.b32.xlu0 %v5530_v10, %s6152_s0  ;;  %v1756_v10 = vld [vmem:[%s7279_s16 + $0x18] sm:$0xff] }
 0xf37   :  { %v1430_v11 = vpop.permute.xlu0 %1429 }
 0xf38   :  { %v1432_v16 = vmul.f32 %v5528_v3, %v1430_v11  ;;  %v1755_v11 = vld [vmem:[%s7279_s16 + $0x10] sm:$0xff] }
 0xf3a   :  { %1434 = vrot.lane.b32.xlu1 %v1432_v16, %s6153_s28  ;;  %v1846_v16 = vld [vmem:[%s7278_s6 + $0x18] sm:$0xff] }
 0xfac   :  { %v1435_v17 = vpop.permute.xlu1 %1434 }
 0xfad   :  { %5110 = vmatmul.mubr.msk.f32.vlgmr.msra.gmra.mxu0 %vm910_vm3, %v1435_v17  ;;  %v1754_v17 = vld [vmem:[%s7279_s16 + $0x8] sm:$0xff] }
 0xfae   :  { %5124 = vmatpush3.msra.mxu0 %v6415_v12  ;;  %5131 = vmatprep.mubr.msk.f32.mxu0 %vm6151_vm1, %v6150_v48 }
 0xfaf   :  { %5125 = vmatprep.subr.mxu0 %v6150_v48 }
 0xfb0   :  { %5126 = vmatpush3.msra.mxu0 %v6421_v13 }
 0xfb1   :  { %5127 = vmatprep.subr.mxu0 %v6150_v48 }
 0xfb2   :  { %5128 = vmatpush3.msra.mxu0 %v6426_v14 }
 0xfb3   :  { %5129 = vmatprep.subr.mxu0 %v6150_v48 }
 0xfb4   :  { %5130 = vmatpush3.msra.mxu0 %v6431_v15  ;;  %v1520_v15 = vrot.slane %v1426_v9, 6  ;;  %v1847_v9 = vld [vmem:[%s7278_s6 + $0x20] sm:$0xff] }
 0xfb5   :  { %5145 = vmatprep.subr.msk.mxu0 %vm1863_vm4, %v1848_v8 }
0x106d   :  { %v1504_v18 = vpop.f32.mrf.mxu0 }
0x106e   :  { %v1509_v19 = vrot.slane %v1504_v18, 6  ;;  %v1845_v18 = vld [vmem:[%s7278_s6 + $0x10] sm:$0xff] }
0x106f   :  { %v5111_v20 = vpop.f32.mrf.mxu0 }
0x1070   :  { %v1511_v12 = vadd.f32 %v1509_v19, %v6458_v32  ;;  %v1753_v19 = vld [vmem:[%s7279_s16] sm:$0xff]  ;;  %v1844_v20 = vld [vmem:[%s7278_s6 + $0x8] sm:$0xff] }
0x1072   :  { %5531 = vtanh.f32 %v1511_v12  ;;  %v4649_v22 = vmul.f32 -1.442695, %v1511_v12 }
0x1074   :  { %5533 = vpow2.f32 %v4649_v22  ;;  %v1841_v22 = vld [vmem:[#allocation5] sm:$0xff] }
0x107f   :  { %v5532_v21 = vpop.eup %5531 }
0x1080   :  { %1524 = vrot.lane.b32.xlu0 %v5532_v21, %s6152_s0  ;;  %v1843_v21 = vld [vmem:[%s7278_s6] sm:$0xff] }
0x1081   :  { %v5534_v13 = vpop.eup %5533 }
0x1082   :  { %v1515_v23 = vadd.f32 1.0, %v5534_v13  ;;  %v1842_v13 = vld [vmem:[#allocation5 + $0x8] sm:$0xff] }
0x1084   :  { %5535 = vrcp.f32 %v1515_v23  ;;  %v6577_v23 = vld [vmem:[%s7280_s14 + $0x18] sm:$0xff] }
0x1091   :  { %v5536_v24 = vpop.eup %5535 }
0x1092   :  { %v1522_v26 = vmul.f32 %v5536_v24, %v1520_v15  ;;  %v6593_v15 = vld [vmem:[%s7280_s14] sm:$0xff] }
0x10f2   :  { %v1525_v14 = vpop.permute.xlu0 %1524 }
0x10f3   :  { %v1527_v25 = vmul.f32 %v5536_v24, %v1525_v14  ;;  %v6588_v14 = vld [vmem:[%s7280_s14 + $0x8] sm:$0xff] }
0x10f5   :  { %1529 = vrot.lane.b32.xlu1 %v1527_v25, %s6153_s28 }
0x1167   :  { %v1530_v27 = vpop.permute.xlu1 %1529 }
0x1168   :  { %v1532_v28 = vadd.f32 %v1530_v27, %v1522_v26 }
0x116a   :  { %5537 = vtanh.f32 %v1532_v28  ;;  %v1627_v50 = vrot.slane %v1532_v28, 6 }
0x1177   :  { %v5538_v29 = vpop.eup %5537 }
0x1178   :  { %1535 = vrot.lane.b32.xlu0 %v5538_v29, %s6152_s0 }
0x11ea   :  { %v1536_v30 = vpop.permute.xlu0 %1535 }
0x11eb   :  { %v1538_v31 = vmul.f32 %v5536_v24, %v1536_v30  ;;  %v6583_v24 = vld [vmem:[%s7280_s14 + $0x10] sm:$0xff]  ;;  %v4656_v30 = vld [vmem:[#allocation13] ss:$0 sm:$0xff] }
0x11ed   :  { %v1540_v34 = vrot.slane %v1538_v31, 2 }
0x11ef   :  { %1541 = vrot.lane.b32.xlu1 %v1540_v34, %s6153_s28 }
0x1261   :  { %v1542_v35 = vpop.permute.xlu1 %1541 }
0x1262   :  { %5121 = vmatmul.mubr.msk.f32.vlgmr.msra.gmra.mxu1 %vm910_vm3, %v1542_v35 }
0x1263   :  { %5142 = vmatprep.mubr.msk.f32.mxu1 %vm6151_vm1, %v6150_v48  ;;  %5135 = vmatpush3.msra.mxu1 %v1756_v10 }
0x1264   :  { %5136 = vmatprep.subr.mxu1 %v6150_v48 }
0x1265   :  { %5137 = vmatpush3.msra.mxu1 %v1755_v11 }
0x1266   :  { %5138 = vmatprep.subr.mxu1 %v6150_v48 }
0x1267   :  { %5139 = vmatpush3.msra.mxu1 %v1754_v17 }
0x1268   :  { %5140 = vmatprep.subr.mxu1 %v6150_v48 }
0x1269   :  { %5141 = vmatpush3.msra.mxu1 %v1753_v19 }
0x126a   :  { %5160 = vmatprep.subr.mxu1 %v6150_v48 }
0x1322   :  { %v1611_v37 = vpop.f32.mrf.mxu1 }
0x1323   :  { %v1616_v38 = vrot.slane %v1611_v37, 4 }
0x1324   :  { %v5122_v40 = vpop.f32.mrf.mxu1 }
0x1325   :  { %v1618_v41 = vadd.f32 %v1616_v38, %v6458_v32 }
0x1327   :  { %5539 = vtanh.f32 %v1618_v41  ;;  %v4651_v43 = vmul.f32 -1.442695, %v1618_v41 }
0x1329   :  { %5541 = vpow2.f32 %v4651_v43 }
0x1334   :  { %v5540_v42 = vpop.eup %5539 }
0x1335   :  { %1631 = vrot.lane.b32.xlu0 %v5540_v42, %s6152_s0 }
0x1336   :  { %v5542_v44 = vpop.eup %5541 }
0x1337   :  { %v1622_v45 = vadd.f32 1.0, %v5542_v44 }
0x1339   :  { %5543 = vrcp.f32 %v1622_v45 }
0x1346   :  { %v5544_v46 = vpop.eup %5543 }
0x1347   :  { %v1629_v51 = vmul.f32 %v5544_v46, %v1627_v50 }
0x13a7   :  { %v1632_v47 = vpop.permute.xlu0 %1631 }
0x13a8   :  { %v1634_v49 = vmul.f32 %v5544_v46, %v1632_v47 }
0x13aa   :  { %1636 = vrot.lane.b32.xlu1 %v1634_v49, %s6153_s28 }
0x141c   :  { %v1637_v52 = vpop.permute.xlu1 %1636 }
0x141d   :  { %v1639_v53 = vadd.f32 %v1637_v52, %v1629_v51 }
0x141f   :  { %5545 = vtanh.f32 %v1639_v53 }
0x142c   :  { %v5546_v54 = vpop.eup %5545 }
0x142d   :  { %1642 = vrot.lane.b32.xlu0 %v5546_v54, %s6152_s0 }
0x149f   :  { %v1643_v55 = vpop.permute.xlu0 %1642 }
0x14a0   :  { %v1645_v36 = vmul.f32 %v5544_v46, %v1643_v55 }
0x14a2   :  { %v1647_v56 = vrot.slane %v1645_v36, 4 }
0x14a4   :  { %1648 = vrot.lane.b32.xlu1 %v1647_v56, %s6153_s28 }
0x1516   :  { %v1649_v57 = vpop.permute.xlu1 %1648 }
0x1517   :  { %5132 = vmatmul.mubr.msk.f32.vlgmr.msra.gmra.mxu0 %vm910_vm3, %v1649_v57 }
0x1518   :  { %5146 = vmatpush3.msk.msra.mxu0 %vm1863_vm4, %v1848_v8  ;;  %5157 = vmatprep.mubr.msk.f32.mxu0 %vm1856_vm5, %v1841_v22 }
0x1519   :  { %5147 = vmatprep.subr.mxu0 %v1847_v9 }
0x151a   :  { %5148 = vmatpush3.msra.mxu0 %v1847_v9 }
0x151b   :  { %5149 = vmatprep.subr.mxu0 %v1846_v16 }
0x151c   :  { %5150 = vmatpush3.msra.mxu0 %v1846_v16 }
0x151d   :  { %5151 = vmatprep.subr.mxu0 %v1845_v18 }
0x151e   :  { %5152 = vmatpush3.msra.mxu0 %v1845_v18 }
0x151f   :  { %5153 = vmatprep.subr.mxu0 %v1844_v20 }
0x1520   :  { %5154 = vmatpush3.msra.mxu0 %v1844_v20 }
0x1521   :  { %5155 = vmatprep.subr.mxu0 %v1843_v21 }
0x1522   :  { %5156 = vmatpush3.msra.mxu0 %v1843_v21 }
0x1523   :  { %5171 = vmatprep.subr.mxu0 %v6150_v48  ;;  %5158 = vmatmul.mubr.msk.f32.vlgmr.msra.gmra.mxu0 %vm1856_vm5, %v1842_v13 }
0x1524   :  { %5172 = vmatpush3.msra.mxu0 %v6577_v23  ;;  %5179 = vmatprep.mubr.msk.f32.mxu0 %vm6151_vm1, %v6150_v48 }
0x1525   :  { %5173 = vmatprep.subr.mxu0 %v6150_v48 }
0x1526   :  { %5174 = vmatpush3.msra.mxu0 %v6583_v24 }
0x1527   :  { %5175 = vmatprep.subr.mxu0 %v6150_v48 }
0x1528   :  { %5176 = vmatpush3.msra.mxu0 %v6588_v14 }
0x1529   :  { %5177 = vmatprep.subr.mxu0 %v6150_v48 }
0x152a   :  { %5178 = vmatpush3.msra.mxu0 %v6593_v15 }
0x152b   :  { %5193 = vmatprep.subr.mxu0 %v6150_v48 }
0x15d7   :  { %v1718_v58 = vpop.f32.mrf.mxu0 }
0x15d8   :  { %v1723_v59 = vrot.slane %v1718_v58, 2 }
0x15d9   :  { %v5133_v60 = vpop.f32.mrf.mxu0 }
0x15da   :  { %v1725_v61 = vadd.f32 %v1723_v59, %v6458_v32  ;;  %v1734_v32 = vrot.slane %v1639_v53, 6 }
0x15dc   :  { %5547 = vtanh.f32 %v1725_v61  ;;  %v4653_v63 = vmul.f32 -1.442695, %v1725_v61 }
0x15de   :  { %5549 = vpow2.f32 %v4653_v63 }
0x15e3   :  { %v5159_v29 = vpop.f32.mrf.mxu0 }
0x15e4   :  { %v6621_v31 = vadd.f32 %v5159_v29, %v4656_v30 }
0x15e5   :  { %v1933_v37 = vpop.f32.mrf.mxu0 }
0x15e6   :  { %v6625_v38 = vadd.f32 %v4656_v30, %v1933_v37 }
0x15e9   :  { %v5548_v62 = vpop.eup %5547 }
0x15ea   :  { %1738 = vrot.lane.b32.xlu0 %v5548_v62, %s6152_s0 }
0x15eb   :  { %v5550_v0 = vpop.eup %5549 }
0x15ec   :  { %v1729_v1 = vadd.f32 1.0, %v5550_v0 }
0x15ee   :  { %5551 = vrcp.f32 %v1729_v1 }
0x15fb   :  { %v5552_v2 = vpop.eup %5551 }
0x15fc   :  { %v1736_v5 = vmul.f32 %v5552_v2, %v1734_v32 }
0x165c   :  { %v1739_v3 = vpop.permute.xlu0 %1738 }
0x165d   :  { %v1741_v4 = vmul.f32 %v5552_v2, %v1739_v3 }
0x165f   :  { %1743 = vrot.lane.b32.xlu1 %v1741_v4, %s6153_s28 }
0x16d1   :  { %v1744_v6 = vpop.permute.xlu1 %1743 }
0x16d2   :  { %v1746_v7 = vadd.f32 %v1744_v6, %v1736_v5 }
0x16d4   :  { %5553 = vtanh.f32 %v1746_v7 }
0x16e1   :  { %v5554_v12 = vpop.eup %5553 }
0x16e2   :  { %1749 = vrot.lane.b32.xlu0 %v5554_v12, %s6152_s0 }
0x1754   :  { %v1750_v25 = vpop.permute.xlu0 %1749 }
0x1755   :  { %v1752_v26 = vmul.f32 %v5552_v2, %v1750_v25 }
0x1757   :  { %v1765_v27 = vrot.slane %v1752_v26, 6 }
0x1759   :  { %1766 = vrot.lane.b32.xlu1 %v1765_v27, %s6153_s28 }
0x17cb   :  { %v1767_v28 = vpop.permute.xlu1 %1766 }
0x17cc   :  { %5143 = vmatmul.mubr.msk.f32.vlgmr.msra.gmra.mxu1 %vm910_vm3, %v1767_v28 }
0x17cd   :  { %5161 = vmatpush3.msra.mxu1 %v6577_v23  ;;  %5168 = vmatprep.mubr.msk.f32.mxu1 %vm6151_vm1, %v6150_v48 }
0x17ce   :  { %5162 = vmatprep.subr.mxu1 %v6150_v48 }
0x17cf   :  { %5163 = vmatpush3.msra.mxu1 %v6583_v24 }
0x17d0   :  { %5164 = vmatprep.subr.mxu1 %v6150_v48 }
0x17d1   :  { %5165 = vmatpush3.msra.mxu1 %v6588_v14 }
0x17d2   :  { %5166 = vmatprep.subr.mxu1 %v6150_v48 }
0x17d3   :  { %5167 = vmatpush3.msra.mxu1 %v6593_v15 }
0x17d4   :  { %5169 = vmatmul.mubr.f32.vlgmr.msra.gmra.mxu1 %v6150_v48  ;;  %5182 = vmatprep.subr.mxu1 %v6150_v48 }
0x17d5   :  { %5183 = vmatpush3.msra.mxu1 %v6577_v23  ;;  %5190 = vmatprep.mubr.msk.f32.mxu1 %vm6151_vm1, %v6150_v48 }
0x17d6   :  { %5184 = vmatprep.subr.mxu1 %v6150_v48 }
0x17d7   :  { %5185 = vmatpush3.msra.mxu1 %v6583_v24 }
0x17d8   :  { %5186 = vmatprep.subr.mxu1 %v6150_v48 }
0x17d9   :  { %5187 = vmatpush3.msra.mxu1 %v6588_v14 }
0x17da   :  { %5188 = vmatprep.subr.mxu1 %v6150_v48 }
0x17db   :  { %5189 = vmatpush3.msra.mxu1 %v6593_v15 }
0x17dc   :  { %5204 = vmatprep.subr.mxu1 %v6150_v48 }
0x188c   :  { %v6623_v34 = vpop.f32.mrf.mxu1 }
0x188e   :  { %v5144_v35 = vpop.f32.mrf.mxu1 }
0x1894   :  { %v2012_v40 = vpop.f32.mrf.mxu1 }
0x1895   :  { %v2016_v41 = vadd.f32 %v2012_v40, %v6625_v38 }
0x1896   :  { %v5170_v42 = vpop.f32.mrf.mxu1 }
0x1897   :  { %5555 = vtanh.f32 %v2016_v41  ;;  %v4660_v44 = vmul.f32 -1.442695, %v2016_v41 }
0x1899   :  { %5557 = vpow2.f32 %v4660_v44 }
0x18a4   :  { %v5556_v43 = vpop.eup %5555 }
0x18a5   :  { %2026 = vrot.lane.b32.xlu0 %v5556_v43, %s6152_s0 }
0x18a6   :  { %v5558_v45 = vpop.eup %5557 }
0x18a7   :  { %v2020_v46 = vadd.f32 1.0, %v5558_v45 }
0x18a9   :  { %5559 = vrcp.f32 %v2020_v46 }
0x18b6   :  { %v5560_v47 = vpop.eup %5559 }
0x18b7   :  { %v2024_v51 = vmul.f32 0.0, %v5560_v47 }
0x1917   :  { %v2027_v49 = vpop.permute.xlu0 %2026 }
0x1918   :  { %v2029_v50 = vmul.f32 %v5560_v47, %v2027_v49 }
0x191a   :  { %2031 = vrot.lane.b32.xlu1 %v2029_v50, %s6153_s28 }
0x198c   :  { %v2032_v52 = vpop.permute.xlu1 %2031 }
0x198d   :  { %v2034_v53 = vadd.f32 %v2032_v52, %v2024_v51 }
0x198f   :  { %5561 = vtanh.f32 %v2034_v53  ;;  %v2128_v4 = vrot.slane %v2034_v53, 6 }
0x199c   :  { %v5562_v54 = vpop.eup %5561 }
0x199d   :  { %2037 = vrot.lane.b32.xlu0 %v5562_v54, %s6152_s0 }
0x1a0f   :  { %v2038_v55 = vpop.permute.xlu0 %2037 }
0x1a10   :  { %v2040_v36 = vmul.f32 %v5560_v47, %v2038_v55 }
0x1a12   :  { %2042 = vrot.lane.b32.xlu1 %v2040_v36, %s6153_s28 }
0x1a84   :  { %v2043_v56 = vpop.permute.xlu1 %2042 }
0x1a85   :  { %5180 = vmatmul.mubr.msk.f32.vlgmr.msra.gmra.mxu0 %vm910_vm3, %v2043_v56 }
0x1a86   :  { %5194 = vmatpush3.msra.mxu0 %v6577_v23  ;;  %5201 = vmatprep.mubr.msk.f32.mxu0 %vm6151_vm1, %v6150_v48 }
0x1a87   :  { %5195 = vmatprep.subr.mxu0 %v6150_v48 }
0x1a88   :  { %5196 = vmatpush3.msra.mxu0 %v6583_v24 }
0x1a89   :  { %5197 = vmatprep.subr.mxu0 %v6150_v48 }
0x1a8a   :  { %5198 = vmatpush3.msra.mxu0 %v6588_v14 }
0x1a8b   :  { %5199 = vmatprep.subr.mxu0 %v6150_v48 }
0x1a8c   :  { %5200 = vmatpush3.msra.mxu0 %v6593_v15 }
0x1a8d   :  { %5215 = vmatprep.subr.mxu0 %v6150_v48 }
0x1b45   :  { %v2112_v57 = vpop.f32.mrf.mxu0 }
0x1b46   :  { %v2117_v58 = vrot.slane %v2112_v57, 6 }
0x1b47   :  { %v5181_v59 = vpop.f32.mrf.mxu0 }
0x1b48   :  { %v2119_v60 = vadd.f32 %v2117_v58, %v6625_v38 }
0x1b4a   :  { %5563 = vtanh.f32 %v2119_v60  ;;  %v4662_v62 = vmul.f32 -1.442695, %v2119_v60 }
0x1b4c   :  { %5565 = vpow2.f32 %v4662_v62 }
0x1b57   :  { %v5564_v61 = vpop.eup %5563 }
0x1b58   :  { %2132 = vrot.lane.b32.xlu0 %v5564_v61, %s6152_s0 }
0x1b59   :  { %v5566_v63 = vpop.eup %5565 }
0x1b5a   :  { %v2123_v0 = vadd.f32 1.0, %v5566_v63 }
0x1b5c   :  { %5567 = vrcp.f32 %v2123_v0 }
0x1b69   :  { %v5568_v1 = vpop.eup %5567 }
0x1b6a   :  { %v2130_v32 = vmul.f32 %v5568_v1, %v2128_v4 }
0x1bca   :  { %v2133_v2 = vpop.permute.xlu0 %2132 }
0x1bcb   :  { %v2135_v3 = vmul.f32 %v5568_v1, %v2133_v2 }
0x1bcd   :  { %2137 = vrot.lane.b32.xlu1 %v2135_v3, %s6153_s28 }
0x1c3f   :  { %v2138_v5 = vpop.permute.xlu1 %2137 }
0x1c40   :  { %v2140_v6 = vadd.f32 %v2138_v5, %v2130_v32 }
0x1c42   :  { %5569 = vtanh.f32 %v2140_v6  ;;  %v2235_v27 = vrot.slane %v2140_v6, 6 }
0x1c4f   :  { %v5570_v7 = vpop.eup %5569 }
0x1c50   :  { %2143 = vrot.lane.b32.xlu0 %v5570_v7, %s6152_s0 }
0x1cc2   :  { %v2144_v8 = vpop.permute.xlu0 %2143 }
0x1cc3   :  { %v2146_v9 = vmul.f32 %v5568_v1, %v2144_v8 }
0x1cc5   :  { %v2148_v10 = vrot.slane %v2146_v9, 2 }
0x1cc7   :  { %2149 = vrot.lane.b32.xlu1 %v2148_v10, %s6153_s28 }
0x1d39   :  { %v2150_v11 = vpop.permute.xlu1 %2149 }
0x1d3a   :  { %5191 = vmatmul.mubr.msk.f32.vlgmr.msra.gmra.mxu1 %vm910_vm3, %v2150_v11 }
0x1d3b   :  { %5205 = vmatpush3.msra.mxu1 %v6577_v23  ;;  %5212 = vmatprep.mubr.msk.f32.mxu1 %vm6151_vm1, %v6150_v48 }
0x1d3c   :  { %5206 = vmatprep.subr.mxu1 %v6150_v48 }
0x1d3d   :  { %5207 = vmatpush3.msra.mxu1 %v6583_v24 }
0x1d3e   :  { %5208 = vmatprep.subr.mxu1 %v6150_v48 }
0x1d3f   :  { %5209 = vmatpush3.msra.mxu1 %v6588_v14 }
0x1d40   :  { %5210 = vmatprep.subr.mxu1 %v6150_v48 }
0x1d41   :  { %5211 = vmatpush3.msra.mxu1 %v6593_v15 }
0x1d42   :  { %5226 = vmatprep.subr.mxu1 %v6150_v48 }
0x1dfa   :  { %v2219_v16 = vpop.f32.mrf.mxu1 }
0x1dfb   :  { %v2224_v17 = vrot.slane %v2219_v16, 4 }
0x1dfc   :  { %v5192_v18 = vpop.f32.mrf.mxu1 }
0x1dfd   :  { %v2226_v19 = vadd.f32 %v2224_v17, %v6625_v38 }
0x1dff   :  { %5571 = vtanh.f32 %v2226_v19  ;;  %v4664_v12 = vmul.f32 -1.442695, %v2226_v19 }
0x1e01   :  { %5573 = vpow2.f32 %v4664_v12 }
0x1e0c   :  { %v5572_v20 = vpop.eup %5571 }
0x1e0d   :  { %2239 = vrot.lane.b32.xlu0 %v5572_v20, %s6152_s0 }
0x1e0e   :  { %v5574_v21 = vpop.eup %5573 }
0x1e0f   :  { %v2230_v22 = vadd.f32 1.0, %v5574_v21 }
0x1e11   :  { %5575 = vrcp.f32 %v2230_v22 }
0x1e1e   :  { %v5576_v13 = vpop.eup %5575 }
0x1e1f   :  { %v2237_v28 = vmul.f32 %v5576_v13, %v2235_v27 }
0x1e7f   :  { %v2240_v25 = vpop.permute.xlu0 %2239 }
0x1e80   :  { %v2242_v26 = vmul.f32 %v5576_v13, %v2240_v25 }
0x1e82   :  { %2244 = vrot.lane.b32.xlu1 %v2242_v26, %s6153_s28 }
0x1ef4   :  { %v2245_v29 = vpop.permute.xlu1 %2244 }
0x1ef5   :  { %v2247_v30 = vadd.f32 %v2245_v29, %v2237_v28 }
0x1ef7   :  { %5577 = vtanh.f32 %v2247_v30  ;;  %v2342_v55 = vrot.slane %v2247_v30, 6 }
0x1f04   :  { %v5578_v35 = vpop.eup %5577 }
0x1f05   :  { %2250 = vrot.lane.b32.xlu0 %v5578_v35, %s6152_s0 }
0x1f77   :  { %v2251_v37 = vpop.permute.xlu0 %2250 }
0x1f78   :  { %v2253_v40 = vmul.f32 %v5576_v13, %v2251_v37 }
0x1f7a   :  { %v2255_v41 = vrot.slane %v2253_v40, 4 }
0x1f7c   :  { %2256 = vrot.lane.b32.xlu1 %v2255_v41, %s6153_s28 }
0x1fee   :  { %v2257_v42 = vpop.permute.xlu1 %2256 }
0x1fef   :  { %5202 = vmatmul.mubr.msk.f32.vlgmr.msra.gmra.mxu0 %vm910_vm3, %v2257_v42 }
0x1ff0   :  { %5216 = vmatpush3.msra.mxu0 %v6577_v23  ;;  %5223 = vmatprep.mubr.msk.f32.mxu0 %vm6151_vm1, %v6150_v48 }
0x1ff1   :  { %5217 = vmatprep.subr.mxu0 %v6150_v48 }
0x1ff2   :  { %5218 = vmatpush3.msra.mxu0 %v6583_v24 }
0x1ff3   :  { %5219 = vmatprep.subr.mxu0 %v6150_v48 }
0x1ff4   :  { %5220 = vmatpush3.msra.mxu0 %v6588_v14 }
0x1ff5   :  { %5221 = vmatprep.subr.mxu0 %v6150_v48 }
0x1ff6   :  { %5222 = vmatpush3.msra.mxu0 %v6593_v15 }
0x1ff7   :  { %5237 = vmatprep.subr.mxu0 %v6150_v48 }
0x20af   :  { %v2326_v43 = vpop.f32.mrf.mxu0 }
0x20b0   :  { %v2331_v44 = vrot.slane %v2326_v43, 2 }
0x20b1   :  { %v5203_v45 = vpop.f32.mrf.mxu0 }
0x20b2   :  { %v2333_v46 = vadd.f32 %v2331_v44, %v6625_v38 }
0x20b4   :  { %5579 = vtanh.f32 %v2333_v46  ;;  %v4666_v49 = vmul.f32 -1.442695, %v2333_v46 }
0x20b6   :  { %5581 = vpow2.f32 %v4666_v49 }
0x20c1   :  { %v5580_v47 = vpop.eup %5579 }
0x20c2   :  { %2346 = vrot.lane.b32.xlu0 %v5580_v47, %s6152_s0 }
0x20c3   :  { %v5582_v50 = vpop.eup %5581 }
0x20c4   :  { %v2337_v51 = vadd.f32 1.0, %v5582_v50 }
0x20c6   :  { %5583 = vrcp.f32 %v2337_v51 }
0x20d3   :  { %v5584_v52 = vpop.eup %5583 }
0x20d4   :  { %v2344_v36 = vmul.f32 %v5584_v52, %v2342_v55 }
0x2134   :  { %v2347_v53 = vpop.permute.xlu0 %2346 }
0x2135   :  { %v2349_v54 = vmul.f32 %v5584_v52, %v2347_v53 }
0x2137   :  { %2351 = vrot.lane.b32.xlu1 %v2349_v54, %s6153_s28 }
0x21a9   :  { %v2352_v56 = vpop.permute.xlu1 %2351 }
0x21aa   :  { %v2354_v57 = vadd.f32 %v2352_v56, %v2344_v36 }
0x21ac   :  { %5585 = vtanh.f32 %v2354_v57  ;;  %v2446_v7 = vrot.slane %v2354_v57, 6 }
0x21b9   :  { %v5586_v38 = vpop.eup %5585 }
0x21ba   :  { %2357 = vrot.lane.b32.xlu0 %v5586_v38, %s6152_s0 }
0x222c   :  { %v2358_v58 = vpop.permute.xlu0 %2357 }
0x222d   :  { %v2360_v59 = vmul.f32 %v5584_v52, %v2358_v58 }
0x222f   :  { %v2362_v60 = vrot.slane %v2360_v59, 6 }
0x2231   :  { %2363 = vrot.lane.b32.xlu1 %v2362_v60, %s6153_s28 }
0x22a3   :  { %v2364_v61 = vpop.permute.xlu1 %2363 }
0x22a4   :  { %5213 = vmatmul.mubr.msk.f32.vlgmr.msra.gmra.mxu1 %vm910_vm3, %v2364_v61 }
0x22a5   :  { %5227 = vmatpush3.msra.mxu1 %v6577_v23  ;;  %5234 = vmatprep.mubr.msk.f32.mxu1 %vm6151_vm1, %v6150_v48 }
0x22a6   :  { %5228 = vmatprep.subr.mxu1 %v6150_v48 }
0x22a7   :  { %5229 = vmatpush3.msra.mxu1 %v6583_v24 }
0x22a8   :  { %5230 = vmatprep.subr.mxu1 %v6150_v48 }
0x22a9   :  { %5231 = vmatpush3.msra.mxu1 %v6588_v14 }
0x22aa   :  { %5232 = vmatprep.subr.mxu1 %v6150_v48 }
0x22ab   :  { %5233 = vmatpush3.msra.mxu1 %v6593_v15 }
0x22ac   :  { %5248 = vmatprep.subr.mxu1 %v6150_v48 }
0x2364   :  { %v2433_v62 = vpop.f32.mrf.mxu1 }
0x2365   :  { %v2437_v63 = vadd.f32 %v2433_v62, %v6621_v31 }
0x2366   :  { %v5214_v0 = vpop.f32.mrf.mxu1 }
0x2367   :  { %5587 = vtanh.f32 %v2437_v63  ;;  %v4668_v2 = vmul.f32 -1.442695, %v2437_v63 }
0x2369   :  { %5589 = vpow2.f32 %v4668_v2 }
0x2374   :  { %v5588_v1 = vpop.eup %5587 }
0x2375   :  { %2450 = vrot.lane.b32.xlu0 %v5588_v1, %s6152_s0 }
0x2376   :  { %v5590_v3 = vpop.eup %5589 }
0x2377   :  { %v2441_v4 = vadd.f32 1.0, %v5590_v3 }
0x2379   :  { %5591 = vrcp.f32 %v2441_v4 }
0x2386   :  { %v5592_v32 = vpop.eup %5591 }
0x2387   :  { %v2448_v8 = vmul.f32 %v5592_v32, %v2446_v7 }
0x23e7   :  { %v2451_v5 = vpop.permute.xlu0 %2450 }
0x23e8   :  { %v2453_v6 = vmul.f32 %v5592_v32, %v2451_v5 }
0x23ea   :  { %2455 = vrot.lane.b32.xlu1 %v2453_v6, %s6153_s28 }
0x245c   :  { %v2456_v9 = vpop.permute.xlu1 %2455 }
0x245d   :  { %v2458_v10 = vadd.f32 %v2456_v9, %v2448_v8 }
0x245f   :  { %5593 = vtanh.f32 %v2458_v10 }
0x246c   :  { %v5594_v11 = vpop.eup %5593 }
0x246d   :  { %2461 = vrot.lane.b32.xlu0 %v5594_v11, %s6152_s0  ;;  %v4634_v11 = vld [vmem:[#allocation8] ss:$0 sm:$0xff] }
0x24df   :  { %v2462_v16 = vpop.permute.xlu0 %2461 }
0x24e0   :  { %v2464_v17 = vmul.f32 %v5592_v32, %v2462_v16  ;;  %v797_v16 = vadd.f32 %v4634_v11, %v6460_v33 }
0x24e2   :  { %2466 = vrot.lane.b32.xlu1 %v2464_v17, %s6153_s28  ;;  %v6728_v17 = vmax.f32 %v797_v16, 0.0 }
0x2554   :  { %v2467_v18 = vpop.permute.xlu1 %2466 }
0x2555   :  { %5224 = vmatmul.mubr.msk.f32.vlgmr.msra.gmra.mxu0 %vm910_vm3, %v2467_v18  ;;  %v2876_v18 = vsel %vm2875_vm6, %v6728_v17, 0.0 }
0x2556   :  { %5238 = vmatpush3.msra.mxu0 %v6577_v23  ;;  %5245 = vmatprep.mubr.msk.f32.mxu0 %vm6151_vm1, %v6150_v48 }
0x2557   :  { %5239 = vmatprep.subr.mxu0 %v6150_v48 }
0x2558   :  { %5240 = vmatpush3.msra.mxu0 %v6583_v24 }
0x2559   :  { %5241 = vmatprep.subr.mxu0 %v6150_v48 }
0x255a   :  { %5242 = vmatpush3.msra.mxu0 %v6588_v14 }
0x255b   :  { %5243 = vmatprep.subr.mxu0 %v6150_v48 }
0x255c   :  { %5244 = vmatpush3.msra.mxu0 %v6593_v15  ;;  %v2552_v15 = vrot.slane %v2458_v10, 6 }
0x255d   :  { %5259 = vmatprep.subr.mxu0 %v6150_v48 }
0x2615   :  { %v2536_v19 = vpop.f32.mrf.mxu0 }
0x2616   :  { %v2541_v20 = vrot.slane %v2536_v19, 6  ;;  %v2788_v19 = vld [vmem:[%s7281_s18 + $0x18] sm:$0xff] }
0x2617   :  { %v5225_v23 = vpop.f32.mrf.mxu0 }
0x2618   :  { %v2543_v12 = vadd.f32 %v2541_v20, %v6621_v31  ;;  %v2787_v20 = vld [vmem:[%s7281_s18 + $0x10] sm:$0xff]  ;;  %v2786_v23 = vld [vmem:[%s7281_s18 + $0x8] sm:$0xff] }
0x261a   :  { %5595 = vtanh.f32 %v2543_v12  ;;  %v4670_v24 = vmul.f32 -1.442695, %v2543_v12  ;;  %v2785_v12 = vld [vmem:[%s7281_s18] sm:$0xff] }
0x261c   :  { %5597 = vpow2.f32 %v4670_v24 }
0x2627   :  { %v5596_v21 = vpop.eup %5595 }
0x2628   :  { %2556 = vrot.lane.b32.xlu0 %v5596_v21, %s6152_s0 }
0x2629   :  { %v5598_v22 = vpop.eup %5597 }
0x262a   :  { %v2547_v13 = vadd.f32 1.0, %v5598_v22  ;;  %v4654_v22 = vld [vmem:[#allocation11] ss:$0 sm:$0xff] }
0x262c   :  { %5599 = vrcp.f32 %v2547_v13  ;;  %v1837_v13 = vadd.f32 %v4654_v22, %v6623_v34 }
0x2639   :  { %v5600_v14 = vpop.eup %5599 }
0x263a   :  { %v2554_v27 = vmul.f32 %v5600_v14, %v2552_v15  ;;  %v4675_v15 = vld [vmem:[#allocation14] ss:$0 sm:$0xff] }
0x269a   :  { %v2557_v25 = vpop.permute.xlu0 %2556 }
0x269b   :  { %v2559_v26 = vmul.f32 %v5600_v14, %v2557_v25 }
0x269d   :  { %2561 = vrot.lane.b32.xlu1 %v2559_v26, %s6153_s28 }
0x270f   :  { %v2562_v28 = vpop.permute.xlu1 %2561 }
0x2710   :  { %v2564_v29 = vadd.f32 %v2562_v28, %v2554_v27 }
0x2712   :  { %5601 = vtanh.f32 %v2564_v29  ;;  %v2659_v54 = vrot.slane %v2564_v29, 6 }
0x271f   :  { %v5602_v30 = vpop.eup %5601 }
0x2720   :  { %2567 = vrot.lane.b32.xlu0 %v5602_v30, %s6152_s0 }
0x2792   :  { %v2568_v35 = vpop.permute.xlu0 %2567 }
0x2793   :  { %v2570_v37 = vmul.f32 %v5600_v14, %v2568_v35  ;;  %v6742_v14 = vmax.f32 %v1837_v13, 0.0 }
0x2795   :  { %v2572_v40 = vrot.slane %v2570_v37, 2  ;;  %v2879_v25 = vsel %vm2875_vm6, %v6742_v14, 0.0 }
0x2797   :  { %2573 = vrot.lane.b32.xlu1 %v2572_v40, %s6153_s28 }
0x2809   :  { %v2574_v41 = vpop.permute.xlu1 %2573 }
0x280a   :  { %5235 = vmatmul.mubr.msk.f32.vlgmr.msra.gmra.mxu1 %vm910_vm3, %v2574_v41 }
0x280b   :  { %5256 = vmatprep.mubr.msk.f32.mxu1 %vm6151_vm1, %v6150_v48  ;;  %5249 = vmatpush3.msra.mxu1 %v2788_v19 }
0x280c   :  { %5250 = vmatprep.subr.mxu1 %v6150_v48 }
0x280d   :  { %5251 = vmatpush3.msra.mxu1 %v2787_v20 }
0x280e   :  { %5252 = vmatprep.subr.mxu1 %v6150_v48 }
0x280f   :  { %5253 = vmatpush3.msra.mxu1 %v2786_v23 }
0x2810   :  { %5254 = vmatprep.subr.mxu1 %v6150_v48 }
0x2811   :  { %5255 = vmatpush3.msra.mxu1 %v2785_v12  ;;  %v4677_v12 = vld [vmem:[#allocation19] ss:$0 sm:$0xff] }
0x2812   :  { %5270 = vmatprep.subr.mxu1 %v6150_v48 }
0x28ca   :  { %v2643_v42 = vpop.f32.mrf.mxu1 }
0x28cb   :  { %v2648_v43 = vrot.slane %v2643_v42, 4 }
0x28cc   :  { %v5236_v44 = vpop.f32.mrf.mxu1 }
0x28cd   :  { %v2650_v45 = vadd.f32 %v2648_v43, %v6621_v31 }
0x28cf   :  { %5603 = vtanh.f32 %v2650_v45  ;;  %v4672_v47 = vmul.f32 -1.442695, %v2650_v45 }
0x28d1   :  { %5605 = vpow2.f32 %v4672_v47 }
0x28dc   :  { %v5604_v46 = vpop.eup %5603 }
0x28dd   :  { %2663 = vrot.lane.b32.xlu0 %v5604_v46, %s6152_s0 }
0x28de   :  { %v5606_v49 = vpop.eup %5605 }
0x28df   :  { %v2654_v50 = vadd.f32 1.0, %v5606_v49 }
0x28e1   :  { %5607 = vrcp.f32 %v2654_v50 }
0x28ee   :  { %v5608_v51 = vpop.eup %5607 }
0x28ef   :  { %v2661_v55 = vmul.f32 %v5608_v51, %v2659_v54  ;;  %v2946_v54 = vld [vmem:[%s7282_s12 + $0x18] sm:$0xff] }
0x294f   :  { %v2664_v52 = vpop.permute.xlu0 %2663 }
0x2950   :  { %v2666_v53 = vmul.f32 %v5608_v51, %v2664_v52 }
0x2952   :  { %2668 = vrot.lane.b32.xlu1 %v2666_v53, %s6153_s28 }
0x29c4   :  { %v2669_v36 = vpop.permute.xlu1 %2668 }
0x29c5   :  { %v2671_v56 = vadd.f32 %v2669_v36, %v2661_v55  ;;  %v2945_v55 = vld [vmem:[%s7282_s12 + $0x10] sm:$0xff]  ;;  %v2944_v36 = vld [vmem:[%s7282_s12 + $0x8] sm:$0xff] }
0x29c7   :  { %5609 = vtanh.f32 %v2671_v56  ;;  %v2766_v7 = vrot.slane %v2671_v56, 6  ;;  %v2943_v56 = vld [vmem:[%s7282_s12] sm:$0xff] }
0x29d4   :  { %v5610_v57 = vpop.eup %5609 }
0x29d5   :  { %2674 = vrot.lane.b32.xlu0 %v5610_v57, %s6152_s0 }
0x2a47   :  { %v2675_v38 = vpop.permute.xlu0 %2674 }
0x2a48   :  { %v2677_v58 = vmul.f32 %v5608_v51, %v2675_v38 }
0x2a4a   :  { %v2679_v59 = vrot.slane %v2677_v58, 4 }
0x2a4c   :  { %2680 = vrot.lane.b32.xlu1 %v2679_v59, %s6153_s28 }
0x2abe   :  { %v2681_v60 = vpop.permute.xlu1 %2680 }
0x2abf   :  { %5246 = vmatmul.mubr.msk.f32.vlgmr.msra.gmra.mxu0 %vm910_vm3, %v2681_v60 }
0x2ac0   :  { %5267 = vmatprep.mubr.msk.f32.mxu0 %vm6151_vm1, %v6150_v48  ;;  %5260 = vmatpush3.msra.mxu0 %v2946_v54 }
0x2ac1   :  { %5261 = vmatprep.subr.mxu0 %v6150_v48 }
0x2ac2   :  { %5262 = vmatpush3.msra.mxu0 %v2945_v55 }
0x2ac3   :  { %5263 = vmatprep.subr.mxu0 %v6150_v48 }
0x2ac4   :  { %5264 = vmatpush3.msra.mxu0 %v2944_v36 }
0x2ac5   :  { %5265 = vmatprep.subr.mxu0 %v6150_v48 }
0x2ac6   :  { %5266 = vmatpush3.msra.mxu0 %v2943_v56 }
0x2ac7   :  { %5281 = vmatprep.subr.mxu0 %v6150_v48 }
0x2b7f   :  { %v2750_v61 = vpop.f32.mrf.mxu0 }
0x2b80   :  { %v2755_v62 = vrot.slane %v2750_v61, 2 }
0x2b81   :  { %v5247_v63 = vpop.f32.mrf.mxu0 }
0x2b82   :  { %v2757_v0 = vadd.f32 %v2755_v62, %v6621_v31  ;;  %v6772_v63 = vsub.s32 0, %v6358_v39 }
0x2b84   :  { %5611 = vtanh.f32 %v2757_v0  ;;  %v4674_v2 = vmul.f32 -1.442695, %v2757_v0  ;;  %v6775_v0 = vsub.s32 1, %v6358_v39 }
0x2b86   :  { %5613 = vpow2.f32 %v4674_v2  ;;  %v2874_v2 = vld [vmem:[#allocation17] sm:$0x7] }
0x2b91   :  { %v5612_v1 = vpop.eup %5611 }
0x2b92   :  { %2770 = vrot.lane.b32.xlu0 %v5612_v1, %s6152_s0  ;;  %v2873_v1 = vld [vmem:[#allocation16] sm:$0x7] }
0x2b93   :  { %v5614_v3 = vpop.eup %5613 }
0x2b94   :  { %v2761_v4 = vadd.f32 1.0, %v5614_v3  ;;  %v2914_v3 = vrot.slane %v2873_v1, %v6772_v63 }
0x2b96   :  { %5615 = vrcp.f32 %v2761_v4  ;;  %v2925_v4 = vrot.slane %v2873_v1, %v6775_v0 }
0x2ba3   :  { %v5616_v32 = vpop.eup %5615 }
0x2ba4   :  { %v2768_v8 = vmul.f32 %v5616_v32, %v2766_v7  ;;  %v2919_v7 = vrot.slane %v2874_v2, %v6772_v63 }
0x2c04   :  { %v2771_v5 = vpop.permute.xlu0 %2770 }
0x2c05   :  { %v2773_v6 = vmul.f32 %v5616_v32, %v2771_v5  ;;  %v6780_v5 = vsub.s32 2, %v6358_v39 }
0x2c07   :  { %2775 = vrot.lane.b32.xlu1 %v2773_v6, %s6153_s28  ;;  %v2936_v19 = vrot.slane %v2873_v1, %v6780_v5  ;;  %v2941_v20 = vrot.slane %v2874_v2, %v6780_v5 }
0x2c79   :  { %v2776_v31 = vpop.permute.xlu1 %2775 }
0x2c7a   :  { %v2778_v9 = vadd.f32 %v2776_v31, %v2768_v8  ;;  %v2930_v31 = vrot.slane %v2874_v2, %v6775_v0 }
0x2c7c   :  { %5617 = vtanh.f32 %v2778_v9 }
0x2c89   :  { %v5618_v10 = vpop.eup %5617 }
0x2c8a   :  { %2781 = vrot.lane.b32.xlu0 %v5618_v10, %s6152_s0 }
0x2ca9   :  { %2877 = vadd.xlane.f32.xlu0 %v2876_v18 }
0x2cfc   :  { %v2782_v33 = vpop.permute.xlu0 %2781 }
0x2cfd   :  { %v2784_v21 = vmul.f32 %v5616_v32, %v2782_v33 }
0x2cff   :  { %v2797_v24 = vrot.slane %v2784_v21, 6 }
0x2d01   :  { %2798 = vrot.lane.b32.xlu1 %v2797_v24, %s6153_s28 }
0x2d25   :  { %2880 = vadd.xlane.f32.xlu1 %v2879_v25 }
0x2d32   :  { %v2878_v35 = vpop.xlane.xlu0 %2877 }
0x2d73   :  { %v2799_v26 = vpop.permute.xlu1 %2798 }
0x2d74   :  { %5257 = vmatmul.mubr.msk.f32.vlgmr.msra.gmra.mxu1 %vm910_vm3, %v2799_v26 }
0x2d75   :  { %5278 = vmatprep.mubr.msk.f32.mxu1 %vm6151_vm1, %v6150_v48  ;;  %5271 = vmatpush3.msra.mxu1 %v2946_v54 }
0x2d76   :  { %5272 = vmatprep.subr.mxu1 %v6150_v48 }
0x2d77   :  { %5273 = vmatpush3.msra.mxu1 %v2945_v55 }
0x2d78   :  { %5274 = vmatprep.subr.mxu1 %v6150_v48 }
0x2d79   :  { %5275 = vmatpush3.msra.mxu1 %v2944_v36 }
0x2d7a   :  { %5276 = vmatprep.subr.mxu1 %v6150_v48 }
0x2d7b   :  { %5277 = vmatpush3.msra.mxu1 %v2943_v56 }
0x2d7c   :  { %5292 = vmatprep.subr.mxu1 %v6150_v48 }
0x2dae   :  { %v2881_v37 = vpop.xlane.xlu1 %2880 }
0x2daf   :  { %v2886_v40 = vadd.f32 %v2881_v37, %v2878_v35 }
0x2e34   :  { %v2868_v27 = vpop.f32.mrf.mxu1 }
0x2e35   :  { %v2869_v28 = vadd.f32 %v4675_v15, %v2868_v27 }
0x2e36   :  { %v5258_v29 = vpop.f32.mrf.mxu1 }
0x2e37   :  { %v6749_v30 = vmax.f32 %v2869_v28, 0.0 }
0x2e39   :  { %v2882_v34 = vsel %vm2875_vm6, %v6749_v30, 0.0 }
0x2e3a   :  { %2883 = vadd.xlane.f32.xlu0 %v2882_v34 }
0x2ec3   :  { %v2884_v41 = vpop.xlane.xlu0 %2883 }
0x2ec4   :  { %v2887_v42 = vadd.f32 %v2886_v40, %v2884_v41 }
0x2ec6   :  { %v2888_v43 = vmul.f32 0.010416667, %v2887_v42 }
0x2ec8   :  { %v2890_v44 = vsub.f32 %v6742_v14, %v2888_v43  ;;  %v2889_v45 = vsub.f32 %v6728_v17, %v2888_v43  ;;  %v2891_v46 = vsub.f32 %v6749_v30, %v2888_v43 }
0x2eca   :  { %v2896_v47 = vmul.f32 %v2890_v44, %v2890_v44  ;;  %v2892_v49 = vmul.f32 %v2889_v45, %v2889_v45  ;;  %v2900_v52 = vmul.f32 %v2891_v46, %v2891_v46 }
0x2ecc   :  { %v2897_v50 = vsel %vm2875_vm6, %v2896_v47, 0.0  ;;  %v2893_v51 = vsel %vm2875_vm6, %v2892_v49, 0.0  ;;  %v2901_v53 = vsel %vm2875_vm6, %v2900_v52, 0.0 }
0x2ecd   :  { %2898 = vadd.xlane.f32.xlu1 %v2897_v50  ;;  %2894 = vadd.xlane.f32.xlu0 %v2893_v51 }
0x2ed1   :  { %2902 = vadd.xlane.f32.xlu0 %v2901_v53 }
0x2f56   :  { %v2899_v57 = vpop.xlane.xlu1 %2898  ;;  %v2895_v38 = vpop.xlane.xlu0 %2894 }
0x2f57   :  { %v2905_v58 = vadd.f32 %v2899_v57, %v2895_v38 }
0x2f5a   :  { %v2903_v59 = vpop.xlane.xlu0 %2902 }
0x2f5b   :  { %v2906_v60 = vadd.f32 %v2905_v58, %v2903_v59 }
0x2f5d   :  { %v2907_v61 = vmul.f32 0.010416667, %v2906_v60 }
0x2f5f   :  { %v2908_v62 = vadd.f32 1e-05, %v2907_v61 }
0x2f61   :  { %5619 = vrsqrt.f32 %v2908_v62 }
0x2f6e   :  { %v5620_v32 = vpop.eup %5619 }
0x2f6f   :  { %v2910_v6 = vmul.f32 %v5620_v32, %v2889_v45  ;;  %v2921_v8 = vmul.f32 %v5620_v32, %v2890_v44  ;;  %v2932_v18 = vmul.f32 %v5620_v32, %v2891_v46 }
0x2f71   :  { %v2915_v9 = vmul.f32 %v2914_v3, %v2910_v6  ;;  %v2926_v10 = vmul.f32 %v2925_v4, %v2921_v8  ;;  %v2937_v39 = vmul.f32 %v2936_v19, %v2932_v18 }
0x2f73   :  { %v2920_v11 = vadd.f32 %v2919_v7, %v2915_v9  ;;  %v2931_v16 = vadd.f32 %v2930_v31, %v2926_v10  ;;  %v2942_v23 = vadd.f32 %v2941_v20, %v2937_v39 }
0x2f75   :  { %5268 = vmatmul.mubr.msk.f32.vlgmr.msra.gmra.mxu0 %vm910_vm3, %v2920_v11  ;;  %5279 = vmatmul.mubr.msk.f32.vlgmr.msra.gmra.mxu1 %vm910_vm3, %v2931_v16 }
0x2f76   :  { %5282 = vmatpush3.msra.mxu0 %v2946_v54  ;;  %5289 = vmatprep.mubr.msk.f32.mxu0 %vm6151_vm1, %v6150_v48 }
0x2f77   :  { %5283 = vmatprep.subr.mxu0 %v6150_v48  ;;  %5300 = vmatprep.mubr.msk.f32.mxu1 %vm6151_vm1, %v6150_v48 }
0x2f78   :  { %5284 = vmatpush3.msra.mxu0 %v2945_v55 }
0x2f79   :  { %5285 = vmatprep.subr.mxu0 %v6150_v48 }
0x2f7a   :  { %5286 = vmatpush3.msra.mxu0 %v2944_v36 }
0x2f7b   :  { %5287 = vmatprep.subr.mxu0 %v6150_v48 }
0x2f7c   :  { %5288 = vmatpush3.msra.mxu0 %v2943_v56 }
0x2f7d   :  { %5290 = vmatmul.mubr.msk.f32.vlgmr.msra.gmra.mxu0 %vm910_vm3, %v2942_v23  ;;  %5303 = vmatprep.subr.mxu0 %v6150_v48 }
0x2f7e   :  { %5311 = vmatprep.mubr.msk.f32.mxu0 %vm6151_vm1, %v6150_v48 }
0x3035   :  { %v3023_v33 = vpop.f32.mrf.mxu0  ;;  %v3096_v21 = vpop.f32.mrf.mxu1 }
0x3036   :  { %v6799_v24 = vadd.f32 %v4677_v12, %v3023_v33  ;;  %v6801_v22 = vadd.f32 %v4677_v12, %v3096_v21 }
0x3037   :  { %v5269_v13 = vpop.f32.mrf.mxu0  ;;  %v5280_v25 = vpop.f32.mrf.mxu1 }
0x3038   :  { %3174 = vrot.lane.b32.xlu1 %v6799_v24, %s6154_s13  ;;  %3183 = vrot.lane.b32.xlu0 %v6801_v22, %s6154_s13 }
0x303d   :  { %v3169_v26 = vpop.f32.mrf.mxu0 }
0x303e   :  { %v6805_v15 = vadd.f32 %v4677_v12, %v3169_v26 }
0x303f   :  { %v5291_v27 = vpop.f32.mrf.mxu0 }
0x3040   :  { %3191 = vrot.lane.b32.xlu1 %v6805_v15, %s6154_s13 }
0x30aa   :  { %v3175_v28 = vpop.permute.xlu1 %3174  ;;  %v3184_v29 = vpop.permute.xlu0 %3183 }
0x30ab   :  { %v3177_v34 = vmul.f32 %v3175_v28, %v6799_v24  ;;  %v3186_v35 = vmul.f32 %v3184_v29, %v6799_v24  ;;  %v3233_v37 = vmul.f32 %v3175_v28, %v6801_v22  ;;  %v3237_v40 = vmul.f32 %v3184_v29, %v6801_v22 }
0x30ac   :  { %v3277_v41 = vmul.f32 %v3175_v28, %v6805_v15  ;;  %v3281_v42 = vmul.f32 %v3184_v29, %v6805_v15 }
0x30ad   :  { %3322 = vrot.lane.b32.xlu1 %v3177_v34, %s6155_s22  ;;  %3329 = vrot.lane.b32.xlu0 %v3186_v35, %s6155_s22  ;;  %v3179_v43 = vsel %vm3178_vm7, %v3177_v34, 0.0  ;;  %v3238_v44 = vsel %vm3178_vm7, %v3237_v40, 0.0  ;;  %v3187_v45 = vsel %vm3178_vm7, %v3186_v35, 0.0  ;;  %v3234_v47 = vsel %vm3178_vm7, %v3233_v37, 0.0 }
0x30ae   :  { %v3282_v46 = vsel %vm3178_vm7, %v3281_v42, 0.0  ;;  %v3278_v49 = vsel %vm3178_vm7, %v3277_v41, 0.0 }
0x30b1   :  { %3486 = vrot.lane.b32.xlu1 %v3186_v35, %s6156_s30  ;;  %3480 = vrot.lane.b32.xlu0 %v3177_v34, %s6156_s30 }
0x30b2   :  { %v3192_v50 = vpop.permute.xlu1 %3191 }
0x30b3   :  { %v3194_v51 = vmul.f32 %v3192_v50, %v6799_v24  ;;  %v3241_v52 = vmul.f32 %v3192_v50, %v6801_v22  ;;  %v3285_v53 = vmul.f32 %v3192_v50, %v6805_v15 }
0x30b5   :  { %3630 = vrot.lane.b32.xlu1 %v3177_v34, %s6157_s20  ;;  %3636 = vrot.lane.b32.xlu0 %v3186_v35, %s6157_s20  ;;  %v3286_v57 = vsel %vm3178_vm7, %v3285_v53, 0.0  ;;  %v3195_v62 = vsel %vm3178_vm7, %v3194_v51, 0.0  ;;  %v3242_v4 = vsel %vm3178_vm7, %v3241_v52, 0.0 }
0x30b9   :  { %3382 = vrot.lane.b32.xlu1 %v3237_v40, %s6155_s22  ;;  %3375 = vrot.lane.b32.xlu0 %v3233_v37, %s6155_s22 }
0x30bd   :  { %3530 = vrot.lane.b32.xlu1 %v3233_v37, %s6156_s30  ;;  %3536 = vrot.lane.b32.xlu0 %v3237_v40, %s6156_s30 }
0x30c1   :  { %3428 = vrot.lane.b32.xlu1 %v3277_v41, %s6155_s22  ;;  %3435 = vrot.lane.b32.xlu0 %v3281_v42, %s6155_s22 }
0x30c5   :  { %3686 = vrot.lane.b32.xlu1 %v3237_v40, %s6157_s20  ;;  %3680 = vrot.lane.b32.xlu0 %v3233_v37, %s6157_s20 }
0x30c9   :  { %3580 = vrot.lane.b32.xlu1 %v3277_v41, %s6156_s30  ;;  %3586 = vrot.lane.b32.xlu0 %v3281_v42, %s6156_s30 }
0x30cd   :  { %3730 = vrot.lane.b32.xlu1 %v3277_v41, %s6157_s20  ;;  %3736 = vrot.lane.b32.xlu0 %v3281_v42, %s6157_s20 }
0x30ec   :  { %3180 = vadd.xlane.f32.xlu0 %v3179_v43 }
0x30f0   :  { %3239 = vadd.xlane.f32.xlu0 %v3238_v44 }
0x30f1   :  { %3188 = vadd.xlane.f32.xlu1 %v3187_v45 }
0x30f4   :  { %3283 = vadd.xlane.f32.xlu0 %v3282_v46 }
0x30f5   :  { %3235 = vadd.xlane.f32.xlu1 %v3234_v47 }
0x30f9   :  { %3279 = vadd.xlane.f32.xlu1 %v3278_v49 }
0x310a   :  { %3492 = vrot.lane.b32.xlu0 %v3194_v51, %s6156_s30  ;;  %3336 = vrot.lane.b32.xlu1 %v3194_v51, %s6155_s22 }
0x310e   :  { %3389 = vrot.lane.b32.xlu0 %v3241_v52, %s6155_s22  ;;  %3642 = vrot.lane.b32.xlu1 %v3194_v51, %s6157_s20 }
0x3112   :  { %3442 = vrot.lane.b32.xlu0 %v3285_v53, %s6155_s22  ;;  %3542 = vrot.lane.b32.xlu1 %v3241_v52, %s6156_s30 }
0x3116   :  { %3592 = vrot.lane.b32.xlu0 %v3285_v53, %s6156_s30  ;;  %3692 = vrot.lane.b32.xlu1 %v3241_v52, %s6157_s20 }
0x311a   :  { %3742 = vrot.lane.b32.xlu1 %v3285_v53, %s6157_s20 }
0x311f   :  { %v3323_v54 = vpop.permute.xlu1 %3322  ;;  %v3330_v55 = vpop.permute.xlu0 %3329 }
0x3120   :  { %v3325_v58 = vsel %vm3178_vm7, %v3323_v54, 0.0  ;;  %v3332_v61 = vsel %vm3178_vm7, %v3330_v55, 0.0 }
0x3123   :  { %v3487_v36 = vpop.permute.xlu1 %3486  ;;  %v3481_v56 = vpop.permute.xlu0 %3480 }
0x3124   :  { %v3489_v2 = vsel %vm3178_vm7, %v3487_v36, 0.0  ;;  %v3483_v7 = vsel %vm3178_vm7, %v3481_v56, 0.0 }
0x3127   :  { %v3631_v38 = vpop.permute.xlu1 %3630  ;;  %v3637_v59 = vpop.permute.xlu0 %3636 }
0x3128   :  { %v3633_v32 = vsel %vm3178_vm7, %v3631_v38, 0.0  ;;  %v3639_v9 = vsel %vm3178_vm7, %v3637_v59, 0.0 }
0x312b   :  { %v3383_v60 = vpop.permute.xlu1 %3382  ;;  %v3376_v1 = vpop.permute.xlu0 %3375 }
0x312c   :  { %v3385_v31 = vsel %vm3178_vm7, %v3383_v60, 0.0  ;;  %v3378_v18 = vsel %vm3178_vm7, %v3376_v1, 0.0 }
0x312f   :  { %v3531_v3 = vpop.permute.xlu1 %3530  ;;  %v3537_v6 = vpop.permute.xlu0 %3536 }
0x3130   :  { %v3539_v11 = vsel %vm3178_vm7, %v3537_v6, 0.0  ;;  %v3533_v20 = vsel %vm3178_vm7, %v3531_v3, 0.0 }
0x3133   :  { %v3429_v8 = vpop.permute.xlu1 %3428  ;;  %v3436_v10 = vpop.permute.xlu0 %3435 }
0x3134   :  { %v3438_v19 = vsel %vm3178_vm7, %v3436_v10, 0.0  ;;  %v3431_v33 = vsel %vm3178_vm7, %v3429_v8, 0.0 }
0x3135   :  { %3287 = vadd.xlane.f32.xlu0 %v3286_v57 }
0x3137   :  { %v3687_v16 = vpop.permute.xlu1 %3686  ;;  %v3681_v39 = vpop.permute.xlu0 %3680 }
0x3138   :  { %v3683_v12 = vsel %vm3178_vm7, %v3681_v39, 0.0  ;;  %v3689_v25 = vsel %vm3178_vm7, %v3687_v16, 0.0 }
0x3139   :  { %3326 = vadd.xlane.f32.xlu0 %v3325_v58 }
0x313b   :  { %v3581_v23 = vpop.permute.xlu1 %3580  ;;  %v3587_v26 = vpop.permute.xlu0 %3586 }
0x313c   :  { %v3583_v21 = vsel %vm3178_vm7, %v3581_v23, 0.0  ;;  %v3589_v28 = vsel %vm3178_vm7, %v3587_v26, 0.0 }
0x313d   :  { %3333 = vadd.xlane.f32.xlu0 %v3332_v61 }
0x313e   :  { %3196 = vadd.xlane.f32.xlu1 %v3195_v62 }
0x313f   :  { %v3731_v13 = vpop.permute.xlu1 %3730  ;;  %v3737_v29 = vpop.permute.xlu0 %3736 }
0x3140   :  { %v3733_v27 = vsel %vm3178_vm7, %v3731_v13, 0.0  ;;  %v3739_v60 = vsel %vm3178_vm7, %v3737_v29, 0.0 }
0x3141   :  { %3490 = vadd.xlane.f32.xlu0 %v3489_v2 }
0x3142   :  { %3243 = vadd.xlane.f32.xlu1 %v3242_v4 }
0x3145   :  { %3634 = vadd.xlane.f32.xlu0 %v3633_v32 }
0x3146   :  { %3484 = vadd.xlane.f32.xlu1 %v3483_v7 }
0x3149   :  { %3386 = vadd.xlane.f32.xlu0 %v3385_v31 }
0x314a   :  { %3640 = vadd.xlane.f32.xlu1 %v3639_v9 }
0x314d   :  { %3540 = vadd.xlane.f32.xlu0 %v3539_v11 }
0x314e   :  { %3379 = vadd.xlane.f32.xlu1 %v3378_v18 }
0x3151   :  { %3439 = vadd.xlane.f32.xlu0 %v3438_v19 }
0x3152   :  { %3534 = vadd.xlane.f32.xlu1 %v3533_v20 }
0x3155   :  { %3684 = vadd.xlane.f32.xlu0 %v3683_v12 }
0x3156   :  { %3432 = vadd.xlane.f32.xlu1 %v3431_v33 }
0x3159   :  { %3584 = vadd.xlane.f32.xlu0 %v3583_v21 }
0x315a   :  { %3690 = vadd.xlane.f32.xlu1 %v3689_v25 }
0x315d   :  { %3734 = vadd.xlane.f32.xlu0 %v3733_v27 }
0x315e   :  { %3590 = vadd.xlane.f32.xlu1 %v3589_v28 }
0x3175   :  { %v3181_v34 = vpop.xlane.xlu0 %3180 }
0x3179   :  { %v3240_v35 = vpop.xlane.xlu0 %3239 }
0x317a   :  { %v3189_v37 = vpop.xlane.xlu1 %3188 }
0x317b   :  { %v3199_v3 = vsel %vm3198_vm9, %v3181_v34, %v3189_v37 }
0x317d   :  { %v3284_v40 = vpop.xlane.xlu0 %3283 }
0x317e   :  { %v3236_v41 = vpop.xlane.xlu1 %3235 }
0x317f   :  { %v3245_v7 = vsel %vm3198_vm9, %v3236_v41, %v3240_v35 }
0x3181   :  { %v3493_v42 = vpop.permute.xlu0 %3492 }
0x3182   :  { %v3280_v43 = vpop.xlane.xlu1 %3279  ;;  %v3495_v44 = vsel %vm3178_vm7, %v3493_v42, 0.0 }
0x3183   :  { %3496 = vadd.xlane.f32.xlu1 %v3495_v44  ;;  %v3289_v61 = vsel %vm3198_vm9, %v3280_v43, %v3284_v40 }
0x3185   :  { %v3390_v47 = vpop.permute.xlu0 %3389 }
0x3186   :  { %v3337_v45 = vpop.permute.xlu1 %3336  ;;  %v3392_v53 = vsel %vm3178_vm7, %v3390_v47, 0.0 }
0x3187   :  { %v3339_v46 = vsel %vm3178_vm7, %v3337_v45, 0.0 }
0x3188   :  { %3340 = vadd.xlane.f32.xlu0 %v3339_v46 }
0x3189   :  { %v3443_v51 = vpop.permute.xlu0 %3442 }
0x318a   :  { %v3643_v49 = vpop.permute.xlu1 %3642  ;;  %v3445_v36 = vsel %vm3178_vm7, %v3443_v51, 0.0 }
0x318b   :  { %v3645_v50 = vsel %vm3178_vm7, %v3643_v49, 0.0 }
0x318c   :  { %3646 = vadd.xlane.f32.xlu0 %v3645_v50 }
0x318d   :  { %v3593_v57 = vpop.permute.xlu0 %3592 }
0x318e   :  { %v3543_v52 = vpop.permute.xlu1 %3542  ;;  %v3595_v58 = vsel %vm3178_vm7, %v3593_v57, 0.0 }
0x318f   :  { %v3545_v54 = vsel %vm3178_vm7, %v3543_v52, 0.0 }
0x3190   :  { %3393 = vadd.xlane.f32.xlu0 %v3392_v53  ;;  %3546 = vadd.xlane.f32.xlu1 %v3545_v54 }
0x3192   :  { %v3693_v55 = vpop.permute.xlu1 %3692 }
0x3193   :  { %v3695_v56 = vsel %vm3178_vm7, %v3693_v55, 0.0 }
0x3194   :  { %3446 = vadd.xlane.f32.xlu1 %v3445_v36  ;;  %3696 = vadd.xlane.f32.xlu0 %v3695_v56 }
0x3196   :  { %v3743_v38 = vpop.permute.xlu1 %3742 }
0x3197   :  { %v3745_v59 = vsel %vm3178_vm7, %v3743_v38, 0.0 }
0x3198   :  { %3596 = vadd.xlane.f32.xlu1 %v3595_v58  ;;  %3746 = vadd.xlane.f32.xlu0 %v3745_v59 }
0x319c   :  { %3740 = vadd.xlane.f32.xlu1 %v3739_v60 }
0x31be   :  { %v3288_v62 = vpop.xlane.xlu0 %3287 }
0x31bf   :  { %v6882_v1 = vsel %vm3200_vm8, %v3289_v61, %v3288_v62 }
0x31c0   :  { %v3291_v2 = vsel %vm3202_vm10, %v6882_v1, -inf }
0x31c1   :  { %3292 = vmax.xlane.f32.xlu0 %v3291_v2 }
0x31c2   :  { %v3327_v10 = vpop.xlane.xlu0 %3326 }
0x31c6   :  { %v3334_v11 = vpop.xlane.xlu0 %3333 }
0x31c7   :  { %v3197_v4 = vpop.xlane.xlu1 %3196  ;;  %v3342_v41 = vsel %vm3198_vm9, %v3327_v10, %v3334_v11 }
0x31c8   :  { %v6888_v32 = vsel %vm3200_vm8, %v3199_v3, %v3197_v4 }
0x31c9   :  { %v3203_v6 = vsel %vm3202_vm10, %v6888_v32, -inf }
0x31ca   :  { %3204 = vmax.xlane.f32.xlu1 %v3203_v6  ;;  %v3491_v16 = vpop.xlane.xlu0 %3490 }
0x31cb   :  { %v3244_v8 = vpop.xlane.xlu1 %3243 }
0x31cc   :  { %v6894_v31 = vsel %vm3200_vm8, %v3245_v7, %v3244_v8 }
0x31cd   :  { %v3247_v9 = vsel %vm3202_vm10, %v6894_v31, -inf }
0x31ce   :  { %3248 = vmax.xlane.f32.xlu1 %v3247_v9  ;;  %v3635_v19 = vpop.xlane.xlu0 %3634 }
0x31cf   :  { %v3485_v18 = vpop.xlane.xlu1 %3484 }
0x31d0   :  { %v3498_v29 = vsel %vm3198_vm9, %v3485_v18, %v3491_v16 }
0x31d2   :  { %v3387_v20 = vpop.xlane.xlu0 %3386 }
0x31d3   :  { %v3641_v39 = vpop.xlane.xlu1 %3640 }
0x31d4   :  { %v3648_v45 = vsel %vm3198_vm9, %v3635_v19, %v3641_v39 }
0x31d6   :  { %v3541_v12 = vpop.xlane.xlu0 %3540 }
0x31d7   :  { %v3380_v23 = vpop.xlane.xlu1 %3379 }
0x31d8   :  { %v3395_v50 = vsel %vm3198_vm9, %v3380_v23, %v3387_v20 }
0x31da   :  { %v3440_v21 = vpop.xlane.xlu0 %3439 }
0x31db   :  { %v3535_v33 = vpop.xlane.xlu1 %3534 }
0x31dc   :  { %v3548_v51 = vsel %vm3198_vm9, %v3535_v33, %v3541_v12 }
0x31de   :  { %v3685_v25 = vpop.xlane.xlu0 %3684 }
0x31df   :  { %v3433_v13 = vpop.xlane.xlu1 %3432 }
0x31e0   :  { %v3448_v57 = vsel %vm3198_vm9, %v3433_v13, %v3440_v21 }
0x31e2   :  { %v3585_v27 = vpop.xlane.xlu0 %3584 }
0x31e3   :  { %v3691_v26 = vpop.xlane.xlu1 %3690 }
0x31e4   :  { %v3698_v38 = vsel %vm3198_vm9, %v3685_v25, %v3691_v26 }
0x31e6   :  { %v3735_v35 = vpop.xlane.xlu0 %3734 }
0x31e7   :  { %v3591_v28 = vpop.xlane.xlu1 %3590 }
0x31e8   :  { %v3598_v3 = vsel %vm3198_vm9, %v3585_v27, %v3591_v28 }
0x320c   :  { %v3497_v34 = vpop.xlane.xlu1 %3496 }
0x320d   :  { %v6900_v37 = vsel %vm3200_vm8, %v3498_v29, %v3497_v34  ;;  %v6159_v29 = vmov 0  }
0x320e   :  { %v3500_v40 = vsel %vm3202_vm10, %v6900_v37, -inf  ;;  %5461 = vset.pattern.permute.xlu1 %v6159_v29 }
0x320f   :  { %3501 = vmax.xlane.f32.xlu1 %v3500_v40 }
0x3211   :  { %v3341_v42 = vpop.xlane.xlu0 %3340 }
0x3212   :  { %v6906_v43 = vsel %vm3200_vm8, %v3342_v41, %v3341_v42 }
0x3213   :  { %v3344_v44 = vsel %vm3202_vm10, %v6906_v43, -inf }
0x3214   :  { %3345 = vmax.xlane.f32.xlu0 %v3344_v44 }
0x3215   :  { %v3647_v46 = vpop.xlane.xlu0 %3646 }
0x3216   :  { %v6912_v47 = vsel %vm3200_vm8, %v3648_v45, %v3647_v46 }
0x3217   :  { %v3650_v49 = vsel %vm3202_vm10, %v6912_v47, -inf }
0x3218   :  { %3651 = vmax.xlane.f32.xlu0 %v3650_v49 }
0x3219   :  { %v3394_v52 = vpop.xlane.xlu0 %3393  ;;  %v3547_v53 = vpop.xlane.xlu1 %3546 }
0x321a   :  { %v6919_v54 = vsel %vm3200_vm8, %v3395_v50, %v3394_v52  ;;  %v6922_v55 = vsel %vm3200_vm8, %v3548_v51, %v3547_v53 }
0x321b   :  { %v3397_v36 = vsel %vm3202_vm10, %v6919_v54, -inf  ;;  %v3550_v56 = vsel %vm3202_vm10, %v6922_v55, -inf }
0x321c   :  { %3398 = vmax.xlane.f32.xlu0 %v3397_v36  ;;  %3551 = vmax.xlane.f32.xlu1 %v3550_v56 }
0x321d   :  { %v3697_v58 = vpop.xlane.xlu0 %3696  ;;  %v3447_v59 = vpop.xlane.xlu1 %3446 }
0x321e   :  { %v6931_v60 = vsel %vm3200_vm8, %v3698_v38, %v3697_v58  ;;  %v6934_v61 = vsel %vm3200_vm8, %v3448_v57, %v3447_v59 }
0x321f   :  { %v3700_v62 = vsel %vm3202_vm10, %v6931_v60, -inf  ;;  %v3450_v2 = vsel %vm3202_vm10, %v6934_v61, -inf }
0x3220   :  { %3701 = vmax.xlane.f32.xlu0 %v3700_v62  ;;  %3451 = vmax.xlane.f32.xlu1 %v3450_v2 }
0x3221   :  { %v3597_v4 = vpop.xlane.xlu1 %3596  ;;  %v3747_v9 = vpop.xlane.xlu0 %3746 }
0x3222   :  { %v6942_v6 = vsel %vm3200_vm8, %v3598_v3, %v3597_v4 }
0x3223   :  { %v3600_v7 = vsel %vm3202_vm10, %v6942_v6, -inf }
0x3224   :  { %3601 = vmax.xlane.f32.xlu1 %v3600_v7 }
0x3225   :  { %v3741_v8 = vpop.xlane.xlu1 %3740 }
0x3226   :  { %v3748_v10 = vsel %vm3198_vm9, %v3735_v35, %v3741_v8 }
0x3227   :  { %v6948_v11 = vsel %vm3200_vm8, %v3748_v10, %v3747_v9 }
0x3228   :  { %v3750_v16 = vsel %vm3202_vm10, %v6948_v11, -inf }
0x3229   :  { %3751 = vmax.xlane.f32.xlu0 %v3750_v16 }
0x324a   :  { %v3293_v18 = vpop.xlane.xlu0 %3292 }
0x324b   :  { %v3294_v19 = vsub.f32 %v6882_v1, %v3293_v18 }
0x324d   :  { %v3295_v39 = vmul.f32 1.442695, %v3294_v19 }
0x324f   :  { %5621 = vpow2.f32 %v3295_v39 }
0x3253   :  { %v3205_v20 = vpop.xlane.xlu1 %3204 }
0x3254   :  { %v3206_v23 = vsub.f32 %v6888_v32, %v3205_v20 }
0x3256   :  { %v3207_v12 = vmul.f32 1.442695, %v3206_v23 }
0x3257   :  { %v3249_v33 = vpop.xlane.xlu1 %3248 }
0x3258   :  { %5623 = vpow2.f32 %v3207_v12  ;;  %v3250_v21 = vsub.f32 %v6894_v31, %v3249_v33  ;;  %v6158_v31 = vmov 1  }
0x3259   :  { %5462 = vset.pattern.permute.xlu0 %v6158_v31 }
0x325a   :  { %v3251_v13 = vmul.f32 1.442695, %v3250_v21 }
0x325c   :  { %v6955_v25 = vpop.eup %5621  ;;  %5625 = vpow2.f32 %v3251_v13 }
0x325d   :  { %v3297_v26 = vsel %vm3202_vm10, %v6955_v25, 0.0 }
0x325e   :  { %3298 = vadd.xlane.f32.xlu0 %v3297_v26 }
0x3265   :  { %v6959_v27 = vpop.eup %5623 }
0x3266   :  { %v3209_v1 = vsel %vm3202_vm10, %v6959_v27, 0.0 }
0x3267   :  { %3210 = vadd.xlane.f32.xlu1 %v3209_v1 }
0x3269   :  { %v6963_v32 = vpop.eup %5625 }
0x326a   :  { %v3253_v28 = vsel %vm3202_vm10, %v6963_v32, 0.0 }
0x326b   :  { %3254 = vadd.xlane.f32.xlu1 %v3253_v28 }
0x3298   :  { %v3502_v34 = vpop.xlane.xlu1 %3501 }
0x3299   :  { %v3503_v35 = vsub.f32 %v6900_v37, %v3502_v34 }
0x329b   :  { %v3504_v40 = vmul.f32 1.442695, %v3503_v35 }
0x329d   :  { %5627 = vpow2.f32 %v3504_v40  ;;  %v3346_v41 = vpop.xlane.xlu0 %3345 }
0x329e   :  { %v3347_v42 = vsub.f32 %v6906_v43, %v3346_v41 }
0x32a0   :  { %v3348_v44 = vmul.f32 1.442695, %v3347_v42 }
0x32a1   :  { %v3652_v45 = vpop.xlane.xlu0 %3651 }
0x32a2   :  { %5629 = vpow2.f32 %v3348_v44  ;;  %v3653_v46 = vsub.f32 %v6912_v47, %v3652_v45 }
0x32a4   :  { %v3654_v49 = vmul.f32 1.442695, %v3653_v46  ;;  %v6160_v46 = vmov 2  }
0x32a5   :  { %v3399_v50 = vpop.xlane.xlu0 %3398  ;;  %v3552_v51 = vpop.xlane.xlu1 %3551 }
0x32a6   :  { %5631 = vpow2.f32 %v3654_v49  ;;  %v3400_v52 = vsub.f32 %v6919_v54, %v3399_v50  ;;  %v3553_v53 = vsub.f32 %v6922_v55, %v3552_v51 }
0x32a8   :  { %v3401_v36 = vmul.f32 1.442695, %v3400_v52  ;;  %v3554_v37 = vmul.f32 1.442695, %v3553_v53 }
0x32a9   :  { %v3702_v56 = vpop.xlane.xlu0 %3701  ;;  %v3452_v57 = vpop.xlane.xlu1 %3451 }
0x32aa   :  { %v6974_v38 = vpop.eup %5627  ;;  %5633 = vpow2.f32 %v3401_v36  ;;  %v3703_v43 = vsub.f32 %v6931_v60, %v3702_v56  ;;  %v3453_v58 = vsub.f32 %v6934_v61, %v3452_v57 }
0x32ab   :  { %5635 = vpow2.f32 %v3554_v37  ;;  %v3506_v47 = vsel %vm3202_vm10, %v6974_v38, 0.0 }
0x32ac   :  { %v3704_v59 = vmul.f32 1.442695, %v3703_v43  ;;  %v3454_v62 = vmul.f32 1.442695, %v3453_v58  ;;  %3507 = vadd.xlane.f32.xlu1 %v3506_v47 }
0x32ad   :  { %v3602_v54 = vpop.xlane.xlu1 %3601 }
0x32ae   :  { %5637 = vpow2.f32 %v3704_v59  ;;  %v3603_v55 = vsub.f32 %v6942_v6, %v3602_v54 }
0x32af   :  { %v6981_v2 = vpop.eup %5629  ;;  %5639 = vpow2.f32 %v3454_v62 }
0x32b0   :  { %v3604_v3 = vmul.f32 1.442695, %v3603_v55  ;;  %v3350_v60 = vsel %vm3202_vm10, %v6981_v2, 0.0 }
0x32b1   :  { %3351 = vadd.xlane.f32.xlu0 %v3350_v60 }
0x32b2   :  { %5641 = vpow2.f32 %v3604_v3  ;;  %v3752_v61 = vpop.xlane.xlu0 %3751 }
0x32b3   :  { %v6985_v4 = vpop.eup %5631  ;;  %v3753_v7 = vsub.f32 %v6948_v11, %v3752_v61 }
0x32b4   :  { %v3656_v8 = vsel %vm3202_vm10, %v6985_v4, 0.0 }
0x32b5   :  { %v3754_v9 = vmul.f32 1.442695, %v3753_v7  ;;  %3657 = vadd.xlane.f32.xlu0 %v3656_v8 }
0x32b7   :  { %v6990_v6 = vpop.eup %5633  ;;  %5643 = vpow2.f32 %v3754_v9 }
0x32b8   :  { %v6992_v10 = vpop.eup %5635  ;;  %v3403_v16 = vsel %vm3202_vm10, %v6990_v6, 0.0 }
0x32b9   :  { %3404 = vadd.xlane.f32.xlu0 %v3403_v16  ;;  %v3556_v18 = vsel %vm3202_vm10, %v6992_v10, 0.0 }
0x32ba   :  { %3557 = vadd.xlane.f32.xlu1 %v3556_v18 }
0x32bb   :  { %v6998_v19 = vpop.eup %5637 }
0x32bc   :  { %v7000_v11 = vpop.eup %5639  ;;  %v3706_v39 = vsel %vm3202_vm10, %v6998_v19, 0.0 }
0x32bd   :  { %3707 = vadd.xlane.f32.xlu0 %v3706_v39  ;;  %v3456_v20 = vsel %vm3202_vm10, %v7000_v11, 0.0 }
0x32be   :  { %3457 = vadd.xlane.f32.xlu1 %v3456_v20 }
0x32bf   :  { %v7006_v23 = vpop.eup %5641 }
0x32c0   :  { %v3606_v12 = vsel %vm3202_vm10, %v7006_v23, 0.0 }
0x32c2   :  { %3607 = vadd.xlane.f32.xlu1 %v3606_v12 }
0x32c4   :  { %v7010_v33 = vpop.eup %5643 }
0x32c5   :  { %v3756_v21 = vsel %vm3202_vm10, %v7010_v33, 0.0 }
0x32c6   :  { %3757 = vadd.xlane.f32.xlu0 %v3756_v21 }
0x32e7   :  { %v3299_v26 = vpop.xlane.xlu0 %3298 }
0x32f0   :  { %v3211_v13 = vpop.xlane.xlu1 %3210 }
0x32f1   :  { %5645 = vrcp.f32 %v3211_v13 }
0x32f4   :  { %v3255_v1 = vpop.xlane.xlu1 %3254 }
0x32f5   :  { %5647 = vrcp.f32 %v3255_v1 }
0x32f6   :  { %5649 = vrcp.f32 %v3299_v26 }
0x32fe   :  { %v5646_v28 = vpop.eup %5645 }
0x32ff   :  { %v3213_v34 = vmul.f32 %v5646_v28, %v6959_v27 }
0x3301   :  { %v3214_v35 = vmul.f32 0.35355338, %v3213_v34 }
0x3302   :  { %v5648_v40 = vpop.eup %5647 }
0x3303   :  { %v5650_v41 = vpop.eup %5649  ;;  %3222 = vperm.xlu0 %5462, %v3214_v35   ;;  %3217 = vperm.xlu1 %5461, %v3214_v35   ;;  %v3257_v42 = vmul.f32 %v5648_v40, %v6963_v32 }
0x3304   :  { %v3301_v45 = vmul.f32 %v5650_v41, %v6955_v25 }
0x3305   :  { %v3258_v44 = vmul.f32 0.35355338, %v3257_v42 }
0x3306   :  { %v3302_v49 = vmul.f32 0.35355338, %v3301_v45 }
0x3307   :  { %5463 = vset.pattern.permute.xlu1 %v6160_v46  ;;  %3266 = vperm.xlu0 %5462, %v3258_v44  }
0x3308   :  { %3228 = vperm.xlu1 %5463, %v3214_v35  }
0x330b   :  { %5466 = vset.pattern.permute.xlu0 %v6159_v29 }
0x330c   :  { %5464 = vset.pattern.permute.xlu1 %v6159_v29  ;;  %3305 = vperm.xlu0 %5466, %v3302_v49  }
0x330d   :  { %3261 = vperm.xlu1 %5464, %v3258_v44  }
0x3310   :  { %5468 = vset.pattern.permute.xlu0 %v6160_v46 }
0x3311   :  { %3316 = vperm.xlu0 %5468, %v3302_v49   ;;  %5465 = vset.pattern.permute.xlu1 %v6160_v46 }
0x3312   :  { %3272 = vperm.xlu1 %5465, %v3258_v44  }
0x3316   :  { %5467 = vset.pattern.permute.xlu1 %v6158_v31 }
0x3317   :  { %3310 = vperm.xlu1 %5467, %v3302_v49  }
0x331b   :  { %5469 = vset.pattern.permute.xlu1 %v6159_v29 }
0x3335   :  { %v3508_v25 = vpop.xlane.xlu1 %3507 }
0x3336   :  { %5651 = vrcp.f32 %v3508_v25 }
0x333a   :  { %v3352_v27 = vpop.xlane.xlu0 %3351 }
0x333b   :  { %5653 = vrcp.f32 %v3352_v27 }
0x333e   :  { %v3658_v32 = vpop.xlane.xlu0 %3657 }
0x3342   :  { %v3405_v50 = vpop.xlane.xlu0 %3404 }
0x3343   :  { %v5652_v51 = vpop.eup %5651  ;;  %v3558_v52 = vpop.xlane.xlu1 %3557 }
0x3344   :  { %5655 = vrcp.f32 %v3558_v52  ;;  %v3510_v53 = vmul.f32 %v5652_v51, %v6974_v38 }
0x3345   :  { %5657 = vrcp.f32 %v3405_v50 }
0x3346   :  { %v3511_v36 = vmul.f32 0.35355338, %v3510_v53  ;;  %v3708_v37 = vpop.xlane.xlu0 %3707 }
0x3347   :  { %v3458_v56 = vpop.xlane.xlu1 %3457  ;;  %5659 = vrcp.f32 %v3708_v37 }
0x3348   :  { %v5654_v57 = vpop.eup %5653  ;;  %3525 = vperm.xlu0 %5468, %v3511_v36  }
0x3349   :  { %v3354_v43 = vmul.f32 %v5654_v57, %v6981_v2 }
0x334b   :  { %v3608_v58 = vpop.xlane.xlu1 %3607  ;;  %v3355_v47 = vmul.f32 0.35355338, %v3354_v43  ;;  %v7070_v43 = vld [vmem:[#allocation20 + $0x18] sm:$0xff] }
0x334c   :  { %5479 = vset.pattern.permute.xlu0 %v6159_v29  ;;  %5661 = vrcp.f32 %v3608_v58  ;;  %5293 = vmatpush3.msra.mxu1 %v7070_v43 }
0x334d   :  { %3358 = vperm.xlu1 %5469, %v3355_v47   ;;  %5663 = vrcp.f32 %v3658_v32  ;;  %5304 = vmatpush3.msra.mxu0 %v7070_v43 }
0x334e   :  { %5294 = vmatprep.subr.mxu1 %v6150_v48  ;;  %5305 = vmatprep.subr.mxu0 %v6150_v48 }
0x334f   :  { %v3758_v59 = vpop.xlane.xlu0 %3757 }
0x3350   :  { %5665 = vrcp.f32 %v3758_v59 }
0x3351   :  { %v5656_v62 = vpop.eup %5655  ;;  %5470 = vset.pattern.permute.xlu1 %v6158_v31  ;;  %5667 = vrcp.f32 %v3458_v56 }
0x3352   :  { %v5658_v38 = vpop.eup %5657  ;;  %3363 = vperm.xlu1 %5470, %v3355_v47   ;;  %v3560_v54 = vmul.f32 %v5656_v62, %v6992_v10 }
0x3353   :  { %v3407_v2 = vmul.f32 %v5658_v38, %v6990_v6 }
0x3354   :  { %v3561_v55 = vmul.f32 0.35355338, %v3560_v54  ;;  %v5660_v3 = vpop.eup %5659 }
0x3355   :  { %v3408_v60 = vmul.f32 0.35355338, %v3407_v2  ;;  %v3710_v61 = vmul.f32 %v5660_v3, %v6998_v19 }
0x3356   :  { %3564 = vperm.xlu0 %5479, %v3561_v55   ;;  %5471 = vset.pattern.permute.xlu1 %v6159_v29 }
0x3357   :  { %3514 = vperm.xlu1 %5471, %v3511_v36   ;;  %v3711_v9 = vmul.f32 0.35355338, %v3710_v61 }
0x3359   :  { %v5662_v7 = vpop.eup %5661 }
0x335a   :  { %5480 = vset.pattern.permute.xlu0 %v6160_v46  ;;  %v5664_v8 = vpop.eup %5663  ;;  %v3610_v10 = vmul.f32 %v5662_v7, %v7006_v23 }
0x335b   :  { %3422 = vperm.xlu0 %5480, %v3408_v60   ;;  %5472 = vset.pattern.permute.xlu1 %v6158_v31  ;;  %v3660_v16 = vmul.f32 %v5664_v8, %v6985_v4 }
0x335c   :  { %3519 = vperm.xlu1 %5472, %v3511_v36   ;;  %v7038_v18 = vmul.f32 0.35355338, %v3610_v10  ;;  %v7096_v10 = vld [vmem:[#allocation20] sm:$0xff] }
0x335d   :  { %v5666_v6 = vpop.eup %5665  ;;  %v3661_v39 = vmul.f32 0.35355338, %v3660_v16 }
0x335e   :  { %v3760_v19 = vmul.f32 %v5666_v6, %v7010_v33  ;;  %v5668_v4 = vpop.eup %5667 }
0x335f   :  { %5483 = vset.pattern.permute.xlu0 %v6159_v29  ;;  %v3460_v23 = vmul.f32 %v5668_v4, %v7000_v11 }
0x3360   :  { %3714 = vperm.xlu0 %5483, %v3711_v9   ;;  %5473 = vset.pattern.permute.xlu1 %v6160_v46  ;;  %v3761_v20 = vmul.f32 0.35355338, %v3760_v19 }
0x3361   :  { %3369 = vperm.xlu1 %5473, %v3355_v47   ;;  %v3461_v21 = vmul.f32 0.35355338, %v3460_v23 }
0x3364   :  { %3614 = vperm.xlu0 %5483, %v7038_v18  }
0x3365   :  { %5474 = vset.pattern.permute.xlu1 %v6159_v29 }
0x3366   :  { %3664 = vperm.xlu1 %5474, %v3661_v39  }
0x3368   :  { %3764 = vperm.xlu0 %5483, %v3761_v20  }
0x336a   :  { %5475 = vset.pattern.permute.xlu1 %v6158_v31 }
0x336b   :  { %3669 = vperm.xlu1 %5475, %v3661_v39  }
0x336c   :  { %5489 = vset.pattern.permute.xlu0 %v6160_v46 }
0x336d   :  { %3775 = vperm.xlu0 %5489, %v3761_v20  }
0x336f   :  { %5476 = vset.pattern.permute.xlu1 %v6160_v46 }
0x3370   :  { %3675 = vperm.xlu1 %5476, %v3661_v39  }
0x3374   :  { %5477 = vset.pattern.permute.xlu1 %v6159_v29 }
0x3375   :  { %3411 = vperm.xlu1 %5477, %v3408_v60  }
0x3379   :  { %5478 = vset.pattern.permute.xlu1 %v6158_v31 }
0x337a   :  { %3416 = vperm.xlu1 %5478, %v3408_v60  }
0x337e   :  { %3569 = vperm.xlu1 %5478, %v3561_v55   ;;  %v3218_v12 = vpop.permute.xlu1 %3217  ;;  %v3223_v33 = vpop.permute.xlu0 %3222 }
0x337f   :  { %v3225_v50 = vmul.f32 %v3223_v33, %v6801_v22  ;;  %v3220_v51 = vmul.f32 %v3218_v12, %v6799_v24 }
0x3381   :  { %v3226_v53 = vadd.f32 %v3225_v50, %v3220_v51 }
0x3382   :  { %5481 = vset.pattern.permute.xlu1 %v6159_v29  ;;  %v3267_v26 = vpop.permute.xlu0 %3266 }
0x3383   :  { %3464 = vperm.xlu1 %5481, %v3461_v21   ;;  %v3229_v13 = vpop.permute.xlu1 %3228  ;;  %v3269_v34 = vmul.f32 %v3267_v26, %v6801_v22 }
0x3384   :  { %v3231_v52 = vmul.f32 %v3229_v13, %v6805_v15 }
0x3386   :  { %v3232_v36 = vadd.f32 %v3231_v52, %v3226_v53 }
0x3387   :  { %5482 = vset.pattern.permute.xlu1 %v6158_v31  ;;  %v3306_v35 = vpop.permute.xlu0 %3305 }
0x3388   :  { %3469 = vperm.xlu1 %5482, %v3461_v21   ;;  %v3262_v1 = vpop.permute.xlu1 %3261  ;;  %v3308_v45 = vmul.f32 %v3306_v35, %v6799_v24 }
0x3389   :  { %v3264_v28 = vmul.f32 %v3262_v1, %v6799_v24 }
0x338b   :  { %v3270_v40 = vadd.f32 %v3269_v34, %v3264_v28 }
0x338c   :  { %3719 = vperm.xlu1 %5482, %v3711_v9   ;;  %v3317_v29 = vpop.permute.xlu0 %3316 }
0x338d   :  { %v3273_v11 = vpop.permute.xlu1 %3272  ;;  %v3319_v25 = vmul.f32 %v3317_v29, %v6805_v15 }
0x338e   :  { %v3275_v41 = vmul.f32 %v3273_v11, %v6805_v15 }
0x3390   :  { %v3276_v42 = vadd.f32 %v3275_v41, %v3270_v40  ;;  %5484 = vset.pattern.permute.xlu1 %v6160_v46 }
0x3391   :  { %3575 = vperm.xlu1 %5484, %v3561_v55  }
0x3392   :  { %3887 = vrot.lane.b32.xlu0 %v3276_v42, %s6152_s0  ;;  %v3311_v44 = vpop.permute.xlu1 %3310 }
0x3393   :  { %v3313_v49 = vmul.f32 %v3311_v44, %v6801_v22 }
0x3395   :  { %v3314_v27 = vadd.f32 %v3313_v49, %v3308_v45  ;;  %5485 = vset.pattern.permute.xlu1 %v6158_v31 }
0x3396   :  { %3619 = vperm.xlu1 %5485, %v7038_v18  }
0x3397   :  { %v3320_v32 = vadd.f32 %v3319_v25, %v3314_v27 }
0x3399   :  { %3979 = vrot.lane.b32.xlu0 %v3320_v32, %s6152_s0 }
0x339a   :  { %5486 = vset.pattern.permute.xlu1 %v6160_v46 }
0x339b   :  { %3475 = vperm.xlu1 %5486, %v3461_v21  }
0x339f   :  { %3725 = vperm.xlu1 %5486, %v3711_v9  }
0x33a3   :  { %5487 = vset.pattern.permute.xlu1 %v6158_v31  ;;  %v7072_v31 = vld [vmem:[#allocation20 + $0x10] sm:$0xff] }
0x33a4   :  { %3769 = vperm.xlu1 %5487, %v3761_v20   ;;  %5295 = vmatpush3.msra.mxu1 %v7072_v31 }
0x33a5   :  { %5306 = vmatpush3.msra.mxu0 %v7072_v31  ;;  %5296 = vmatprep.subr.mxu1 %v6150_v48 }
0x33a6   :  { %5307 = vmatprep.subr.mxu0 %v6150_v48 }
0x33a8   :  { %5488 = vset.pattern.permute.xlu1 %v6160_v46  ;;  %v7077_v46 = vld [vmem:[#allocation20 + $0x8] sm:$0xff] }
0x33a9   :  { %3625 = vperm.xlu1 %5488, %v7038_v18   ;;  %5297 = vmatpush3.msra.mxu1 %v7077_v46 }
0x33aa   :  { %5308 = vmatpush3.msra.mxu0 %v7077_v46  ;;  %5298 = vmatprep.subr.mxu1 %v6150_v48 }
0x33ab   :  { %5309 = vmatprep.subr.mxu0 %v6150_v48  ;;  %5299 = vmatpush3.msra.mxu1 %v7096_v10 }
0x33ac   :  { %5310 = vmatpush3.msra.mxu0 %v7096_v10  ;;  %5314 = vmatprep.subr.mxu1 %v6150_v48 }
0x33ad   :  { %3786 = vrot.lane.b32.xlu1 %v3232_v36, %s6152_s0  ;;  %5325 = vmatprep.subr.mxu0 %v6150_v48 }
0x33c3   :  { %v3526_v58 = vpop.permute.xlu0 %3525 }
0x33c4   :  { %v3528_v54 = vmul.f32 %v3526_v58, %v6805_v15 }
0x33c8   :  { %v3359_v37 = vpop.permute.xlu1 %3358 }
0x33c9   :  { %v3361_v2 = vmul.f32 %v3359_v37, %v6799_v24 }
0x33cd   :  { %v3364_v56 = vpop.permute.xlu1 %3363 }
0x33ce   :  { %v3366_v38 = vmul.f32 %v3364_v56, %v6801_v22 }
0x33d0   :  { %v3367_v61 = vadd.f32 %v3366_v38, %v3361_v2 }
0x33d1   :  { %v3565_v23 = vpop.permute.xlu0 %3564 }
0x33d2   :  { %v3515_v57 = vpop.permute.xlu1 %3514  ;;  %v3567_v29 = vmul.f32 %v3565_v23, %v6799_v24 }
0x33d3   :  { %v3517_v59 = vmul.f32 %v3515_v57, %v6799_v24 }
0x33d6   :  { %v3423_v33 = vpop.permute.xlu0 %3422 }
0x33d7   :  { %v3520_v47 = vpop.permute.xlu1 %3519  ;;  %v3425_v1 = vmul.f32 %v3423_v33, %v6805_v15 }
0x33d8   :  { %v3522_v62 = vmul.f32 %v3520_v47, %v6801_v22 }
0x33da   :  { %v3523_v55 = vadd.f32 %v3522_v62, %v3517_v59 }
0x33db   :  { %v3715_v45 = vpop.permute.xlu0 %3714 }
0x33dc   :  { %v3529_v3 = vadd.f32 %v3528_v54, %v3523_v55  ;;  %v3370_v60 = vpop.permute.xlu1 %3369  ;;  %v3717_v53 = vmul.f32 %v3715_v45, %v6799_v24 }
0x33dd   :  { %v3372_v7 = vmul.f32 %v3370_v60, %v6805_v15 }
0x33de   :  { %3794 = vrot.lane.b32.xlu0 %v3529_v3, %s6152_s0 }
0x33df   :  { %v3373_v8 = vadd.f32 %v3372_v7, %v3367_v61  ;;  %v3615_v50 = vpop.permute.xlu0 %3614 }
0x33e1   :  { %3790 = vrot.lane.b32.xlu1 %v3373_v8, %s6152_s0  ;;  %v3665_v9 = vpop.permute.xlu1 %3664 }
0x33e2   :  { %v3667_v18 = vmul.f32 %v3665_v9, %v6799_v24  ;;  %v3617_v9 = vmul.f32 %v3615_v50, %v6799_v24 }
0x33e3   :  { %v3765_v36 = vpop.permute.xlu0 %3764 }
0x33e4   :  { %v3767_v2 = vmul.f32 %v3765_v36, %v6799_v24 }
0x33e6   :  { %v3670_v6 = vpop.permute.xlu1 %3669 }
0x33e7   :  { %v3672_v16 = vmul.f32 %v3670_v6, %v6801_v22 }
0x33e8   :  { %v3776_v38 = vpop.permute.xlu0 %3775 }
0x33e9   :  { %v3673_v39 = vadd.f32 %v3672_v16, %v3667_v18  ;;  %v3778_v7 = vmul.f32 %v3776_v38, %v6805_v15 }
0x33eb   :  { %v3676_v19 = vpop.permute.xlu1 %3675 }
0x33ec   :  { %v3678_v20 = vmul.f32 %v3676_v19, %v6805_v15 }
0x33ee   :  { %v3679_v4 = vadd.f32 %v3678_v20, %v3673_v39 }
0x33f0   :  { %3798 = vrot.lane.b32.xlu1 %v3679_v4, %s6152_s0  ;;  %v3412_v12 = vpop.permute.xlu1 %3411 }
0x33f1   :  { %v3414_v13 = vmul.f32 %v3412_v12, %v6799_v24 }
0x33f5   :  { %v3417_v21 = vpop.permute.xlu1 %3416 }
0x33f6   :  { %v3419_v26 = vmul.f32 %v3417_v21, %v6801_v22 }
0x33f8   :  { %v3420_v28 = vadd.f32 %v3419_v26, %v3414_v13 }
0x33f9   :  { %v3570_v34 = vpop.permute.xlu1 %3569 }
0x33fa   :  { %v3426_v35 = vadd.f32 %v3425_v1, %v3420_v28  ;;  %v3572_v42 = vmul.f32 %v3570_v34, %v6801_v22 }
0x33fc   :  { %3891 = vrot.lane.b32.xlu1 %v3426_v35, %s6152_s0  ;;  %v3573_v49 = vadd.f32 %v3572_v42, %v3567_v29 }
0x33fe   :  { %v3465_v11 = vpop.permute.xlu1 %3464 }
0x33ff   :  { %v3467_v47 = vmul.f32 %v3465_v11, %v6799_v24 }
0x3403   :  { %v3470_v40 = vpop.permute.xlu1 %3469 }
0x3404   :  { %v3472_v56 = vmul.f32 %v3470_v40, %v6801_v22 }
0x3406   :  { %v3473_v54 = vadd.f32 %v3472_v56, %v3467_v47 }
0x3407   :  { %v3720_v41 = vpop.permute.xlu1 %3719 }
0x3408   :  { %v3722_v52 = vmul.f32 %v3720_v41, %v6801_v22  ;;  %v4681_v41 = vld [vmem:[#allocation22] ss:$0 sm:$0xff] }
0x340a   :  { %v3723_v57 = vadd.f32 %v3722_v52, %v3717_v53 }
0x340c   :  { %v3576_v44 = vpop.permute.xlu1 %3575 }
0x340d   :  { %v3578_v25 = vmul.f32 %v3576_v44, %v6805_v15 }
0x340f   :  { %v3579_v27 = vadd.f32 %v3578_v25, %v3573_v49 }
0x3411   :  { %3895 = vrot.lane.b32.xlu0 %v3579_v27, %s6152_s0  ;;  %v3620_v32 = vpop.permute.xlu1 %3619 }
0x3412   :  { %v3622_v60 = vmul.f32 %v3620_v32, %v6801_v22 }
0x3414   :  { %v3623_v18 = vadd.f32 %v3622_v60, %v3617_v9  ;;  %v4143_v9 = vld [vmem:[#allocation26 + $0x8] sm:$0xff] }
0x3416   :  { %v3476_v51 = vpop.permute.xlu1 %3475 }
0x3417   :  { %v3478_v59 = vmul.f32 %v3476_v51, %v6805_v15 }
0x3419   :  { %v3479_v61 = vadd.f32 %v3478_v59, %v3473_v54 }
0x341a   :  { %v3726_v37 = vpop.permute.xlu1 %3725 }
0x341b   :  { %v3728_v58 = vmul.f32 %v3726_v37, %v6805_v15 }
0x341d   :  { %v3729_v62 = vadd.f32 %v3728_v58, %v3723_v57 }
0x341f   :  { %3899 = vrot.lane.b32.xlu1 %v3729_v62, %s6152_s0  ;;  %v3770_v55 = vpop.permute.xlu1 %3769 }
0x3420   :  { %v3772_v3 = vmul.f32 %v3770_v55, %v6801_v22  ;;  %v3888_v22 = vpop.permute.xlu0 %3887 }
0x3422   :  { %v3773_v8 = vadd.f32 %v3772_v3, %v3767_v2 }
0x3423   :  { %3983 = vrot.lane.b32.xlu1 %v3479_v61, %s6152_s0 }
0x3424   :  { %v3779_v6 = vadd.f32 %v3778_v7, %v3773_v8  ;;  %v3626_v16 = vpop.permute.xlu1 %3625  ;;  %v3980_v23 = vpop.permute.xlu0 %3979  ;;  %v4145_v7 = vld [vmem:[#allocation26 + $0x18] sm:$0xff]  ;;  %v4144_v8 = vld [vmem:[#allocation26 + $0x10] sm:$0xff] }
0x3425   :  { %v3628_v19 = vmul.f32 %v3626_v16, %v6805_v15 }
0x3427   :  { %v3629_v39 = vadd.f32 %v3628_v19, %v3623_v18  ;;  %3991 = vrot.lane.b32.xlu1 %v3779_v6, %s6152_s0  ;;  %v4142_v6 = vld [vmem:[#allocation26] sm:$0xff] }
0x3428   :  { %v3787_v20 = vpop.permute.xlu1 %3786 }
0x3429   :  { %3987 = vrot.lane.b32.xlu0 %v3629_v39, %s6152_s0 }
0x3450   :  { %v3795_v24 = vpop.permute.xlu0 %3794 }
0x3453   :  { %v3791_v4 = vpop.permute.xlu1 %3790 }
0x3454   :  { %v3802_v12 = vsel %vm3801_vm11, %v3787_v20, %v3791_v4 }
0x3455   :  { %v3804_v33 = vsel %vm3803_vm12, %v3802_v12, %v3795_v24  ;;  %v4074_v12 = vld [vmem:[#allocation25] sm:$0x7] }
0x3462   :  { %v3799_v21 = vpop.permute.xlu1 %3798 }
0x3463   :  { %v3806_v15 = vsel %vm3805_vm13, %v3804_v33, %v3799_v21 }
0x3464   :  { %5301 = vmatmul.mubr.msk.f32.vlgmr.msra.gmra.mxu1 %vm910_vm3, %v3806_v15 }
0x3465   :  { %5315 = vmatpush3.msra.mxu1 %v7070_v43  ;;  %5322 = vmatprep.mubr.msk.f32.mxu1 %vm6151_vm1, %v6150_v48 }
0x3466   :  { %5316 = vmatprep.subr.mxu1 %v6150_v48 }
0x3467   :  { %5317 = vmatpush3.msra.mxu1 %v7072_v31 }
0x3468   :  { %5318 = vmatprep.subr.mxu1 %v6150_v48 }
0x3469   :  { %5319 = vmatpush3.msra.mxu1 %v7077_v46 }
0x346a   :  { %5320 = vmatprep.subr.mxu1 %v6150_v48 }
0x346b   :  { %5321 = vmatpush3.msra.mxu1 %v7096_v10 }
0x346c   :  { %5336 = vmatprep.subr.mxu1 %v6150_v48 }
0x346e   :  { %v3892_v13 = vpop.permute.xlu1 %3891 }
0x346f   :  { %v3902_v43 = vsel %vm3801_vm11, %v3888_v22, %v3892_v13  ;;  %v4118_v13 = vrot.slane %v4074_v12, %v6772_v63 }
0x3483   :  { %v3896_v26 = vpop.permute.xlu0 %3895 }
0x3484   :  { %v3903_v1 = vsel %vm3803_vm12, %v3902_v43, %v3896_v26  ;;  %v4129_v43 = vrot.slane %v4074_v12, %v6775_v0 }
0x3491   :  { %v3900_v28 = vpop.permute.xlu1 %3899 }
0x3492   :  { %v3904_v34 = vsel %vm3805_vm13, %v3903_v1, %v3900_v28 }
0x3493   :  { %5312 = vmatmul.mubr.msk.f32.vlgmr.msra.gmra.mxu0 %vm910_vm3, %v3904_v34 }
0x3494   :  { %5333 = vmatprep.mubr.msk.f32.mxu0 %vm6151_vm1, %v6150_v48  ;;  %5326 = vmatpush3.msra.mxu0 %v4145_v7 }
0x3495   :  { %v3984_v31 = vpop.permute.xlu1 %3983  ;;  %5327 = vmatprep.subr.mxu0 %v6150_v48 }
0x3496   :  { %v3994_v46 = vsel %vm3801_vm11, %v3980_v23, %v3984_v31  ;;  %5328 = vmatpush3.msra.mxu0 %v4144_v8  ;;  %v4073_v23 = vld [vmem:[#allocation23] sm:$0x7] }
0x3497   :  { %5329 = vmatprep.subr.mxu0 %v6150_v48  ;;  %v4113_v24 = vrot.slane %v4073_v23, %v6772_v63  ;;  %v4124_v33 = vrot.slane %v4073_v23, %v6775_v0  ;;  %v4140_v0 = vrot.slane %v4074_v12, %v6780_v5 }
0x3498   :  { %5330 = vmatpush3.msra.mxu0 %v4143_v9 }
0x3499   :  { %v3992_v35 = vpop.permute.xlu1 %3991  ;;  %5331 = vmatprep.subr.mxu0 %v6150_v48 }
0x349a   :  { %5332 = vmatpush3.msra.mxu0 %v4142_v6 }
0x349b   :  { %v3988_v10 = vpop.permute.xlu0 %3987  ;;  %5347 = vmatprep.subr.mxu0 %v6150_v48 }
0x349c   :  { %v3995_v11 = vsel %vm3803_vm12, %v3994_v46, %v3988_v10  ;;  %v4135_v10 = vrot.slane %v4073_v23, %v6780_v5  ;;  %v4397_v5 = vld [vmem:[%s7283_s23 + $0x58] sm:$0xff] }
0x349d   :  { %v3996_v40 = vsel %vm3805_vm13, %v3995_v11, %v3992_v35  ;;  %v4396_v11 = vld [vmem:[%s7283_s23 + $0x50] sm:$0xff] }
0x349e   :  { %5323 = vmatmul.mubr.msk.f32.vlgmr.msra.gmra.mxu1 %vm910_vm3, %v3996_v40  ;;  %v4395_v40 = vld [vmem:[%s7283_s23 + $0x48] sm:$0xff] }
0x349f   :  { %5344 = vmatprep.mubr.msk.f32.mxu1 %vm6151_vm1, %v6150_v48  ;;  %5337 = vmatpush3.msra.mxu1 %v4145_v7 }
0x34a0   :  { %5338 = vmatprep.subr.mxu1 %v6150_v48 }
0x34a1   :  { %5339 = vmatpush3.msra.mxu1 %v4144_v8 }
0x34a2   :  { %5340 = vmatprep.subr.mxu1 %v6150_v48 }
0x34a3   :  { %5341 = vmatpush3.msra.mxu1 %v4143_v9 }
0x34a4   :  { %5342 = vmatprep.subr.mxu1 %v6150_v48 }
0x34a5   :  { %5343 = vmatpush3.msra.mxu1 %v4142_v6 }
0x34a6   :  { %5358 = vmatprep.subr.mxu1 %v6150_v48 }
0x3524   :  { %v3882_v42 = vpop.f32.mrf.mxu1 }
0x3525   :  { %v3883_v29 = vadd.f32 %v4681_v41, %v3882_v42  ;;  %v4393_v42 = vld [vmem:[%s7283_s23 + $0x38] sm:$0xff] }
0x3526   :  { %v5302_v44 = vpop.f32.mrf.mxu1 }
0x3527   :  { %v7157_v45 = vadd.f32 %v3883_v29, %v6728_v17  ;;  %v4392_v29 = vld [vmem:[%s7283_s23 + $0x30] sm:$0xff]  ;;  %v4391_v44 = vld [vmem:[%s7283_s23 + $0x28] sm:$0xff] }
0x3529   :  { %v4075_v49 = vsel %vm2875_vm6, %v7157_v45, 0.0 }
0x352a   :  { %4076 = vadd.xlane.f32.xlu0 %v4075_v49  ;;  %v4390_v49 = vld [vmem:[%s7283_s23 + $0x20] sm:$0xff] }
0x3553   :  { %v3974_v25 = vpop.f32.mrf.mxu0 }
0x3554   :  { %v3975_v27 = vadd.f32 %v4681_v41, %v3974_v25  ;;  %v4389_v25 = vld [vmem:[%s7283_s23 + $0x18] sm:$0xff] }
0x3555   :  { %v5313_v32 = vpop.f32.mrf.mxu0 }
0x3556   :  { %v7162_v50 = vadd.f32 %v3975_v27, %v6742_v14  ;;  %v4388_v27 = vld [vmem:[%s7283_s23 + $0x10] sm:$0xff]  ;;  %v4387_v32 = vld [vmem:[%s7283_s23 + $0x8] sm:$0xff] }
0x3558   :  { %v4078_v51 = vsel %vm2875_vm6, %v7162_v50, 0.0 }
0x3559   :  { %4079 = vadd.xlane.f32.xlu1 %v4078_v51  ;;  %v4685_v51 = vld [vmem:[#allocation28] ss:$0 sm:$0xff] }
0x355e   :  { %v4066_v52 = vpop.f32.mrf.mxu1 }
0x355f   :  { %v4067_v53 = vadd.f32 %v4681_v41, %v4066_v52  ;;  %v4394_v41 = vld [vmem:[%s7283_s23 + $0x40] sm:$0xff] }
0x3560   :  { %v5324_v36 = vpop.f32.mrf.mxu1  ;;  %v4386_v52 = vld [vmem:[%s7283_s23] sm:$0xff] }
0x3561   :  { %v7167_v17 = vadd.f32 %v4067_v53, %v6749_v30 }
0x3563   :  { %v4081_v37 = vsel %vm2875_vm6, %v7167_v17, 0.0 }
0x3564   :  { %4082 = vadd.xlane.f32.xlu0 %v4081_v37 }
0x35b3   :  { %v4077_v56 = vpop.xlane.xlu0 %4076 }
0x35e2   :  { %v4080_v57 = vpop.xlane.xlu1 %4079 }
0x35e3   :  { %v4085_v58 = vadd.f32 %v4080_v57, %v4077_v56  ;;  %v4483_v57 = vld [vmem:[%s6315_s21 + $0x18] sm:$0xff] }
0x35ed   :  { %v4083_v47 = vpop.xlane.xlu0 %4082 }
0x35ee   :  { %v4086_v14 = vadd.f32 %v4085_v58, %v4083_v47 }
0x35f0   :  { %v4087_v59 = vmul.f32 0.010416667, %v4086_v14 }
0x35f2   :  { %v4088_v62 = vsub.f32 %v7157_v45, %v4087_v59  ;;  %v4089_v38 = vsub.f32 %v7162_v50, %v4087_v59  ;;  %v4090_v54 = vsub.f32 %v7167_v17, %v4087_v59 }
0x35f4   :  { %v4095_v55 = vmul.f32 %v4089_v38, %v4089_v38  ;;  %v4091_v2 = vmul.f32 %v4088_v62, %v4088_v62  ;;  %v4099_v60 = vmul.f32 %v4090_v54, %v4090_v54 }
0x35f6   :  { %v4096_v30 = vsel %vm2875_vm6, %v4095_v55, 0.0  ;;  %v4092_v3 = vsel %vm2875_vm6, %v4091_v2, 0.0  ;;  %v4100_v61 = vsel %vm2875_vm6, %v4099_v60, 0.0  ;;  %v4482_v60 = vld [vmem:[%s6315_s21 + $0x10] sm:$0xff] }
0x35f7   :  { %4097 = vadd.xlane.f32.xlu1 %v4096_v30  ;;  %4093 = vadd.xlane.f32.xlu0 %v4092_v3 }
0x35fb   :  { %4101 = vadd.xlane.f32.xlu0 %v4100_v61  ;;  %v4481_v61 = vld [vmem:[%s6315_s21 + $0x8] sm:$0xff] }
0x3680   :  { %v4098_v16 = vpop.xlane.xlu1 %4097  ;;  %v4094_v18 = vpop.xlane.xlu0 %4093 }
0x3681   :  { %v4104_v19 = vadd.f32 %v4098_v16, %v4094_v18  ;;  %v4691_v16 = vld [vmem:[#allocation31] ss:$0 sm:$0xff] }
0x3684   :  { %v4102_v39 = vpop.xlane.xlu0 %4101 }
0x3685   :  { %v4105_v20 = vadd.f32 %v4104_v19, %v4102_v39 }
0x3687   :  { %v4106_v22 = vmul.f32 0.010416667, %v4105_v20 }
0x3689   :  { %v4107_v4 = vadd.f32 1e-05, %v4106_v22 }
0x368b   :  { %5669 = vrsqrt.f32 %v4107_v4 }
0x3698   :  { %v5670_v21 = vpop.eup %5669 }
0x3699   :  { %v4109_v15 = vmul.f32 %v5670_v21, %v4088_v62  ;;  %v4120_v26 = vmul.f32 %v5670_v21, %v4089_v38  ;;  %v4131_v46 = vmul.f32 %v5670_v21, %v4090_v54 }
0x369b   :  { %v4114_v1 = vmul.f32 %v4113_v24, %v4109_v15  ;;  %v4125_v28 = vmul.f32 %v4124_v33, %v4120_v26  ;;  %v4136_v63 = vmul.f32 %v4135_v10, %v4131_v46 }
0x369d   :  { %v4119_v34 = vadd.f32 %v4118_v13, %v4114_v1  ;;  %v4130_v31 = vadd.f32 %v4129_v43, %v4125_v28  ;;  %v4141_v35 = vadd.f32 %v4140_v0, %v4136_v63 }
0x369f   :  { %5334 = vmatmul.mubr.msk.f32.vlgmr.msra.gmra.mxu0 %vm910_vm3, %v4119_v34  ;;  %5345 = vmatmul.mubr.msk.f32.vlgmr.msra.gmra.mxu1 %vm910_vm3, %v4130_v31 }
0x36a0   :  { %5348 = vmatpush3.msra.mxu0 %v4145_v7  ;;  %5355 = vmatprep.mubr.msk.f32.mxu0 %vm6151_vm1, %v6150_v48  ;;  %v4689_v7 = vld [vmem:[#allocation29] ss:$0 sm:$0xff] }
0x36a1   :  { %5349 = vmatprep.subr.mxu0 %v6150_v48  ;;  %5382 = vmatprep.mubr.msk.f32.mxu1 %vm6151_vm1, %v6150_v48 }
0x36a2   :  { %5350 = vmatpush3.msra.mxu0 %v4144_v8  ;;  %5359 = vmatpush3.msra.mxu1 %v4397_v5 }
0x36a3   :  { %5351 = vmatprep.subr.mxu0 %v6150_v48  ;;  %5360 = vmatprep.subr.mxu1 %v6150_v48 }
0x36a4   :  { %5352 = vmatpush3.msra.mxu0 %v4143_v9  ;;  %5361 = vmatpush3.msra.mxu1 %v4396_v11 }
0x36a5   :  { %5353 = vmatprep.subr.mxu0 %v6150_v48  ;;  %5362 = vmatprep.subr.mxu1 %v6150_v48 }
0x36a6   :  { %5354 = vmatpush3.msra.mxu0 %v4142_v6  ;;  %5363 = vmatpush3.msra.mxu1 %v4395_v40 }
0x36a7   :  { %5356 = vmatmul.mubr.msk.f32.vlgmr.msra.gmra.mxu0 %vm910_vm3, %v4141_v35  ;;  %5385 = vmatprep.subr.mxu0 %v6150_v48 }
0x36a8   :  { %5393 = vmatprep.mubr.msk.f32.mxu0 %vm6151_vm1, %v6150_v48  ;;  %5364 = vmatprep.subr.mxu1 %v6150_v48 }
0x36a9   :  { %5365 = vmatpush3.msra.mxu1 %v4394_v41  ;;  %5386 = vmatpush3.msra.mxu0 %v4483_v57 }
0x36aa   :  { %5366 = vmatprep.subr.mxu1 %v6150_v48  ;;  %5387 = vmatprep.subr.mxu0 %v6150_v48 }
0x36ab   :  { %5367 = vmatpush3.msra.mxu1 %v4393_v42  ;;  %5388 = vmatpush3.msra.mxu0 %v4482_v60 }
0x36ac   :  { %5368 = vmatprep.subr.mxu1 %v6150_v48  ;;  %5389 = vmatprep.subr.mxu0 %v6150_v48 }
0x36ad   :  { %5369 = vmatpush3.msra.mxu1 %v4392_v29  ;;  %5390 = vmatpush3.msra.mxu0 %v4481_v61 }
0x36ae   :  { %5370 = vmatprep.subr.mxu1 %v6150_v48  ;;  %5391 = vmatprep.subr.mxu0 %v6150_v48 }
0x36af   :  { %5371 = vmatpush3.msra.mxu1 %v4391_v44 }
0x36b0   :  { %5372 = vmatprep.subr.mxu1 %v6150_v48 }
0x36b1   :  { %5373 = vmatpush3.msra.mxu1 %v4390_v49 }
0x36b2   :  { %5374 = vmatprep.subr.mxu1 %v6150_v48 }
0x36b3   :  { %5375 = vmatpush3.msra.mxu1 %v4389_v25 }
0x36b4   :  { %5376 = vmatprep.subr.mxu1 %v6150_v48 }
0x36b5   :  { %5377 = vmatpush3.msra.mxu1 %v4388_v27 }
0x36b6   :  { %5378 = vmatprep.subr.mxu1 %v6150_v48 }
0x36b7   :  { %5379 = vmatpush3.msra.mxu1 %v4387_v32 }
0x36b8   :  { %5380 = vmatprep.subr.mxu1 %v6150_v48 }
0x36b9   :  { %5381 = vmatpush3.msra.mxu1 %v4386_v52 }
0x375f   :  { %v4222_v53 = vpop.f32.mrf.mxu0  ;;  %v4296_v36 = vpop.f32.mrf.mxu1 }
0x3760   :  { %v4223_v37 = vadd.f32 %v4685_v51, %v4222_v53  ;;  %v4297_v56 = vadd.f32 %v4685_v51, %v4296_v36 }
0x3761   :  { %v5335_v58 = vpop.f32.mrf.mxu0  ;;  %v5346_v47 = vpop.f32.mrf.mxu1 }
0x3762   :  { %v4300_v14 = vadd.f32 %v4297_v56, %v7162_v50  ;;  %v4226_v2 = vadd.f32 %v4223_v37, %v7157_v45 }
0x3764   :  { %4376 = vrot.lane.b32.xlu1 %v4300_v14, %s6153_s28 }
0x3767   :  { %v4370_v59 = vpop.f32.mrf.mxu0 }
0x3768   :  { %v4371_v62 = vadd.f32 %v4685_v51, %v4370_v59 }
0x3769   :  { %v5357_v38 = vpop.f32.mrf.mxu0 }
0x376a   :  { %v4374_v54 = vadd.f32 %v4371_v62, %v7167_v17  ;;  %v4480_v17 = vld [vmem:[%s6315_s21] sm:$0xff]  ;;  %s6161_s21 = smov [#allocation32]  }
0x376b   :  { %5392 = vmatpush3.msra.mxu0 %v4480_v17  ;;  %s4583_s4 = sshll.u32 %s6161_s21, 4  ;;  %s4584_s4 = int_to_ptr.vmem [resolvable:$true] %s4583_s4 }
0x376c   :  { %4380 = vrot.lane.b32.xlu0 %v4374_v54, %s6152_s0  ;;  %s6055_s26 = scalar_lea.vmem %s4584_s4, 32  ;;  %p6060_p12 = scmp.lt.s32.totalorder %s4584_s4, %s4584_s4 }
0x376d   :  { %p6056_p11 = scmp.ne.s32.totalorder %s4584_s4, %s6055_s26  ;;  %p6061_p13 = scmp.lt.s32.totalorder %s6055_s26, %s6055_s26 }
0x376f   :  { %p6062_p0 = por %p6061_p13, %p6060_p12 }
0x3771   :  { %p6063_p1 = pnand %p6062_p0, %p6056_p11 }
0x37d6   :  { %v4377_v55 = vpop.permute.xlu1 %4376 }
0x37d7   :  { %v4383_v50 = vsel %vm910_vm3, %v4226_v2, %v4377_v55 }
0x37de   :  { %v4381_v30 = vpop.permute.xlu0 %4380 }
0x37df   :  { %v4385_v3 = vsel %vm4384_vm14, %v4383_v50, %v4381_v30 }
0x37e0   :  { %5383 = vmatmul.mubr.msk.f32.vlgmr.msra.gmra.mxu1 %vm4405_vm15, %v4385_v3 }
0x38a0   :  { %v4475_v8 = vpop.f32.mrf.mxu1 }
0x38a1   :  { %v4476_v45 = vadd.f32 %v4689_v7, %v4475_v8 }
0x38a2   :  { %v5384_v9 = vpop.f32.mrf.mxu1 }
0x38a3   :  { %v4479_v6 = vmax.f32 %v4476_v45, 0.0 }
0x38a5   :  { %5394 = vmatmul.mubr.msk.f32.vlgmr.msra.gmra.mxu0 %vm910_vm3, %v4479_v6 }
0x3965   :  { %v4560_v18 = vpop.f32.mrf.mxu0 }
0x3966   :  { %v4561_v19 = vadd.f32 %v4691_v16, %v4560_v18 }
0x3967   :  { %v5395_v39 = vpop.f32.mrf.mxu0 }
0x3968   :  { %v4565_v20 = vsel %vm4564_vm0, %v4561_v19, -inf }
0x3969   :  { %4566 = vmax.xlane.f32.xlu1 %v4565_v20 }
0x39f2   :  { %v4567_v22 = vpop.xlane.xlu1 %4566 }
0x39f3   :  { %v4568_v4 = vsub.f32 %v4561_v19, %v4567_v22 }
0x39f5   :  { %v4569_v48 = vmul.f32 1.442695, %v4568_v4 }
0x39f7   :  { %5671 = vpow2.f32 %v4569_v48 }
0x3a04   :  { %v5672_v23 = vpop.eup %5671 }
0x3a05   :  { %v4571_v12 = vsel %vm4564_vm0, %v5672_v23, 0.0 }
0x3a06   :  { %4572 = vadd.xlane.f32.xlu0 %v4571_v12 }
0x3a8f   :  { %v4573_v24 = vpop.xlane.xlu0 %4572 }
0x3a90   :  { %5673 = vrcp.f32 %v4573_v24 }
0x3a9d   :  { %v5674_v33 = vpop.eup %5673 }
0x3a9e   :  { %v4575_v21 = vmul.f32 %v5674_v33, %v5672_v23 }
0x3aa0   :  { %4576 = vst.msk [vmem:[#allocation32] sm:$0x3] %vm4564_vm0, %v4575_v21 }
0x3aa1   :  { %6066 = shalt.err (!%p6063_p1)
}
0x3aa2   :  { %4586 = dma.vmem_to_hbm [thread:$0]  %s4584_s4, 32, %s6325_s25, [#allocation4]  }
0x3aa3   :  { %6095 = dma.done.wait [#allocation4], 32  }
0x3aa4   :  { %6096 = vsyncadd [#allocation4], 4294967264 }
0x3aa5   :  { %4590 = vsyncpa [#allocation3], 1 }
0x3aa6   :  { %4591 = vsyncpa [#allocation6], 1 }
0x3aa7   :  { %4592 = vsyncpa [#allocation9], 1 }
0x3aa8   :  { %4593 = vsyncpa [#allocation12], 1 }
0x3aa9   :  { %4594 = vsyncpa [#allocation15], 1 }
0x3aaa   :  { %4595 = vsyncpa [#allocation18], 1 }
0x3aab   :  { %4596 = vsyncpa [#allocation21], 1 }
0x3aac   :  { %4597 = vsyncpa [#allocation24], 1 }
0x3aad   :  { %4598 = vsyncpa [#allocation27], 1 }
0x3aae   :  { %4599 = vsyncpa [#allocation30], 1 }
0x3aaf   :  { %4600 = vsyncpa [#allocation4], 1 }

</bundles_post_ra>
